<compile_context>
chip_gen: v7x
topology: tpu7x:2x2x1
jax: 0.10.0
libtpu: 0.0.40
codegen_flags: <defaults>
</compile_context>

<pallas_src>
import math

import jax
import jax.numpy as jnp
from jax.experimental import pallas as pl
from jax.experimental.pallas import tpu as pltpu

# ------------------------------- configuration -------------------------------
INPUT_DIM = 4          # input_dim
NUM_CLASSES = 6        # output_class_num
N = 2                  # batch
T = 48                 # input sequence length
# Total time-reduction of the conv/pool stack: 8+4+2+2+2+2+1+9+0+1+0 = 31
T_OUT = T - 31         # = 17

BN_EPS = 1e-5
BN_SCALE = 1.0 / math.sqrt(1.0 + BN_EPS)   # eval BN: (x - 0) / sqrt(1 + eps)

# conv layer index -> kernel size of the MaxPool1d(stride=1) that follows it
_POOL_AFTER = {2: 3, 4: 2, 6: 2}

_TAIL = 16             # zero tail rows appended before per-tap slicing (>= max K-1 = 9)
_NEG_INF = -1e30       # additive mask value for sublane pad rows (exp -> 0)


# --------------------------------- helpers ------------------------------------
def _ceil8(v):
    return -(-v // 8) * 8


def _batch_per_step(n):
    """Generation-aware grid strategy: v7x has 2 TensorCores, so keep a
    2-step 'parallel' grid with n//2 batch elements folded per step; on
    single-TC chips (v5e/v6e) fold the whole batch into one grid step."""
    try:
        kind = jax.devices()[0].device_kind.lower()
    except Exception:
        kind = ""
    if ("v7" in kind or "7x" in kind) and n >= 2 and n % 2 == 0:
        return n // 2
    return n


def _prepare_packed(params):
    """Pack every weight into one lane-padded (R, 128) slab (each conv tap as
    a separate (Cin, Cout) block at an 8-aligned row offset) and every bias
    into an (8*L, 128) slab (one 8-aligned row per layer).  Also folds the
    eval-mode BN scale into the conv feeding each BatchNorm and the attention
    projection (wa, ba) into layer 8 as an 81st output column."""
    feat_dim = params["w8"].shape[2]            # 80
    hidden = params["wl1"].shape[1]             # 30

    conv_layers = []                            # (tap_mats, bias_row, relu, pool)

    # layer 1: pre-unfolded in the wrapper -> one (K*Cin, Cout) tap
    w1 = params["w1"].astype(jnp.float32)
    k1, cin1, cout1 = w1.shape
    conv_layers.append(([w1.reshape(k1 * cin1, cout1)],
                        params["b1"].astype(jnp.float32), True, 0))

    for i in range(1, 8):
        w = params[f"w{i + 1}"].astype(jnp.float32)    # (K, Cin, Cout)
        b = params[f"b{i + 1}"].astype(jnp.float32)    # (1, Cout)
        k = w.shape[0]
        scale = BN_SCALE if i in _POOL_AFTER else 1.0  # conv feeding a BN
        taps = [w[j] * scale for j in range(k)]
        bias = b * scale
        if i == 7:
            # fold the attention projection into layer 8 as an extra column:
            # logits = x7 @ (W8 @ wa) + (b8 @ wa + ba)
            wa = params["wa"].astype(jnp.float32)       # (80, 1)
            ba = params["ba"].astype(jnp.float32)       # (1, 1)
            taps = [jnp.concatenate([taps[0], taps[0] @ wa], axis=1)]
            bias = jnp.concatenate([bias, bias @ wa + ba], axis=1)
        conv_layers.append((taps, bias, i != 7, _POOL_AFTER.get(i, 0)))

    mats = [m for taps, _, _, _ in conv_layers for m in taps]
    mats += [params["wl1"].astype(jnp.float32), params["wl2"].astype(jnp.float32)]

    offs, rows = [], 0
    for m in mats:
        offs.append(rows)                       # 8-aligned row offsets
        rows += _ceil8(m.shape[0])
    w_packed = jnp.zeros((rows, 128), jnp.float32)
    for m, off in zip(mats, offs):
        w_packed = w_packed.at[off:off + m.shape[0], :m.shape[1]].set(m)

    biases = [b for _, b, _, _ in conv_layers] + \
             [params["bl1"].astype(jnp.float32), params["bl2"].astype(jnp.float32)]
    b_packed = jnp.zeros((8 * len(biases), 128), jnp.float32)
    for i, b in enumerate(biases):
        b_packed = b_packed.at[8 * i:8 * i + 1, :b.shape[1]].set(b)

    # static per-layer config: (tap row offsets, bias row, Cin, Cout, relu?, pool)
    conv_cfg, p = [], 0
    for i, (taps, _, relu, pool) in enumerate(conv_layers):
        toffs = tuple(offs[p + j] for j in range(len(taps)))
        p += len(taps)
        conv_cfg.append((toffs, 8 * i, taps[0].shape[0], taps[0].shape[1],
                         relu, pool))

    meta = dict(feat_dim=feat_dim, hidden=hidden,
                wl1_off=offs[p], wl2_off=offs[p + 1],
                bl1_row=8 * len(conv_layers), bl2_row=8 * (len(conv_layers) + 1))
    return w_packed, b_packed, tuple(conv_cfg), meta


# --------------------------------- wrapper -------------------------------------
def deepnet_forward(features, att_mask, params):
    n, t, d = features.shape
    t_out = att_mask.shape[1]
    num_classes = params["wl2"].shape[1]

    k1 = params["w1"].shape[0]                 # 9
    t1 = t - k1 + 1                            # 40
    band = _ceil8(t1)                          # per-batch row band (8-aligned)

    # Layer-1 im2col unfold done in XLA: (N, T, D) -> (N*band, K1*D).
    unf = jnp.concatenate([features[:, j:j + t1, :] for j in range(k1)],
                          axis=-1).astype(jnp.float32)        # (N, t1, K1*D)
    if band != t1:
        unf = jnp.concatenate(
            [unf, jnp.zeros((n, band - t1, k1 * d), jnp.float32)], axis=1)
    feat2d = unf.reshape(n * band, k1 * d)

    # Additive attention mask as a (band, 1) column per batch element; rows
    # beyond the valid timeline get a huge negative so softmax ignores them.
    mask = jnp.full((n, band, 1), _NEG_INF, jnp.float32)
    mask = mask.at[:, :t_out, 0].set(att_mask.astype(jnp.float32))
    mask2d = mask.reshape(n * band, 1)

    w_packed, b_packed, conv_cfg, meta = _prepare_packed(params)
    feat_dim, hidden = meta["feat_dim"], meta["hidden"]
    wl1_off, wl2_off = meta["wl1_off"], meta["wl2_off"]
    bl1_row, bl2_row = meta["bl1_row"], meta["bl2_row"]

    nb = _batch_per_step(n)                    # batch elements per grid step
    grid = (n // nb,)
    rows = nb * band                           # stacked activation rows (8-aligned)

    def kernel(feat_ref, mask_ref, w_ref, b_ref, out_ref):
        def shifted(v, k):
            # per-tap row-shifted views; a zero tail keeps the last band's
            # taps in bounds (garbage only ever lands in invalid rows)
            if k == 1:
                return [v]
            vp = jnp.concatenate(
                [v, jnp.zeros((_TAIL, v.shape[1]), jnp.float32)], axis=0)
            return [v] + [vp[j:j + rows, :] for j in range(1, k)]

        x = feat_ref[...]                                    # (rows, K1*D)

        # ---- conv / pool / (folded BN) / ReLU stack: per-tap MXU matmuls ----
        for (toffs, brow, cin, cout, relu, pool) in conv_cfg:
            taps = shifted(x, len(toffs))
            acc = jnp.dot(taps[0], w_ref[toffs[0]:toffs[0] + cin, :cout],
                          preferred_element_type=jnp.float32)
            for j in range(1, len(toffs)):
                acc = acc + jnp.dot(taps[j],
                                    w_ref[toffs[j]:toffs[j] + cin, :cout],
                                    preferred_element_type=jnp.float32)
            y = acc + b_ref[brow:brow + 1, :cout]
            if pool > 1:                                     # MaxPool1d(pool, 1)
                win = shifted(y, pool)
                m = win[0]
                for j in range(1, pool):
                    m = jnp.maximum(m, win[j])
                y = m
            if relu:
                y = jnp.maximum(y, 0.0)
            x = y                                            # eval Dropout == id

        # ---- SelfAttentionPooling: logits folded into layer 8 (lane 80) ----
        pooled_rows = []
        for bb in range(nb):
            blk = x[bb * band:(bb + 1) * band, :]            # (band, 81), aligned
            logit = (blk[:, feat_dim:feat_dim + 1]
                     + mask_ref[bb * band:(bb + 1) * band, :])   # (band, 1)
            mx = jnp.max(logit, axis=0, keepdims=True)
            e = jnp.exp(logit - mx)                          # pad rows -> 0
            att = e * pl.reciprocal(jnp.sum(e, axis=0, keepdims=True),
                                    approx=True)
            pooled_rows.append(
                jnp.sum(blk[:, :feat_dim] * att, axis=0, keepdims=True))
        pooled = (pooled_rows[0] if nb == 1
                  else jnp.concatenate(pooled_rows, axis=0))     # (nb, 80)

        # ---- output MLP (wl2/bl2 packed lane-dense to 128, zeros past C) ----
        h = jnp.maximum(
            jnp.dot(pooled, w_ref[wl1_off:wl1_off + feat_dim, :hidden],
                    preferred_element_type=jnp.float32)
            + b_ref[bl1_row:bl1_row + 1, :hidden], 0.0)
        out = (jnp.dot(h, w_ref[wl2_off:wl2_off + hidden, :],
                       preferred_element_type=jnp.float32)
               + b_ref[bl2_row:bl2_row + 1, :])
        out_ref[...] = out.reshape(nb, 1, 128)

    out3 = pl.pallas_call(
        kernel,
        out_shape=jax.ShapeDtypeStruct((n, 1, 128), jnp.float32),
        grid=grid,
        in_specs=[
            pl.BlockSpec((rows, k1 * d), lambda g: (g, 0)),
            pl.BlockSpec((rows, 1), lambda g: (g, 0)),
            pl.BlockSpec(w_packed.shape, lambda g: (0, 0)),
            pl.BlockSpec(b_packed.shape, lambda g: (0, 0)),
        ],
        out_specs=pl.BlockSpec((nb, 1, 128), lambda g: (g, 0, 0)),
        compiler_params=pltpu.CompilerParams(
            dimension_semantics=("parallel",)),
    )(feat2d, mask2d, w_packed, b_packed)

    return out3[:, 0, :num_classes]


# --------------------------- deterministic parameters -------------------------
def make_params(key):
    ks = jax.random.split(key, 32)
    ki = iter(range(32))

    def conv_w(cin, cout, k):
        # stored as (K, Cin, Cout)  == transpose of PyTorch (Cout, Cin, K)
        return (0.1 * jax.random.normal(ks[next(ki)], (k, cin, cout))
                ).astype(jnp.float32)

    def bias(cout):
        return (0.05 * jax.random.normal(ks[next(ki)], (1, cout))
                ).astype(jnp.float32)

    p = {}
    p["w1"], p["b1"] = conv_w(INPUT_DIM, 10, 9), bias(10)
    p["w2"], p["b2"] = conv_w(10, 10, 5), bias(10)
    p["w3"], p["b3"] = conv_w(10, 10, 3), bias(10)
    p["w4"], p["b4"] = conv_w(10, 40, 3), bias(40)
    p["w5"], p["b5"] = conv_w(40, 40, 3), bias(40)
    p["w6"], p["b6"] = conv_w(40, 80, 10), bias(80)
    p["w7"], p["b7"] = conv_w(80, 80, 1), bias(80)
    p["w8"], p["b8"] = conv_w(80, 80, 1), bias(80)
    # SelfAttentionPooling: nn.Linear(80, 1) -> stored (80, 1), bias (1, 1)
    p["wa"] = (0.1 * jax.random.normal(ks[next(ki)], (80, 1))).astype(jnp.float32)
    p["ba"] = (0.05 * jax.random.normal(ks[next(ki)], (1, 1))).astype(jnp.float32)
    # out_layer: Linear(80,30) -> (80,30); Linear(30,C) -> (30,C)
    p["wl1"] = (0.1 * jax.random.normal(ks[next(ki)], (80, 30))).astype(jnp.float32)
    p["bl1"] = (0.05 * jax.random.normal(ks[next(ki)], (1, 30))).astype(jnp.float32)
    p["wl2"] = (0.1 * jax.random.normal(ks[next(ki)], (30, NUM_CLASSES))
                ).astype(jnp.float32)
    p["bl2"] = (0.05 * jax.random.normal(ks[next(ki)], (1, NUM_CLASSES))
                ).astype(jnp.float32)
    return p


# ------------------------------ pure-JAX reference ----------------------------
def ref_forward(features, att_mask, p):
    x = features.astype(jnp.float32)                      # (N, T, D)

    def conv(x, w, b):
        K = w.shape[0]
        Tout = x.shape[1] - K + 1
        acc = jnp.einsum("ntc,cd->ntd", x[:, 0:Tout, :], w[0])
        for k in range(1, K):
            acc = acc + jnp.einsum("ntc,cd->ntd", x[:, k:k + Tout, :], w[k])
        return acc + b

    def maxpool(x, K):
        Tout = x.shape[1] - K + 1
        m = x[:, 0:Tout, :]
        for k in range(1, K):
            m = jnp.maximum(m, x[:, k:k + Tout, :])
        return m

    bn = 1.0 / jnp.sqrt(1.0 + BN_EPS)
    relu = lambda v: jnp.maximum(v, 0.0)

    x = relu(conv(x, p["w1"], p["b1"]))
    x = relu(conv(x, p["w2"], p["b2"]))
    x = conv(x, p["w3"], p["b3"]); x = maxpool(x, 3); x = relu(x * bn)
    x = relu(conv(x, p["w4"], p["b4"]))
    x = conv(x, p["w5"], p["b5"]); x = maxpool(x, 2); x = relu(x * bn)
    x = relu(conv(x, p["w6"], p["b6"]))
    x = conv(x, p["w7"], p["b7"]); x = maxpool(x, 2); x = relu(x * bn)
    x = conv(x, p["w8"], p["b8"])                          # (N, T_OUT, 80)

    logits = jnp.einsum("ntc,cd->ntd", x, p["wa"])[..., 0] + p["ba"][0, 0]
    logits = logits + att_mask
    att = jax.nn.softmax(logits, axis=-1)[..., None]
    pooled = jnp.sum(x * att, axis=1)                      # (N, 80)

    h = relu(pooled @ p["wl1"] + p["bl1"])
    return h @ p["wl2"] + p["bl2"]


# ----------------------------------- main -------------------------------------
if __name__ == "__main__":
    key = jax.random.PRNGKey(0)
    k_feat, k_mask, k_params = jax.random.split(key, 3)

    features = jax.random.normal(k_feat, (N, T, INPUT_DIM), dtype=jnp.float32)
    # additive attention mask over the post-conv timeline (0 = keep)
    att_mask = jnp.where(
        jax.random.uniform(k_mask, (N, T_OUT)) > 0.8, -1e4, 0.0
    ).astype(jnp.float32)

    params = make_params(k_params)

    out = deepnet_forward(features, att_mask, params)
    out = jax.block_until_ready(out)

    ref = ref_forward(features, att_mask, params)
    assert out.shape == (N, NUM_CLASSES)
    assert jnp.allclose(out, ref, atol=2e-3, rtol=2e-3), (out, ref)

    print("KERNEL_OK")
</pallas_src>

<mosaic_0001>
module attributes {stable_mosaic.version = 11 : i64} {
  func.func @kernel(%arg0: i32, %arg1: memref<80x36xf32, #tpu.memory_space<vmem>>, %arg2: memref<80x1xf32, #tpu.memory_space<vmem>>, %arg3: memref<1008x128xf32, #tpu.memory_space<vmem>>, %arg4: memref<80x128xf32, #tpu.memory_space<vmem>>, %arg5: memref<2x1x128xf32, #tpu.memory_space<vmem>>) attributes {dimension_semantics = [#tpu.dimension_semantics<parallel>], iteration_bounds = array<i64: 1>, scalar_prefetch = 0 : i64, scratch_operands = 0 : i64, tpu.core_type = #tpu.core_type<tc>, window_params = [{transform_indices = @transform_0, window_bounds = array<i64: 80, 36>}, {transform_indices = @transform_1, window_bounds = array<i64: 80, 1>}, {pipeline_mode = #tpu.pipeline_mode<synchronous>, transform_indices = @transform_2, window_bounds = array<i64: 1008, 128>}, {pipeline_mode = #tpu.pipeline_mode<synchronous>, transform_indices = @transform_3, window_bounds = array<i64: 80, 128>}, {transform_indices = @transform_4, window_bounds = array<i64: 2, 1, 128>}]} {
    %c0 = arith.constant 0 : index
    %c0_0 = arith.constant 0 : index
    %0 = vector.load %arg1[%c0, %c0_0] : memref<80x36xf32, #tpu.memory_space<vmem>>, vector<80x36xf32>
    %c0_1 = arith.constant 0 : index
    %c0_2 = arith.constant 0 : index
    %1 = vector.load %arg3[%c0_1, %c0_2] : memref<1008x128xf32, #tpu.memory_space<vmem>>, vector<36x10xf32>
    %cst = arith.constant dense<0.000000e+00> : vector<80x10xf32>
    %2 = tpu.matmul %0, %1, %cst {dimension_numbers = #tpu.dot_dimension_numbers<[1], [0], [0], [1], [0, 0, 1, 1], [], []>} : vector<80x36xf32>, vector<36x10xf32>, vector<80x10xf32> -> vector<80x10xf32>
    %c0_3 = arith.constant 0 : index
    %c0_4 = arith.constant 0 : index
    %3 = vector.load %arg4[%c0_3, %c0_4] : memref<80x128xf32, #tpu.memory_space<vmem>>, vector<1x10xf32>
    %4 = vector.broadcast %3 : vector<1x10xf32> to vector<80x10xf32>
    %5 = arith.addf %2, %4 : vector<80x10xf32>
    %cst_5 = arith.constant 0.000000e+00 : f32
    %6 = vector.broadcast %cst_5 : f32 to vector<80x10xf32>
    %7 = arith.maximumf %5, %6 : vector<80x10xf32>
    %cst_6 = arith.constant 0.000000e+00 : f32
    %8 = vector.broadcast %cst_6 : f32 to vector<16x10xf32>
    %9 = tpu.concatenate %7, %8 in 0 : vector<80x10xf32>, vector<16x10xf32> -> vector<96x10xf32>
    %10 = vector.extract_strided_slice %9 {offsets = [1, 0], sizes = [80, 10], strides = [1, 1]} : vector<96x10xf32> to vector<80x10xf32>
    %11 = vector.extract_strided_slice %9 {offsets = [2, 0], sizes = [80, 10], strides = [1, 1]} : vector<96x10xf32> to vector<80x10xf32>
    %12 = vector.extract_strided_slice %9 {offsets = [3, 0], sizes = [80, 10], strides = [1, 1]} : vector<96x10xf32> to vector<80x10xf32>
    %13 = vector.extract_strided_slice %9 {offsets = [4, 0], sizes = [80, 10], strides = [1, 1]} : vector<96x10xf32> to vector<80x10xf32>
    %c40 = arith.constant 40 : index
    %c0_7 = arith.constant 0 : index
    %14 = vector.load %arg3[%c40, %c0_7] : memref<1008x128xf32, #tpu.memory_space<vmem>>, vector<10x10xf32>
    %cst_8 = arith.constant dense<0.000000e+00> : vector<80x10xf32>
    %15 = tpu.matmul %7, %14, %cst_8 {dimension_numbers = #tpu.dot_dimension_numbers<[1], [0], [0], [1], [0, 0, 1, 1], [], []>} : vector<80x10xf32>, vector<10x10xf32>, vector<80x10xf32> -> vector<80x10xf32>
    %c56 = arith.constant 56 : index
    %c0_9 = arith.constant 0 : index
    %16 = vector.load %arg3[%c56, %c0_9] : memref<1008x128xf32, #tpu.memory_space<vmem>>, vector<10x10xf32>
    %cst_10 = arith.constant dense<0.000000e+00> : vector<80x10xf32>
    %17 = tpu.matmul %10, %16, %cst_10 {dimension_numbers = #tpu.dot_dimension_numbers<[1], [0], [0], [1], [0, 0, 1, 1], [], []>} : vector<80x10xf32>, vector<10x10xf32>, vector<80x10xf32> -> vector<80x10xf32>
    %18 = arith.addf %15, %17 : vector<80x10xf32>
    %c72 = arith.constant 72 : index
    %c0_11 = arith.constant 0 : index
    %19 = vector.load %arg3[%c72, %c0_11] : memref<1008x128xf32, #tpu.memory_space<vmem>>, vector<10x10xf32>
    %cst_12 = arith.constant dense<0.000000e+00> : vector<80x10xf32>
    %20 = tpu.matmul %11, %19, %cst_12 {dimension_numbers = #tpu.dot_dimension_numbers<[1], [0], [0], [1], [0, 0, 1, 1], [], []>} : vector<80x10xf32>, vector<10x10xf32>, vector<80x10xf32> -> vector<80x10xf32>
    %21 = arith.addf %18, %20 : vector<80x10xf32>
    %c88 = arith.constant 88 : index
    %c0_13 = arith.constant 0 : index
    %22 = vector.load %arg3[%c88, %c0_13] : memref<1008x128xf32, #tpu.memory_space<vmem>>, vector<10x10xf32>
    %cst_14 = arith.constant dense<0.000000e+00> : vector<80x10xf32>
    %23 = tpu.matmul %12, %22, %cst_14 {dimension_numbers = #tpu.dot_dimension_numbers<[1], [0], [0], [1], [0, 0, 1, 1], [], []>} : vector<80x10xf32>, vector<10x10xf32>, vector<80x10xf32> -> vector<80x10xf32>
    %24 = arith.addf %21, %23 : vector<80x10xf32>
    %c104 = arith.constant 104 : index
    %c0_15 = arith.constant 0 : index
    %25 = vector.load %arg3[%c104, %c0_15] : memref<1008x128xf32, #tpu.memory_space<vmem>>, vector<10x10xf32>
    %cst_16 = arith.constant dense<0.000000e+00> : vector<80x10xf32>
    %26 = tpu.matmul %13, %25, %cst_16 {dimension_numbers = #tpu.dot_dimension_numbers<[1], [0], [0], [1], [0, 0, 1, 1], [], []>} : vector<80x10xf32>, vector<10x10xf32>, vector<80x10xf32> -> vector<80x10xf32>
    %27 = arith.addf %24, %26 : vector<80x10xf32>
    %c8 = arith.constant 8 : index
    %c0_17 = arith.constant 0 : index
    %28 = vector.load %arg4[%c8, %c0_17] : memref<80x128xf32, #tpu.memory_space<vmem>>, vector<1x10xf32>
    %29 = vector.broadcast %28 : vector<1x10xf32> to vector<80x10xf32>
    %30 = arith.addf %27, %29 : vector<80x10xf32>
    %cst_18 = arith.constant 0.000000e+00 : f32
    %31 = vector.broadcast %cst_18 : f32 to vector<80x10xf32>
    %32 = arith.maximumf %30, %31 : vector<80x10xf32>
    %cst_19 = arith.constant 0.000000e+00 : f32
    %33 = vector.broadcast %cst_19 : f32 to vector<16x10xf32>
    %34 = tpu.concatenate %32, %33 in 0 : vector<80x10xf32>, vector<16x10xf32> -> vector<96x10xf32>
    %35 = vector.extract_strided_slice %34 {offsets = [1, 0], sizes = [80, 10], strides = [1, 1]} : vector<96x10xf32> to vector<80x10xf32>
    %36 = vector.extract_strided_slice %34 {offsets = [2, 0], sizes = [80, 10], strides = [1, 1]} : vector<96x10xf32> to vector<80x10xf32>
    %c120 = arith.constant 120 : index
    %c0_20 = arith.constant 0 : index
    %37 = vector.load %arg3[%c120, %c0_20] : memref<1008x128xf32, #tpu.memory_space<vmem>>, vector<10x10xf32>
    %cst_21 = arith.constant dense<0.000000e+00> : vector<80x10xf32>
    %38 = tpu.matmul %32, %37, %cst_21 {dimension_numbers = #tpu.dot_dimension_numbers<[1], [0], [0], [1], [0, 0, 1, 1], [], []>} : vector<80x10xf32>, vector<10x10xf32>, vector<80x10xf32> -> vector<80x10xf32>
    %c136 = arith.constant 136 : index
    %c0_22 = arith.constant 0 : index
    %39 = vector.load %arg3[%c136, %c0_22] : memref<1008x128xf32, #tpu.memory_space<vmem>>, vector<10x10xf32>
    %cst_23 = arith.constant dense<0.000000e+00> : vector<80x10xf32>
    %40 = tpu.matmul %35, %39, %cst_23 {dimension_numbers = #tpu.dot_dimension_numbers<[1], [0], [0], [1], [0, 0, 1, 1], [], []>} : vector<80x10xf32>, vector<10x10xf32>, vector<80x10xf32> -> vector<80x10xf32>
    %41 = arith.addf %38, %40 : vector<80x10xf32>
    %c152 = arith.constant 152 : index
    %c0_24 = arith.constant 0 : index
    %42 = vector.load %arg3[%c152, %c0_24] : memref<1008x128xf32, #tpu.memory_space<vmem>>, vector<10x10xf32>
    %cst_25 = arith.constant dense<0.000000e+00> : vector<80x10xf32>
    %43 = tpu.matmul %36, %42, %cst_25 {dimension_numbers = #tpu.dot_dimension_numbers<[1], [0], [0], [1], [0, 0, 1, 1], [], []>} : vector<80x10xf32>, vector<10x10xf32>, vector<80x10xf32> -> vector<80x10xf32>
    %44 = arith.addf %41, %43 : vector<80x10xf32>
    %c16 = arith.constant 16 : index
    %c0_26 = arith.constant 0 : index
    %45 = vector.load %arg4[%c16, %c0_26] : memref<80x128xf32, #tpu.memory_space<vmem>>, vector<1x10xf32>
    %46 = vector.broadcast %45 : vector<1x10xf32> to vector<80x10xf32>
    %47 = arith.addf %44, %46 : vector<80x10xf32>
    %cst_27 = arith.constant 0.000000e+00 : f32
    %48 = vector.broadcast %cst_27 : f32 to vector<16x10xf32>
    %49 = tpu.concatenate %47, %48 in 0 : vector<80x10xf32>, vector<16x10xf32> -> vector<96x10xf32>
    %50 = vector.extract_strided_slice %49 {offsets = [1, 0], sizes = [80, 10], strides = [1, 1]} : vector<96x10xf32> to vector<80x10xf32>
    %51 = vector.extract_strided_slice %49 {offsets = [2, 0], sizes = [80, 10], strides = [1, 1]} : vector<96x10xf32> to vector<80x10xf32>
    %52 = arith.maximumf %47, %50 : vector<80x10xf32>
    %53 = arith.maximumf %52, %51 : vector<80x10xf32>
    %cst_28 = arith.constant 0.000000e+00 : f32
    %54 = vector.broadcast %cst_28 : f32 to vector<80x10xf32>
    %55 = arith.maximumf %53, %54 : vector<80x10xf32>
    %cst_29 = arith.constant 0.000000e+00 : f32
    %56 = vector.broadcast %cst_29 : f32 to vector<16x10xf32>
    %57 = tpu.concatenate %55, %56 in 0 : vector<80x10xf32>, vector<16x10xf32> -> vector<96x10xf32>
    %58 = vector.extract_strided_slice %57 {offsets = [1, 0], sizes = [80, 10], strides = [1, 1]} : vector<96x10xf32> to vector<80x10xf32>
    %59 = vector.extract_strided_slice %57 {offsets = [2, 0], sizes = [80, 10], strides = [1, 1]} : vector<96x10xf32> to vector<80x10xf32>
    %c168 = arith.constant 168 : index
    %c0_30 = arith.constant 0 : index
    %60 = vector.load %arg3[%c168, %c0_30] : memref<1008x128xf32, #tpu.memory_space<vmem>>, vector<10x40xf32>
    %cst_31 = arith.constant dense<0.000000e+00> : vector<80x40xf32>
    %61 = tpu.matmul %55, %60, %cst_31 {dimension_numbers = #tpu.dot_dimension_numbers<[1], [0], [0], [1], [0, 0, 1, 1], [], []>} : vector<80x10xf32>, vector<10x40xf32>, vector<80x40xf32> -> vector<80x40xf32>
    %c184 = arith.constant 184 : index
    %c0_32 = arith.constant 0 : index
    %62 = vector.load %arg3[%c184, %c0_32] : memref<1008x128xf32, #tpu.memory_space<vmem>>, vector<10x40xf32>
    %cst_33 = arith.constant dense<0.000000e+00> : vector<80x40xf32>
    %63 = tpu.matmul %58, %62, %cst_33 {dimension_numbers = #tpu.dot_dimension_numbers<[1], [0], [0], [1], [0, 0, 1, 1], [], []>} : vector<80x10xf32>, vector<10x40xf32>, vector<80x40xf32> -> vector<80x40xf32>
    %64 = arith.addf %61, %63 : vector<80x40xf32>
    %c200 = arith.constant 200 : index
    %c0_34 = arith.constant 0 : index
    %65 = vector.load %arg3[%c200, %c0_34] : memref<1008x128xf32, #tpu.memory_space<vmem>>, vector<10x40xf32>
    %cst_35 = arith.constant dense<0.000000e+00> : vector<80x40xf32>
    %66 = tpu.matmul %59, %65, %cst_35 {dimension_numbers = #tpu.dot_dimension_numbers<[1], [0], [0], [1], [0, 0, 1, 1], [], []>} : vector<80x10xf32>, vector<10x40xf32>, vector<80x40xf32> -> vector<80x40xf32>
    %67 = arith.addf %64, %66 : vector<80x40xf32>
    %c24 = arith.constant 24 : index
    %c0_36 = arith.constant 0 : index
    %68 = vector.load %arg4[%c24, %c0_36] : memref<80x128xf32, #tpu.memory_space<vmem>>, vector<1x40xf32>
    %69 = vector.broadcast %68 : vector<1x40xf32> to vector<80x40xf32>
    %70 = arith.addf %67, %69 : vector<80x40xf32>
    %cst_37 = arith.constant 0.000000e+00 : f32
    %71 = vector.broadcast %cst_37 : f32 to vector<80x40xf32>
    %72 = arith.maximumf %70, %71 : vector<80x40xf32>
    %cst_38 = arith.constant 0.000000e+00 : f32
    %73 = vector.broadcast %cst_38 : f32 to vector<16x40xf32>
    %74 = tpu.concatenate %72, %73 in 0 : vector<80x40xf32>, vector<16x40xf32> -> vector<96x40xf32>
    %75 = vector.extract_strided_slice %74 {offsets = [1, 0], sizes = [80, 40], strides = [1, 1]} : vector<96x40xf32> to vector<80x40xf32>
    %76 = vector.extract_strided_slice %74 {offsets = [2, 0], sizes = [80, 40], strides = [1, 1]} : vector<96x40xf32> to vector<80x40xf32>
    %c216 = arith.constant 216 : index
    %c0_39 = arith.constant 0 : index
    %77 = vector.load %arg3[%c216, %c0_39] : memref<1008x128xf32, #tpu.memory_space<vmem>>, vector<40x40xf32>
    %cst_40 = arith.constant dense<0.000000e+00> : vector<80x40xf32>
    %78 = tpu.matmul %72, %77, %cst_40 {dimension_numbers = #tpu.dot_dimension_numbers<[1], [0], [0], [1], [0, 0, 1, 1], [], []>} : vector<80x40xf32>, vector<40x40xf32>, vector<80x40xf32> -> vector<80x40xf32>
    %c256 = arith.constant 256 : index
    %c0_41 = arith.constant 0 : index
    %79 = vector.load %arg3[%c256, %c0_41] : memref<1008x128xf32, #tpu.memory_space<vmem>>, vector<40x40xf32>
    %cst_42 = arith.constant dense<0.000000e+00> : vector<80x40xf32>
    %80 = tpu.matmul %75, %79, %cst_42 {dimension_numbers = #tpu.dot_dimension_numbers<[1], [0], [0], [1], [0, 0, 1, 1], [], []>} : vector<80x40xf32>, vector<40x40xf32>, vector<80x40xf32> -> vector<80x40xf32>
    %81 = arith.addf %78, %80 : vector<80x40xf32>
    %c296 = arith.constant 296 : index
    %c0_43 = arith.constant 0 : index
    %82 = vector.load %arg3[%c296, %c0_43] : memref<1008x128xf32, #tpu.memory_space<vmem>>, vector<40x40xf32>
    %cst_44 = arith.constant dense<0.000000e+00> : vector<80x40xf32>
    %83 = tpu.matmul %76, %82, %cst_44 {dimension_numbers = #tpu.dot_dimension_numbers<[1], [0], [0], [1], [0, 0, 1, 1], [], []>} : vector<80x40xf32>, vector<40x40xf32>, vector<80x40xf32> -> vector<80x40xf32>
    %84 = arith.addf %81, %83 : vector<80x40xf32>
    %c32 = arith.constant 32 : index
    %c0_45 = arith.constant 0 : index
    %85 = vector.load %arg4[%c32, %c0_45] : memref<80x128xf32, #tpu.memory_space<vmem>>, vector<1x40xf32>
    %86 = vector.broadcast %85 : vector<1x40xf32> to vector<80x40xf32>
    %87 = arith.addf %84, %86 : vector<80x40xf32>
    %cst_46 = arith.constant 0.000000e+00 : f32
    %88 = vector.broadcast %cst_46 : f32 to vector<16x40xf32>
    %89 = tpu.concatenate %87, %88 in 0 : vector<80x40xf32>, vector<16x40xf32> -> vector<96x40xf32>
    %90 = vector.extract_strided_slice %89 {offsets = [1, 0], sizes = [80, 40], strides = [1, 1]} : vector<96x40xf32> to vector<80x40xf32>
    %91 = arith.maximumf %87, %90 : vector<80x40xf32>
    %cst_47 = arith.constant 0.000000e+00 : f32
    %92 = vector.broadcast %cst_47 : f32 to vector<80x40xf32>
    %93 = arith.maximumf %91, %92 : vector<80x40xf32>
    %cst_48 = arith.constant 0.000000e+00 : f32
    %94 = vector.broadcast %cst_48 : f32 to vector<16x40xf32>
    %95 = tpu.concatenate %93, %94 in 0 : vector<80x40xf32>, vector<16x40xf32> -> vector<96x40xf32>
    %96 = vector.extract_strided_slice %95 {offsets = [1, 0], sizes = [80, 40], strides = [1, 1]} : vector<96x40xf32> to vector<80x40xf32>
    %97 = vector.extract_strided_slice %95 {offsets = [2, 0], sizes = [80, 40], strides = [1, 1]} : vector<96x40xf32> to vector<80x40xf32>
    %98 = vector.extract_strided_slice %95 {offsets = [3, 0], sizes = [80, 40], strides = [1, 1]} : vector<96x40xf32> to vector<80x40xf32>
    %99 = vector.extract_strided_slice %95 {offsets = [4, 0], sizes = [80, 40], strides = [1, 1]} : vector<96x40xf32> to vector<80x40xf32>
    %100 = vector.extract_strided_slice %95 {offsets = [5, 0], sizes = [80, 40], strides = [1, 1]} : vector<96x40xf32> to vector<80x40xf32>
    %101 = vector.extract_strided_slice %95 {offsets = [6, 0], sizes = [80, 40], strides = [1, 1]} : vector<96x40xf32> to vector<80x40xf32>
    %102 = vector.extract_strided_slice %95 {offsets = [7, 0], sizes = [80, 40], strides = [1, 1]} : vector<96x40xf32> to vector<80x40xf32>
    %103 = vector.extract_strided_slice %95 {offsets = [8, 0], sizes = [80, 40], strides = [1, 1]} : vector<96x40xf32> to vector<80x40xf32>
    %104 = vector.extract_strided_slice %95 {offsets = [9, 0], sizes = [80, 40], strides = [1, 1]} : vector<96x40xf32> to vector<80x40xf32>
    %c336 = arith.constant 336 : index
    %c0_49 = arith.constant 0 : index
    %105 = vector.load %arg3[%c336, %c0_49] : memref<1008x128xf32, #tpu.memory_space<vmem>>, vector<40x80xf32>
    %cst_50 = arith.constant dense<0.000000e+00> : vector<80x80xf32>
    %106 = tpu.matmul %93, %105, %cst_50 {dimension_numbers = #tpu.dot_dimension_numbers<[1], [0], [0], [1], [0, 0, 1, 1], [], []>} : vector<80x40xf32>, vector<40x80xf32>, vector<80x80xf32> -> vector<80x80xf32>
    %c376 = arith.constant 376 : index
    %c0_51 = arith.constant 0 : index
    %107 = vector.load %arg3[%c376, %c0_51] : memref<1008x128xf32, #tpu.memory_space<vmem>>, vector<40x80xf32>
    %cst_52 = arith.constant dense<0.000000e+00> : vector<80x80xf32>
    %108 = tpu.matmul %96, %107, %cst_52 {dimension_numbers = #tpu.dot_dimension_numbers<[1], [0], [0], [1], [0, 0, 1, 1], [], []>} : vector<80x40xf32>, vector<40x80xf32>, vector<80x80xf32> -> vector<80x80xf32>
    %109 = arith.addf %106, %108 : vector<80x80xf32>
    %c416 = arith.constant 416 : index
    %c0_53 = arith.constant 0 : index
    %110 = vector.load %arg3[%c416, %c0_53] : memref<1008x128xf32, #tpu.memory_space<vmem>>, vector<40x80xf32>
    %cst_54 = arith.constant dense<0.000000e+00> : vector<80x80xf32>
    %111 = tpu.matmul %97, %110, %cst_54 {dimension_numbers = #tpu.dot_dimension_numbers<[1], [0], [0], [1], [0, 0, 1, 1], [], []>} : vector<80x40xf32>, vector<40x80xf32>, vector<80x80xf32> -> vector<80x80xf32>
    %112 = arith.addf %109, %111 : vector<80x80xf32>
    %c456 = arith.constant 456 : index
    %c0_55 = arith.constant 0 : index
    %113 = vector.load %arg3[%c456, %c0_55] : memref<1008x128xf32, #tpu.memory_space<vmem>>, vector<40x80xf32>
    %cst_56 = arith.constant dense<0.000000e+00> : vector<80x80xf32>
    %114 = tpu.matmul %98, %113, %cst_56 {dimension_numbers = #tpu.dot_dimension_numbers<[1], [0], [0], [1], [0, 0, 1, 1], [], []>} : vector<80x40xf32>, vector<40x80xf32>, vector<80x80xf32> -> vector<80x80xf32>
    %115 = arith.addf %112, %114 : vector<80x80xf32>
    %c496 = arith.constant 496 : index
    %c0_57 = arith.constant 0 : index
    %116 = vector.load %arg3[%c496, %c0_57] : memref<1008x128xf32, #tpu.memory_space<vmem>>, vector<40x80xf32>
    %cst_58 = arith.constant dense<0.000000e+00> : vector<80x80xf32>
    %117 = tpu.matmul %99, %116, %cst_58 {dimension_numbers = #tpu.dot_dimension_numbers<[1], [0], [0], [1], [0, 0, 1, 1], [], []>} : vector<80x40xf32>, vector<40x80xf32>, vector<80x80xf32> -> vector<80x80xf32>
    %118 = arith.addf %115, %117 : vector<80x80xf32>
    %c536 = arith.constant 536 : index
    %c0_59 = arith.constant 0 : index
    %119 = vector.load %arg3[%c536, %c0_59] : memref<1008x128xf32, #tpu.memory_space<vmem>>, vector<40x80xf32>
    %cst_60 = arith.constant dense<0.000000e+00> : vector<80x80xf32>
    %120 = tpu.matmul %100, %119, %cst_60 {dimension_numbers = #tpu.dot_dimension_numbers<[1], [0], [0], [1], [0, 0, 1, 1], [], []>} : vector<80x40xf32>, vector<40x80xf32>, vector<80x80xf32> -> vector<80x80xf32>
    %121 = arith.addf %118, %120 : vector<80x80xf32>
    %c576 = arith.constant 576 : index
    %c0_61 = arith.constant 0 : index
    %122 = vector.load %arg3[%c576, %c0_61] : memref<1008x128xf32, #tpu.memory_space<vmem>>, vector<40x80xf32>
    %cst_62 = arith.constant dense<0.000000e+00> : vector<80x80xf32>
    %123 = tpu.matmul %101, %122, %cst_62 {dimension_numbers = #tpu.dot_dimension_numbers<[1], [0], [0], [1], [0, 0, 1, 1], [], []>} : vector<80x40xf32>, vector<40x80xf32>, vector<80x80xf32> -> vector<80x80xf32>
    %124 = arith.addf %121, %123 : vector<80x80xf32>
    %c616 = arith.constant 616 : index
    %c0_63 = arith.constant 0 : index
    %125 = vector.load %arg3[%c616, %c0_63] : memref<1008x128xf32, #tpu.memory_space<vmem>>, vector<40x80xf32>
    %cst_64 = arith.constant dense<0.000000e+00> : vector<80x80xf32>
    %126 = tpu.matmul %102, %125, %cst_64 {dimension_numbers = #tpu.dot_dimension_numbers<[1], [0], [0], [1], [0, 0, 1, 1], [], []>} : vector<80x40xf32>, vector<40x80xf32>, vector<80x80xf32> -> vector<80x80xf32>
    %127 = arith.addf %124, %126 : vector<80x80xf32>
    %c656 = arith.constant 656 : index
    %c0_65 = arith.constant 0 : index
    %128 = vector.load %arg3[%c656, %c0_65] : memref<1008x128xf32, #tpu.memory_space<vmem>>, vector<40x80xf32>
    %cst_66 = arith.constant dense<0.000000e+00> : vector<80x80xf32>
    %129 = tpu.matmul %103, %128, %cst_66 {dimension_numbers = #tpu.dot_dimension_numbers<[1], [0], [0], [1], [0, 0, 1, 1], [], []>} : vector<80x40xf32>, vector<40x80xf32>, vector<80x80xf32> -> vector<80x80xf32>
    %130 = arith.addf %127, %129 : vector<80x80xf32>
    %c696 = arith.constant 696 : index
    %c0_67 = arith.constant 0 : index
    %131 = vector.load %arg3[%c696, %c0_67] : memref<1008x128xf32, #tpu.memory_space<vmem>>, vector<40x80xf32>
    %cst_68 = arith.constant dense<0.000000e+00> : vector<80x80xf32>
    %132 = tpu.matmul %104, %131, %cst_68 {dimension_numbers = #tpu.dot_dimension_numbers<[1], [0], [0], [1], [0, 0, 1, 1], [], []>} : vector<80x40xf32>, vector<40x80xf32>, vector<80x80xf32> -> vector<80x80xf32>
    %133 = arith.addf %130, %132 : vector<80x80xf32>
    %c40_69 = arith.constant 40 : index
    %c0_70 = arith.constant 0 : index
    %134 = vector.load %arg4[%c40_69, %c0_70] : memref<80x128xf32, #tpu.memory_space<vmem>>, vector<1x80xf32>
    %135 = vector.broadcast %134 : vector<1x80xf32> to vector<80x80xf32>
    %136 = arith.addf %133, %135 : vector<80x80xf32>
    %cst_71 = arith.constant 0.000000e+00 : f32
    %137 = vector.broadcast %cst_71 : f32 to vector<80x80xf32>
    %138 = arith.maximumf %136, %137 : vector<80x80xf32>
    %c736 = arith.constant 736 : index
    %c0_72 = arith.constant 0 : index
    %139 = vector.load %arg3[%c736, %c0_72] : memref<1008x128xf32, #tpu.memory_space<vmem>>, vector<80x80xf32>
    %cst_73 = arith.constant dense<0.000000e+00> : vector<80x80xf32>
    %140 = tpu.matmul %138, %139, %cst_73 {dimension_numbers = #tpu.dot_dimension_numbers<[1], [0], [0], [1], [0, 0, 1, 1], [], []>} : vector<80x80xf32>, vector<80x80xf32>, vector<80x80xf32> -> vector<80x80xf32>
    %c48 = arith.constant 48 : index
    %c0_74 = arith.constant 0 : index
    %141 = vector.load %arg4[%c48, %c0_74] : memref<80x128xf32, #tpu.memory_space<vmem>>, vector<1x80xf32>
    %142 = vector.broadcast %141 : vector<1x80xf32> to vector<80x80xf32>
    %143 = arith.addf %140, %142 : vector<80x80xf32>
    %cst_75 = arith.constant 0.000000e+00 : f32
    %144 = vector.broadcast %cst_75 : f32 to vector<16x80xf32>
    %145 = tpu.concatenate %143, %144 in 0 : vector<80x80xf32>, vector<16x80xf32> -> vector<96x80xf32>
    %146 = vector.extract_strided_slice %145 {offsets = [1, 0], sizes = [80, 80], strides = [1, 1]} : vector<96x80xf32> to vector<80x80xf32>
    %147 = arith.maximumf %143, %146 : vector<80x80xf32>
    %cst_76 = arith.constant 0.000000e+00 : f32
    %148 = vector.broadcast %cst_76 : f32 to vector<80x80xf32>
    %149 = arith.maximumf %147, %148 : vector<80x80xf32>
    %c816 = arith.constant 816 : index
    %c0_77 = arith.constant 0 : index
    %150 = vector.load %arg3[%c816, %c0_77] : memref<1008x128xf32, #tpu.memory_space<vmem>>, vector<80x81xf32>
    %cst_78 = arith.constant dense<0.000000e+00> : vector<80x81xf32>
    %151 = tpu.matmul %149, %150, %cst_78 {dimension_numbers = #tpu.dot_dimension_numbers<[1], [0], [0], [1], [0, 0, 1, 1], [], []>} : vector<80x80xf32>, vector<80x81xf32>, vector<80x81xf32> -> vector<80x81xf32>
    %c56_79 = arith.constant 56 : index
    %c0_80 = arith.constant 0 : index
    %152 = vector.load %arg4[%c56_79, %c0_80] : memref<80x128xf32, #tpu.memory_space<vmem>>, vector<1x81xf32>
    %153 = vector.broadcast %152 : vector<1x81xf32> to vector<80x81xf32>
    %154 = arith.addf %151, %153 : vector<80x81xf32>
    %155 = vector.extract_strided_slice %154 {offsets = [0, 0], sizes = [40, 81], strides = [1, 1]} : vector<80x81xf32> to vector<40x81xf32>
    %156 = vector.extract_strided_slice %155 {offsets = [0, 80], sizes = [40, 1], strides = [1, 1]} : vector<40x81xf32> to vector<40x1xf32>
    %c0_81 = arith.constant 0 : index
    %c0_82 = arith.constant 0 : index
    %157 = vector.load %arg2[%c0_81, %c0_82] : memref<80x1xf32, #tpu.memory_space<vmem>>, vector<40x1xf32>
    %158 = arith.addf %156, %157 : vector<40x1xf32>
    %cst_83 = arith.constant dense<0xFF800000> : vector<1xf32>
    %159 = vector.multi_reduction <maximumf>, %158, %cst_83 [0] : vector<40x1xf32> to vector<1xf32>
    %160 = vector.shape_cast %159 : vector<1xf32> to vector<1x1xf32>
    %161 = vector.broadcast %160 : vector<1x1xf32> to vector<40x1xf32>
    %162 = arith.subf %158, %161 : vector<40x1xf32>
    %163 = math.exp %162 : vector<40x1xf32>
    %cst_84 = arith.constant dense<0.000000e+00> : vector<1xf32>
    %164 = vector.multi_reduction <add>, %163, %cst_84 [0] : vector<40x1xf32> to vector<1xf32>
    %165 = vector.shape_cast %164 : vector<1xf32> to vector<1x1xf32>
    %166 = tpu.reciprocal %165 {approx = true} : vector<1x1xf32> -> vector<1x1xf32>
    %167 = vector.broadcast %166 : vector<1x1xf32> to vector<40x1xf32>
    %168 = arith.mulf %163, %167 : vector<40x1xf32>
    %169 = vector.extract_strided_slice %155 {offsets = [0, 0], sizes = [40, 80], strides = [1, 1]} : vector<40x81xf32> to vector<40x80xf32>
    %170 = vector.broadcast %168 : vector<40x1xf32> to vector<40x80xf32>
    %171 = arith.mulf %169, %170 : vector<40x80xf32>
    %cst_85 = arith.constant dense<0.000000e+00> : vector<80xf32>
    %172 = vector.multi_reduction <add>, %171, %cst_85 [0] : vector<40x80xf32> to vector<80xf32>
    %173 = vector.shape_cast %172 : vector<80xf32> to vector<1x80xf32>
    %174 = vector.extract_strided_slice %154 {offsets = [40, 0], sizes = [40, 81], strides = [1, 1]} : vector<80x81xf32> to vector<40x81xf32>
    %175 = vector.extract_strided_slice %174 {offsets = [0, 80], sizes = [40, 1], strides = [1, 1]} : vector<40x81xf32> to vector<40x1xf32>
    %c40_86 = arith.constant 40 : index
    %c0_87 = arith.constant 0 : index
    %176 = vector.load %arg2[%c40_86, %c0_87] : memref<80x1xf32, #tpu.memory_space<vmem>>, vector<40x1xf32>
    %177 = arith.addf %175, %176 : vector<40x1xf32>
    %cst_88 = arith.constant dense<0xFF800000> : vector<1xf32>
    %178 = vector.multi_reduction <maximumf>, %177, %cst_88 [0] : vector<40x1xf32> to vector<1xf32>
    %179 = vector.shape_cast %178 : vector<1xf32> to vector<1x1xf32>
    %180 = vector.broadcast %179 : vector<1x1xf32> to vector<40x1xf32>
    %181 = arith.subf %177, %180 : vector<40x1xf32>
    %182 = math.exp %181 : vector<40x1xf32>
    %cst_89 = arith.constant dense<0.000000e+00> : vector<1xf32>
    %183 = vector.multi_reduction <add>, %182, %cst_89 [0] : vector<40x1xf32> to vector<1xf32>
    %184 = vector.shape_cast %183 : vector<1xf32> to vector<1x1xf32>
    %185 = tpu.reciprocal %184 {approx = true} : vector<1x1xf32> -> vector<1x1xf32>
    %186 = vector.broadcast %185 : vector<1x1xf32> to vector<40x1xf32>
    %187 = arith.mulf %182, %186 : vector<40x1xf32>
    %188 = vector.extract_strided_slice %174 {offsets = [0, 0], sizes = [40, 80], strides = [1, 1]} : vector<40x81xf32> to vector<40x80xf32>
    %189 = vector.broadcast %187 : vector<40x1xf32> to vector<40x80xf32>
    %190 = arith.mulf %188, %189 : vector<40x80xf32>
    %cst_90 = arith.constant dense<0.000000e+00> : vector<80xf32>
    %191 = vector.multi_reduction <add>, %190, %cst_90 [0] : vector<40x80xf32> to vector<80xf32>
    %192 = vector.shape_cast %191 : vector<80xf32> to vector<1x80xf32>
    %193 = tpu.concatenate %173, %192 in 0 : vector<1x80xf32>, vector<1x80xf32> -> vector<2x80xf32>
    %c896 = arith.constant 896 : index
    %c0_91 = arith.constant 0 : index
    %194 = vector.load %arg3[%c896, %c0_91] : memref<1008x128xf32, #tpu.memory_space<vmem>>, vector<80x30xf32>
    %cst_92 = arith.constant dense<0.000000e+00> : vector<2x30xf32>
    %195 = tpu.matmul %193, %194, %cst_92 {dimension_numbers = #tpu.dot_dimension_numbers<[1], [0], [0], [1], [0, 0, 1, 1], [], []>} : vector<2x80xf32>, vector<80x30xf32>, vector<2x30xf32> -> vector<2x30xf32>
    %c64 = arith.constant 64 : index
    %c0_93 = arith.constant 0 : index
    %196 = vector.load %arg4[%c64, %c0_93] : memref<80x128xf32, #tpu.memory_space<vmem>>, vector<1x30xf32>
    %197 = vector.broadcast %196 : vector<1x30xf32> to vector<2x30xf32>
    %198 = arith.addf %195, %197 : vector<2x30xf32>
    %cst_94 = arith.constant 0.000000e+00 : f32
    %199 = vector.broadcast %cst_94 : f32 to vector<2x30xf32>
    %200 = arith.maximumf %198, %199 : vector<2x30xf32>
    %c976 = arith.constant 976 : index
    %c0_95 = arith.constant 0 : index
    %201 = vector.load %arg3[%c976, %c0_95] : memref<1008x128xf32, #tpu.memory_space<vmem>>, vector<30x128xf32>
    %cst_96 = arith.constant dense<0.000000e+00> : vector<2x128xf32>
    %202 = tpu.matmul %200, %201, %cst_96 {dimension_numbers = #tpu.dot_dimension_numbers<[1], [0], [0], [1], [0, 0, 1, 1], [], []>} : vector<2x30xf32>, vector<30x128xf32>, vector<2x128xf32> -> vector<2x128xf32>
    %c72_97 = arith.constant 72 : index
    %c0_98 = arith.constant 0 : index
    %203 = vector.load %arg4[%c72_97, %c0_98] : memref<80x128xf32, #tpu.memory_space<vmem>>, vector<1x128xf32>
    %204 = vector.broadcast %203 : vector<1x128xf32> to vector<2x128xf32>
    %205 = arith.addf %202, %204 : vector<2x128xf32>
    %206 = vector.shape_cast %205 : vector<2x128xf32> to vector<2x1x128xf32>
    %c0_99 = arith.constant 0 : index
    %c0_100 = arith.constant 0 : index
    %c0_101 = arith.constant 0 : index
    %207 = vector.load %arg5[%c0_99, %c0_100, %c0_101] : memref<2x1x128xf32, #tpu.memory_space<vmem>>, vector<2x1x128xf32>
    tpu.vector_store %arg5[%c0_99, %c0_100, %c0_101], %206 {strides = array<i32>} : memref<2x1x128xf32, #tpu.memory_space<vmem>>, vector<2x1x128xf32>,
    return
  }
  func.func @transform_0(%arg0: i32) -> (i32, i32) {
    %c0_i32 = arith.constant 0 : i32
    %c0_i32_0 = arith.constant 0 : i32
    return %arg0, %c0_i32 : i32, i32
  }
  func.func @transform_1(%arg0: i32) -> (i32, i32) {
    %c0_i32 = arith.constant 0 : i32
    %c0_i32_0 = arith.constant 0 : i32
    return %arg0, %c0_i32 : i32, i32
  }
  func.func @transform_2(%arg0: i32) -> (i32, i32) {
    %c0_i32 = arith.constant 0 : i32
    %c0_i32_0 = arith.constant 0 : i32
    %c0_i32_1 = arith.constant 0 : i32
    return %c0_i32, %c0_i32_0 : i32, i32
  }
  func.func @transform_3(%arg0: i32) -> (i32, i32) {
    %c0_i32 = arith.constant 0 : i32
    %c0_i32_0 = arith.constant 0 : i32
    %c0_i32_1 = arith.constant 0 : i32
    return %c0_i32, %c0_i32_0 : i32, i32
  }
  func.func @transform_4(%arg0: i32) -> (i32, i32, i32) {
    %c0_i32 = arith.constant 0 : i32
    %c0_i32_0 = arith.constant 0 : i32
    %c0_i32_1 = arith.constant 0 : i32
    return %arg0, %c0_i32, %c0_i32_0 : i32, i32, i32
  }
}

</mosaic_0001>

<bundles_post_ra>
// kernel: tpu_custom_call.1
= control target key start
LH: loop header
LB: loop body
LE: loop exit
PB: predicated region body
PF: predicated region fallthrough
CT: control target
= control target key end

     0   :  { %9 = vsyncpa [#allocation3], 0  ;;  %s8339_s0 = inlined_call_operand.vmem [shape: f32[80,36], index: 0, kind: input, shape index: {}]   ;;  %s8340_s1 = inlined_call_operand.vmem [shape: f32[80,1], index: 1, kind: input, shape index: {}]   ;;  %s8341_s2 = inlined_call_operand.hbm [shape: f32[1008,128], index: 2, kind: input, shape index: {}]   ;;  %s8342_s3 = inlined_call_operand.vmem [shape: f32[80,128], index: 3, kind: input, shape index: {}]   ;;  %s8343_s4 = inlined_call_operand.hbm [shape: f32[2,1,128], index: 4, kind: output, shape index: {}]  }
   0x1   :  { %10 = vsyncpa [#allocation4], 0  ;;  %s7076_s15 = smov [#allocation2]   ;;  %s7028_s19 = scalar_lea.hbm %s8341_s2, 16128 }
   0x2   :  { %s20_s16 = sshll.u32 %s7076_s15, 4  ;;  %p7029_p0 = scmp.ne.s32.totalorder %s8341_s2, %s7028_s19  ;;  %s21_s16 = int_to_ptr.vmem [resolvable:$true] %s20_s16 }
   0x3   :  { %p7032_p1 = scmp.lt.u32.totalorder %s7028_s19, %s8341_s2 }
   0x5   :  { %p7034_p2 = pnand %p7032_p1, %p7029_p0 }
   0x7   :  { %7037 = shalt.err (!%p7034_p2)
}
   0x8   :  { %s7038_s24 = scalar_lea.vmem %s21_s16, 16128  ;;  %p7043_p4 = scmp.lt.s32.totalorder %s21_s16, %s21_s16 }
   0x9   :  { %p7039_p3 = scmp.ne.s32.totalorder %s21_s16, %s7038_s24  ;;  %p7044_p5 = scmp.lt.s32.totalorder %s7038_s24, %s7038_s24 }
   0xb   :  { %p7045_p6 = por %p7044_p5, %p7043_p4 }
   0xd   :  { %p7046_p7 = pnand %p7045_p6, %p7039_p3 }
   0xf   :  { %7049 = shalt.err (!%p7046_p7)
}
  0x10   :  { %s7077_s25 = smov 128   ;;  %s7078_s26 = smov 8  }
  0x11   :  { %26 = dma.hbm_to_vmem [thread:$0]  %s8341_s2, 16128, %s21_s16, [#allocation3], %s7077_s25, %s7077_s25, %s7078_s26  }
  0x12   :  { %7072 = dma.done.wait [#allocation3], 16128  }
  0x13   :  { %7073 = vsyncadd [#allocation3], 4294951168  ;;  %vm52_vm0 = vcmask 293888   ;;  %v42_v0 = vld [vmem:[#allocation2] sm:$0xff]  ;;  %v43_v1 = vld [vmem:[#allocation2 + $0x8] sm:$0xff]  ;;  %vm83_vm1 = vcmask 1043456  }
  0x14   :  { %v44_v2 = vld [vmem:[#allocation2 + $0x10] sm:$0xff]  ;;  %v6559_v3 = vpack.c.bf16 %v43_v1, %v42_v0  ;;  %v45_v4 = vld [vmem:[#allocation2 + $0x18] sm:$0xff]  ;;  %v32_v5 = vld [vmem:[%s8339_s0] sm:$0xff]  ;;  %vm270_vm2 = vcmask 1041408   ;;  %vm7079_vm3 = vmmov 1   ;;  %vm227_vm5 = vcmask 1046528  }
  0x15   :  { %v6563_v6 = vpack.c.bf16 %v45_v4, %v44_v2  ;;  %5906 = vmatprep.mubr.msk.f32.mxu1 %vm52_vm0, %v32_v5  ;;  %v46_v7 = vld [vmem:[#allocation2 + $0x20] sm:$0xf]  ;;  %v214_v8 = vld [vmem:[#allocation2 + $0x38] sm:$0xff]  ;;  %v33_v11 = vld [vmem:[%s8339_s0 + $0x8] sm:$0xff]  ;;  %vm249_vm6 = vcmask 80896   ;;  %vm529_vm7 = vcmask 1045504  }
  0x16   :  { %6560 = vmatprep.subr.bf16.mxu1 %v6559_v3  ;;  %v215_v9 = vld [vmem:[#allocation2 + $0x40] sm:$0x3]  ;;  %vm7136_vm4 = vmpackc.low %vm270_vm2, %vm7079_vm3  ;;  %v34_v13 = vld [vmem:[%s8339_s0 + $0x10] sm:$0xff]  ;;  %vm701_vm8 = vcmask 1044480   ;;  %vm2207_vm9 = vcmask 326656   ;;  %vm3548_vm10 = vcmask 1042432  }
  0x17   :  { %6562 = vmatpush3.bf16.msra.mxu1 %v6559_v3  ;;  %v6567_v10 = vpack.c.bf16 %v215_v9, %v214_v8  ;;  %v35_v14 = vld [vmem:[%s8339_s0 + $0x18] sm:$0xff]  ;;  %v36_v15 = vld [vmem:[%s8339_s0 + $0x20] sm:$0xff]  ;;  %v37_v16 = vld [vmem:[%s8339_s0 + $0x28] sm:$0xff]  ;;  %vm3891_vm11 = vcmask 1040384   ;;  %vm4363_vm12 = vcmask 654336   ;;  %s7081_s10 = smov 80  }
  0x18   :  { %6564 = vmatprep.subr.bf16.mxu1 %v6563_v6  ;;  %v38_v17 = vld [vmem:[%s8339_s0 + $0x30] sm:$0xff]  ;;  %v39_v18 = vld [vmem:[%s8339_s0 + $0x38] sm:$0xff]  ;;  %v40_v19 = vld [vmem:[%s8339_s0 + $0x40] sm:$0xff]  ;;  %vm4759_vm13 = vcmask 663168   ;;  %vm7084_vm14 = vmmov 0   ;;  %s7086_s6 = smov [#allocation5]  }
  0x19   :  { %v41_v20 = vld [vmem:[%s8339_s0 + $0x48] sm:$0xff]  ;;  %v213_v22 = vld [vmem:[#allocation2 + $0x30] sm:$0x3]  ;;  %v7183_v24 = vld [vmem:[%s8342_s3] ss:$0 sm:$0xff]  ;;  %s5190_s7 = sshll.u32 %s7086_s6, 4  ;;  %s5191_s7 = int_to_ptr.vmem [resolvable:$true] %s5190_s7 }
  0x1a   :  { %v212_v21 = vld [vmem:[#allocation2 + $0x28] sm:$0xff]  ;;  %v528_v33 = vld [vmem:[#allocation2 + $0x50] sm:$0x3]  ;;  %vm6797_vm15 = vmpackc.low %vm529_vm7, %vm7079_vm3  ;;  %s7050_s8 = scalar_lea.vmem %s5191_s7, 32  ;;  %p7055_p9 = scmp.lt.s32.totalorder %s5191_s7, %s5191_s7 }
  0x1b   :  { %6566 = vmatpush3.bf16.msra.mxu1 %v6563_v6  ;;  %v6573_v23 = vpack.c.bf16 %v213_v22, %v212_v21  ;;  %v527_v32 = vld [vmem:[#allocation2 + $0x48] sm:$0xff]  ;;  %p7051_p8 = scmp.ne.s32.totalorder %s5191_s7, %s7050_s8  ;;  %p7056_p10 = scmp.lt.s32.totalorder %s7050_s8, %s7050_s8 }
  0x1c   :  { %5904 = vmatprep.subr.msk.mxu1 %vm83_vm1, %v46_v7  ;;  %v7201_v44 = vpack.c.bf16 %v528_v33, %v527_v32 }
  0x1d   :  { %p7057_p11 = por %p7056_p10, %p7055_p9 }
  0x1f   :  { %5905 = vmatpush3.msk.msra.mxu1 %vm83_vm1, %v46_v7  ;;  %p7058_p12 = pnand %p7057_p11, %p7051_p8 }
  0x20   :  { %5907 = vmatmul.mubr.msk.f32.vlgmr.msra.gmra.mrb[0].mxu1 %vm52_vm0, %v33_v11  ;;  %6569 = vmatprep.subr.msk.bf16.mxu1 %vm7136_vm4, %v6567_v10 }
  0x21   :  { %5909 = vmatprep.mubr.msk.f32.mxu1 %vm52_vm0, %v34_v13  ;;  %6572 = vmatpush3.bf16.msk.msra.mxu1 %vm7136_vm4, %v6567_v10 }
  0x22   :  { %6575 = vmatprep.subr.msk.bf16.mxu1 %vm7136_vm4, %v6573_v23 }
  0x24   :  { %5910 = vmatmul.mubr.msk.f32.gmra.mrb[2].mxu1 %vm52_vm0, %v35_v14 }
  0x25   :  { %5912 = vmatprep.mubr.msk.f32.mxu1 %vm52_vm0, %v36_v15 }
  0x28   :  { %5913 = vmatmul.mubr.msk.f32.gmra.mrb[4].mxu1 %vm52_vm0, %v37_v16 }
  0x29   :  { %5915 = vmatprep.mubr.msk.f32.mxu1 %vm52_vm0, %v38_v17 }
  0x2c   :  { %5916 = vmatmul.mubr.msk.f32.gmra.mrb[6].mxu1 %vm52_vm0, %v39_v18 }
  0x2d   :  { %5918 = vmatprep.mubr.msk.f32.mxu1 %vm52_vm0, %v40_v19 }
  0x30   :  { %5919 = vmatmul.mubr.msk.f32.gmra.mrb[8].mxu1 %vm52_vm0, %v41_v20  ;;  %vm5081_vm0 = vcmask 244736  }
  0xf3   :  { %v5908_v25 = vpop.f32.mrb[0].mxu1 }
  0xf4   :  { %v159_v26 = vadd.f32 %v5908_v25, %v7183_v24  ;;  %v153_v27 = vpop.f32.mrb[1].mxu1 }
  0xf5   :  { %v154_v28 = vadd.f32 %v7183_v24, %v153_v27 }
  0xf6   :  { %v7187_v29 = vmax.f32 %v159_v26, 0.0 }
  0xf7   :  { %v7189_v30 = vmax.f32 %v154_v28, 0.0  ;;  %v5911_v31 = vpop.f32.mrb[2].mxu1 }
  0xf8   :  { %v169_v34 = vadd.f32 %v5911_v31, %v7183_v24  ;;  %v163_v35 = vpop.f32.mrb[3].mxu1  ;;  %v229_v36 = vrot.slane %v7187_v29, 1  ;;  %v531_v37 = vrot.slane %v7187_v29, 2  ;;  %v703_v38 = vrot.slane %v7187_v29, 3 }
  0xf9   :  { %v164_v39 = vadd.f32 %v7183_v24, %v163_v35  ;;  %v228_v40 = vrot.slane %v7189_v30, 1  ;;  %v530_v41 = vrot.slane %v7189_v30, 2  ;;  %v702_v42 = vrot.slane %v7189_v30, 3 }
  0xfa   :  { %v7199_v43 = vmax.f32 %v169_v34, 0.0  ;;  %v873_v45 = vrot.slane %v7189_v30, 4  ;;  %v874_v46 = vrot.slane %v7187_v29, 4 }
  0xfb   :  { %v7205_v47 = vmax.f32 %v164_v39, 0.0  ;;  %v5914_v48 = vpop.f32.mrb[4].mxu1  ;;  %v230_v49 = vsel %vm227_vm5, %v228_v40, %v229_v36  ;;  %v7209_v50 = vsel %vm529_vm7, %v530_v41, %v531_v37  ;;  %v7212_v51 = vsel %vm701_vm8, %v702_v42, %v703_v38 }
  0xfc   :  { %v179_v52 = vadd.f32 %v5914_v48, %v7183_v24  ;;  %v173_v53 = vpop.f32.mrb[5].mxu1  ;;  %5925 = vmatprep.mubr.msk.f32.mxu1 %vm249_vm6, %v230_v49  ;;  %v233_v54 = vrot.slane %v7199_v43, 1  ;;  %v535_v55 = vrot.slane %v7199_v43, 2  ;;  %v707_v56 = vrot.slane %v7199_v43, 3 }
  0xfd   :  { %v174_v57 = vadd.f32 %v7183_v24, %v173_v53  ;;  %v231_v58 = vrot.slane %v7205_v47, 1  ;;  %v533_v59 = vrot.slane %v7205_v47, 2  ;;  %v705_v60 = vrot.slane %v7205_v47, 3 }
  0xfe   :  { %v7223_v61 = vmax.f32 %v179_v52, 0.0  ;;  %v7228_v62 = vsel %vm83_vm1, %v873_v45, %v874_v46  ;;  %v876_v63 = vrot.slane %v7205_v47, 4  ;;  %v878_v0 = vrot.slane %v7199_v43, 4 }
  0xff   :  { %v7232_v1 = vmax.f32 %v174_v57, 0.0  ;;  %v5917_v2 = vpop.f32.mrb[6].mxu1  ;;  %v232_v3 = vsel %vm227_vm5, %v229_v36, %v231_v58  ;;  %v234_v4 = vsel %vm227_vm5, %v231_v58, %v233_v54  ;;  %v7237_v5 = vsel %vm529_vm7, %v531_v37, %v533_v59 }
 0x100   :  { %v189_v6 = vadd.f32 %v5917_v2, %v7183_v24  ;;  %v183_v7 = vpop.f32.mrb[7].mxu1  ;;  %5926 = vmatmul.mubr.msk.f32.vlgmr.msra.gmra.mrb[10].mxu1 %vm249_vm6, %v232_v3  ;;  %v237_v8 = vrot.slane %v7223_v61, 1  ;;  %v7243_v9 = vsel %vm529_vm7, %v533_v59, %v535_v55  ;;  %v539_v10 = vrot.slane %v7223_v61, 2 }
 0x101   :  { %v184_v11 = vadd.f32 %v7183_v24, %v183_v7  ;;  %6578 = vmatpush3.bf16.msk.msra.mxu1 %vm7136_vm4, %v6573_v23  ;;  %5928 = vmatprep.mubr.msk.f32.mxu1 %vm249_vm6, %v234_v4  ;;  %v235_v13 = vrot.slane %v7232_v1, 1  ;;  %v537_v14 = vrot.slane %v7232_v1, 2  ;;  %v7253_v15 = vsel %vm701_vm8, %v703_v38, %v705_v60 }
 0x102   :  { %v7255_v16 = vmax.f32 %v189_v6, 0.0  ;;  %6581 = vmatprep.subr.msk.bf16.mxu1 %vm7136_vm4, %v7201_v44  ;;  %v7261_v17 = vsel %vm701_vm8, %v705_v60, %v707_v56  ;;  %v709_v18 = vrot.slane %v7232_v1, 3  ;;  %v711_v19 = vrot.slane %v7223_v61, 3 }
 0x103   :  { %v7265_v20 = vmax.f32 %v184_v11, 0.0  ;;  %v5920_v21 = vpop.f32.mrb[8].mxu1  ;;  %v236_v22 = vsel %vm227_vm5, %v233_v54, %v235_v13  ;;  %v238_v23 = vsel %vm227_vm5, %v235_v13, %v237_v8  ;;  %v7270_v25 = vsel %vm529_vm7, %v535_v55, %v537_v14 }
 0x104   :  { %v199_v26 = vadd.f32 %v5920_v21, %v7183_v24  ;;  %v193_v27 = vpop.f32.mrb[9].mxu1  ;;  %5929 = vmatmul.mubr.msk.f32.gmra.mrb[12].mxu1 %vm249_vm6, %v236_v22  ;;  %v241_v28 = vrot.slane %v7255_v16, 1  ;;  %v7276_v31 = vsel %vm529_vm7, %v537_v14, %v539_v10  ;;  %v543_v32 = vrot.slane %v7255_v16, 2 }
 0x105   :  { %v194_v33 = vadd.f32 %v7183_v24, %v193_v27  ;;  %5931 = vmatprep.mubr.msk.f32.mxu1 %vm249_vm6, %v238_v23  ;;  %v239_v34 = vrot.slane %v7265_v20, 1  ;;  %v541_v35 = vrot.slane %v7265_v20, 2  ;;  %v7284_v36 = vsel %vm701_vm8, %v707_v56, %v709_v18  ;;  %v699_v23 = vld [vmem:[#allocation2 + $0x58] sm:$0xff] }
 0x106   :  { %v7286_v37 = vmax.f32 %v199_v26, 0.0  ;;  %v7289_v38 = vsel %vm701_vm8, %v709_v18, %v711_v19  ;;  %v713_v39 = vrot.slane %v7265_v20, 3  ;;  %v715_v40 = vrot.slane %v7255_v16, 3  ;;  %v700_v26 = vld [vmem:[#allocation2 + $0x60] sm:$0x3] }
 0x107   :  { %v210_v41 = vmax.f32 %v194_v33, 0.0  ;;  %v240_v24 = vsel %vm227_vm5, %v237_v8, %v239_v34  ;;  %v242_v42 = vsel %vm227_vm5, %v239_v34, %v241_v28  ;;  %v7296_v45 = vsel %vm529_vm7, %v539_v10, %v541_v35 }
 0x108   :  { %5932 = vmatmul.mubr.msk.f32.gmra.mrb[14].mxu1 %vm249_vm6, %v240_v24  ;;  %v245_v48 = vrot.slane %v7286_v37, 1  ;;  %v544_v49 = vsel %vm529_vm7, %v541_v35, %v543_v32  ;;  %v547_v52 = vrot.slane %v7286_v37, 2  ;;  %v7303_v53 = vsel %vm701_vm8, %v711_v19, %v713_v39 }
 0x109   :  { %5934 = vmatprep.mubr.msk.f32.mxu1 %vm249_vm6, %v242_v42  ;;  %v243_v54 = vrot.slane %v210_v41, 1  ;;  %v545_v55 = vrot.slane %v210_v41, 2  ;;  %v7307_v56 = vsel %vm701_vm8, %v713_v39, %v715_v40  ;;  %v717_v57 = vrot.slane %v210_v41, 3 }
 0x10a   :  { %v7080_v58 = vmov 0.0   ;;  %v719_v60 = vrot.slane %v7286_v37, 3  ;;  %v7318_v2 = vsel %vm83_vm1, %v874_v46, %v876_v63  ;;  %v7340_v10 = vsel %vm83_vm1, %v876_v63, %v878_v0 }
 0x10b   :  { %v7310_v59 = vrot.slane %v7080_v58, 1  ;;  %v244_v3 = vsel %vm227_vm5, %v241_v28, %v243_v54  ;;  %v246_v4 = vsel %vm227_vm5, %v243_v54, %v245_v48  ;;  %v546_v6 = vsel %vm529_vm7, %v543_v32, %v545_v55 }
 0x10c   :  { %v548_v7 = vsel %vm529_vm7, %v545_v55, %v547_v52  ;;  %5935 = vmatmul.mubr.msk.f32.gmra.mrb[16].mxu1 %vm249_vm6, %v244_v3  ;;  %v7328_v8 = vsel %vm701_vm8, %v715_v40, %v717_v57  ;;  %v7333_v46 = vsel %vm701_vm8, %v717_v57, %v719_v60  ;;  %v880_v11 = vrot.slane %v7232_v1, 4 }
 0x10d   :  { %5937 = vmatprep.mubr.msk.f32.mxu1 %vm249_vm6, %v246_v4  ;;  %v882_v13 = vrot.slane %v7223_v61, 4  ;;  %v884_v14 = vrot.slane %v7265_v20, 4  ;;  %v886_v18 = vrot.slane %v7255_v16, 4  ;;  %v248_v19 = vsel %vm227_vm5, %v245_v48, %v7310_v59 }
 0x10e   :  { %v888_v21 = vrot.slane %v210_v41, 4  ;;  %v890_v22 = vrot.slane %v7286_v37, 4  ;;  %v881_v63 = vsel %vm83_vm1, %v878_v0, %v880_v11  ;;  %v6585_v35 = vpack.c.bf16 %v700_v26, %v699_v23 }
 0x10f   :  { %v883_v27 = vsel %vm83_vm1, %v880_v11, %v882_v13  ;;  %v885_v28 = vsel %vm83_vm1, %v882_v13, %v884_v14  ;;  %v887_v32 = vsel %vm83_vm1, %v884_v14, %v886_v18 }
 0x110   :  { %5938 = vmatmul.mubr.msk.f32.gmra.mrb[18].mxu1 %vm249_vm6, %v248_v19  ;;  %v889_v33 = vsel %vm83_vm1, %v886_v18, %v888_v21  ;;  %v891_v34 = vsel %vm83_vm1, %v888_v21, %v890_v22 }
 0x111   :  { %5944 = vmatprep.mubr.msk.f32.mxu1 %vm249_vm6, %v7189_v30  ;;  %v872_v30 = vld [vmem:[#allocation2 + $0x70] sm:$0x3] }
 0x114   :  { %5945 = vmatmul.mubr.msk.f32.vlgmr.msra.gmra.mrb[10].mxu1 %vm249_vm6, %v7187_v29  ;;  %v871_v29 = vld [vmem:[#allocation2 + $0x68] sm:$0xff] }
 0x115   :  { %6584 = vmatpush3.bf16.msk.msra.mxu1 %vm7136_vm4, %v7201_v44  ;;  %5947 = vmatprep.mubr.msk.f32.mxu1 %vm249_vm6, %v7205_v47  ;;  %v7403_v44 = vrot.slane %v7080_v58, 2 }
 0x116   :  { %6587 = vmatprep.subr.msk.bf16.mxu1 %vm7136_vm4, %v6585_v35 }
 0x117   :  { %v550_v47 = vsel %vm529_vm7, %v547_v52, %v7403_v44 }
 0x118   :  { %5948 = vmatmul.mubr.msk.f32.gmra.mrb[12].mxu1 %vm249_vm6, %v7199_v43  ;;  %v6591_v43 = vpack.c.bf16 %v872_v30, %v871_v29 }
 0x119   :  { %5950 = vmatprep.mubr.msk.f32.mxu1 %vm249_vm6, %v7232_v1 }
 0x11c   :  { %5951 = vmatmul.mubr.msk.f32.gmra.mrb[14].mxu1 %vm249_vm6, %v7223_v61  ;;  %v1070_v61 = vld [vmem:[#allocation2 + $0x90] sm:$0x3] }
 0x11d   :  { %5953 = vmatprep.mubr.msk.f32.mxu1 %vm249_vm6, %v7265_v20  ;;  %v1068_v20 = vld [vmem:[#allocation2 + $0x80] sm:$0x3] }
 0x120   :  { %5954 = vmatmul.mubr.msk.f32.gmra.mrb[16].mxu1 %vm249_vm6, %v7255_v16 }
 0x121   :  { %5956 = vmatprep.mubr.msk.f32.mxu1 %vm249_vm6, %v210_v41 }
 0x124   :  { %5957 = vmatmul.mubr.msk.f32.gmra.mrb[18].mxu1 %vm249_vm6, %v7286_v37 }
 0x125   :  { %5963 = vmatprep.mubr.msk.f32.mxu1 %vm249_vm6, %v7209_v50  ;;  %v1069_v50 = vld [vmem:[#allocation2 + $0x88] sm:$0xff] }
 0x126   :  { %v6597_v0 = vpack.c.bf16 %v1070_v61, %v1069_v50 }
 0x128   :  { %5964 = vmatmul.mubr.msk.f32.vlgmr.msra.gmra.mrb[10].mxu1 %vm249_vm6, %v7237_v5  ;;  %v7455_v5 = vrot.slane %v7080_v58, 4 }
 0x129   :  { %6590 = vmatpush3.bf16.msk.msra.mxu1 %vm7136_vm4, %v6585_v35  ;;  %5966 = vmatprep.mubr.msk.f32.mxu1 %vm249_vm6, %v7243_v9  ;;  %v1377_v9 = vld [vmem:[#allocation2 + $0x98] sm:$0xff] }
 0x12a   :  { %6593 = vmatprep.subr.msk.bf16.mxu1 %vm7136_vm4, %v6591_v43 }
 0x12c   :  { %5967 = vmatmul.mubr.msk.f32.gmra.mrb[12].mxu1 %vm249_vm6, %v7270_v25 }
 0x12d   :  { %5969 = vmatprep.mubr.msk.f32.mxu1 %vm249_vm6, %v7276_v31  ;;  %v7473_v31 = vld [vmem:[%s8342_s3 + $0x8] ss:$0 sm:$0xff] }
 0x130   :  { %5970 = vmatmul.mubr.msk.f32.gmra.mrb[14].mxu1 %vm249_vm6, %v7296_v45 }
 0x131   :  { %5972 = vmatprep.mubr.msk.f32.mxu1 %vm249_vm6, %v544_v49 }
 0x134   :  { %5973 = vmatmul.mubr.msk.f32.gmra.mrb[16].mxu1 %vm249_vm6, %v546_v6 }
 0x135   :  { %5975 = vmatprep.mubr.msk.f32.mxu1 %vm249_vm6, %v548_v7 }
 0x138   :  { %5976 = vmatmul.mubr.msk.f32.gmra.mrb[18].mxu1 %vm249_vm6, %v550_v47 }
 0x139   :  { %5982 = vmatprep.mubr.msk.f32.mxu1 %vm249_vm6, %v7212_v51  ;;  %v7431_v51 = vrot.slane %v7080_v58, 3 }
 0x13b   :  { %v722_v1 = vsel %vm701_vm8, %v719_v60, %v7431_v51 }
 0x13c   :  { %5983 = vmatmul.mubr.msk.f32.vlgmr.msra.gmra.mrb[10].mxu1 %vm249_vm6, %v7253_v15  ;;  %v1378_v15 = vld [vmem:[#allocation2 + $0xa0] sm:$0x3] }
 0x13d   :  { %6596 = vmatpush3.bf16.msk.msra.mxu1 %vm7136_vm4, %v6591_v43  ;;  %5985 = vmatprep.mubr.msk.f32.mxu1 %vm249_vm6, %v7261_v17  ;;  %v6609_v16 = vpack.c.bf16 %v1378_v15, %v1377_v9  ;;  %v1067_v17 = vld [vmem:[#allocation2 + $0x78] sm:$0xff] }
 0x13e   :  { %6599 = vmatprep.subr.msk.bf16.mxu1 %vm7136_vm4, %v6597_v0  ;;  %v6603_v25 = vpack.c.bf16 %v1068_v20, %v1067_v17 }
 0x13f   :  { %6611 = vmatprep.subr.msk.bf16.mxu0 %vm7136_vm4, %v6609_v16 }
 0x140   :  { %5986 = vmatmul.mubr.msk.f32.gmra.mrb[12].mxu1 %vm249_vm6, %v7284_v36  ;;  %6614 = vmatpush3.bf16.msk.msra.mxu0 %vm7136_vm4, %v6609_v16 }
 0x141   :  { %5988 = vmatprep.mubr.msk.f32.mxu1 %vm249_vm6, %v7289_v38 }
 0x144   :  { %5989 = vmatmul.mubr.msk.f32.gmra.mrb[14].mxu1 %vm249_vm6, %v7303_v53 }
 0x145   :  { %5991 = vmatprep.mubr.msk.f32.mxu1 %vm249_vm6, %v7307_v56 }
 0x148   :  { %5992 = vmatmul.mubr.msk.f32.gmra.mrb[16].mxu1 %vm249_vm6, %v7328_v8 }
 0x149   :  { %5994 = vmatprep.mubr.msk.f32.mxu1 %vm249_vm6, %v7333_v46 }
 0x14c   :  { %5995 = vmatmul.mubr.msk.f32.gmra.mrb[18].mxu1 %vm249_vm6, %v722_v1 }
 0x14d   :  { %6001 = vmatprep.mubr.msk.f32.mxu1 %vm249_vm6, %v7228_v62  ;;  %v893_v62 = vsel %vm83_vm1, %v890_v22, %v7455_v5 }
 0x150   :  { %6002 = vmatmul.mubr.msk.f32.vlgmr.msra.gmra.mrb[10].mxu1 %vm249_vm6, %v7318_v2 }
 0x151   :  { %6004 = vmatprep.mubr.msk.f32.mxu1 %vm249_vm6, %v7340_v10  ;;  %6602 = vmatpush3.bf16.msk.msra.mxu1 %vm7136_vm4, %v6597_v0 }
 0x152   :  { %6605 = vmatprep.subr.msk.bf16.mxu1 %vm7136_vm4, %v6603_v25 }
 0x154   :  { %6005 = vmatmul.mubr.msk.f32.gmra.mrb[12].mxu1 %vm249_vm6, %v881_v63 }
 0x155   :  { %6007 = vmatprep.mubr.msk.f32.mxu1 %vm249_vm6, %v883_v27 }
 0x158   :  { %6008 = vmatmul.mubr.msk.f32.gmra.mrb[14].mxu1 %vm249_vm6, %v885_v28 }
 0x159   :  { %6010 = vmatprep.mubr.msk.f32.mxu1 %vm249_vm6, %v887_v32 }
 0x15c   :  { %6011 = vmatmul.mubr.msk.f32.gmra.mrb[16].mxu1 %vm249_vm6, %v889_v33 }
 0x15d   :  { %6013 = vmatprep.mubr.msk.f32.mxu1 %vm249_vm6, %v891_v34 }
 0x160   :  { %6014 = vmatmul.mubr.msk.f32.gmra.mrb[18].mxu1 %vm249_vm6, %v893_v62 }
 0x223   :  { %v6003_v36 = vpop.f32.mrb[10].mxu1 }
 0x224   :  { %v1048_v37 = vadd.f32 %v6003_v36, %v7473_v31  ;;  %v983_v38 = vpop.f32.mrb[11].mxu1 }
 0x225   :  { %v1047_v39 = vadd.f32 %v7473_v31, %v983_v38 }
 0x226   :  { %v7477_v40 = vmax.f32 %v1048_v37, 0.0 }
 0x227   :  { %v7479_v41 = vmax.f32 %v1047_v39, 0.0  ;;  %v6006_v24 = vpop.f32.mrb[12].mxu1 }
 0x228   :  { %v1082_v42 = vrot.slane %v7477_v40, 1  ;;  %v1050_v45 = vadd.f32 %v6006_v24, %v7473_v31  ;;  %v993_v48 = vpop.f32.mrb[13].mxu1  ;;  %v1380_v49 = vrot.slane %v7477_v40, 2 }
 0x229   :  { %v1081_v52 = vrot.slane %v7479_v41, 1  ;;  %v1049_v53 = vadd.f32 %v7473_v31, %v993_v48  ;;  %v1379_v54 = vrot.slane %v7479_v41, 2 }
 0x22a   :  { %v7487_v55 = vmax.f32 %v1050_v45, 0.0 }
 0x22b   :  { %v7489_v56 = vmax.f32 %v1049_v53, 0.0  ;;  %v6009_v57 = vpop.f32.mrb[14].mxu1  ;;  %v1083_v60 = vsel %vm227_vm5, %v1081_v52, %v1082_v42  ;;  %v1381_v2 = vsel %vm529_vm7, %v1379_v54, %v1380_v49 }
 0x22c   :  { %v1086_v3 = vrot.slane %v7487_v55, 1  ;;  %v1384_v4 = vrot.slane %v7487_v55, 2  ;;  %v1052_v6 = vadd.f32 %v6009_v57, %v7473_v31  ;;  %v1003_v7 = vpop.f32.mrb[15].mxu1  ;;  %6020 = vmatprep.mubr.msk.f32.mxu1 %vm249_vm6, %v1083_v60  ;;  %6058 = vmatprep.mubr.msk.f32.mxu0 %vm249_vm6, %v1381_v2  ;;  %v1663_v57 = vld [vmem:[#allocation2 + $0xb0] sm:$0x3]  ;;  %v2172_v2 = vld [vmem:[#allocation2 + $0x100] sm:$0xff] }
 0x22d   :  { %v1084_v8 = vrot.slane %v7489_v56, 1  ;;  %v1382_v46 = vrot.slane %v7489_v56, 2  ;;  %v1051_v10 = vadd.f32 %v7473_v31, %v1003_v7  ;;  %v2175_v7 = vld [vmem:[#allocation2 + $0x118] sm:$0xff] }
 0x22e   :  { %v7501_v11 = vmax.f32 %v1052_v6, 0.0 }
 0x22f   :  { %v7503_v13 = vmax.f32 %v1051_v10, 0.0  ;;  %v6012_v14 = vpop.f32.mrb[16].mxu1  ;;  %v1085_v18 = vsel %vm227_vm5, %v1082_v42, %v1084_v8  ;;  %v1383_v19 = vsel %vm529_vm7, %v1380_v49, %v1382_v46  ;;  %v1087_v21 = vsel %vm227_vm5, %v1084_v8, %v1086_v3 }
 0x230   :  { %v1090_v22 = vrot.slane %v7501_v11, 1  ;;  %v1388_v23 = vrot.slane %v7501_v11, 2  ;;  %v1054_v26 = vadd.f32 %v6012_v14, %v7473_v31  ;;  %v1013_v63 = vpop.f32.mrb[17].mxu1  ;;  %6021 = vmatmul.mubr.msk.f32.vlgmr.msra.gmra.mrb[20].mxu1 %vm249_vm6, %v1085_v18  ;;  %6059 = vmatmul.mubr.msk.f32.vlgmr.msra.gmra.mrb[0].mxu0 %vm249_vm6, %v1383_v19  ;;  %v1385_v27 = vsel %vm529_vm7, %v1382_v46, %v1384_v4 }
 0x231   :  { %v1088_v28 = vrot.slane %v7503_v13, 1  ;;  %v1386_v32 = vrot.slane %v7503_v13, 2  ;;  %v1053_v33 = vadd.f32 %v7473_v31, %v1013_v63  ;;  %6608 = vmatpush3.bf16.msk.msra.mxu1 %vm7136_vm4, %v6603_v25  ;;  %6023 = vmatprep.mubr.msk.f32.mxu1 %vm249_vm6, %v1087_v21  ;;  %v7583_v63 = vld [vmem:[%s8342_s3 + $0x10] ss:$0 sm:$0xff] }
 0x232   :  { %v1064_v34 = vmax.f32 %v1054_v26, 0.0  ;;  %6061 = vmatprep.mubr.msk.f32.mxu0 %vm249_vm6, %v1385_v27 }
 0x233   :  { %v1063_v35 = vmax.f32 %v1053_v33, 0.0  ;;  %v6015_v29 = vpop.f32.mrb[18].mxu1  ;;  %v1089_v30 = vsel %vm227_vm5, %v1086_v3, %v1088_v28  ;;  %v1387_v43 = vsel %vm529_vm7, %v1384_v4, %v1386_v32  ;;  %v1091_v47 = vsel %vm227_vm5, %v1088_v28, %v1090_v22  ;;  %v2173_v3 = vld [vmem:[#allocation2 + $0x108] sm:$0xff]  ;;  %v2174_v4 = vld [vmem:[#allocation2 + $0x110] sm:$0xff] }
 0x234   :  { %v1094_v50 = vrot.slane %v1064_v34, 1  ;;  %v1392_v61 = vrot.slane %v1064_v34, 2  ;;  %v1056_v0 = vadd.f32 %v6015_v29, %v7473_v31  ;;  %v1023_v1 = vpop.f32.mrb[19].mxu1  ;;  %6024 = vmatmul.mubr.msk.f32.gmra.mrb[22].mxu1 %vm249_vm6, %v1089_v30  ;;  %6062 = vmatmul.mubr.msk.f32.gmra.mrb[2].mxu0 %vm249_vm6, %v1387_v43  ;;  %v1389_v62 = vsel %vm529_vm7, %v1386_v32, %v1388_v23 }
 0x235   :  { %v1092_v9 = vrot.slane %v1063_v35, 1  ;;  %v1390_v15 = vrot.slane %v1063_v35, 2  ;;  %v1055_v16 = vadd.f32 %v7473_v31, %v1023_v1  ;;  %6026 = vmatprep.mubr.msk.f32.mxu1 %vm249_vm6, %v1091_v47  ;;  %6064 = vmatprep.mubr.msk.f32.mxu0 %vm249_vm6, %v1389_v62  ;;  %v6633_v6 = vpack.c.bf16 %v2173_v3, %v2172_v2 }
 0x236   :  { %v1066_v17 = vmax.f32 %v1056_v0, 0.0  ;;  %v6637_v8 = vpack.c.bf16 %v2175_v7, %v2174_v4 }
 0x237   :  { %v1065_v20 = vmax.f32 %v1055_v16, 0.0  ;;  %v1093_v25 = vsel %vm227_vm5, %v1090_v22, %v1092_v9  ;;  %v1391_v36 = vsel %vm529_vm7, %v1388_v23, %v1390_v15  ;;  %v1095_v37 = vsel %vm227_vm5, %v1092_v9, %v1094_v50  ;;  %6634 = vmatprep.subr.bf16.mxu1 %v6633_v6 }
 0x238   :  { %v1098_v38 = vrot.slane %v1066_v17, 1  ;;  %v1396_v39 = vrot.slane %v1066_v17, 2  ;;  %6027 = vmatmul.mubr.msk.f32.gmra.mrb[24].mxu1 %vm249_vm6, %v1093_v25  ;;  %6065 = vmatmul.mubr.msk.f32.gmra.mrb[4].mxu0 %vm249_vm6, %v1391_v36  ;;  %v1393_v31 = vsel %vm529_vm7, %v1390_v15, %v1392_v61 }
 0x239   :  { %v1096_v24 = vrot.slane %v1065_v20, 1  ;;  %v1394_v42 = vrot.slane %v1065_v20, 2  ;;  %6029 = vmatprep.mubr.msk.f32.mxu1 %vm249_vm6, %v1095_v37  ;;  %6067 = vmatprep.mubr.msk.f32.mxu0 %vm249_vm6, %v1393_v31 }
 0x23a   :  { %v1100_v53 = vsel %vm227_vm5, %v1098_v38, %v7310_v59  ;;  %v1398_v54 = vsel %vm529_vm7, %v1396_v39, %v7403_v44 }
 0x23b   :  { %v1097_v45 = vsel %vm227_vm5, %v1094_v50, %v1096_v24  ;;  %v1395_v48 = vsel %vm529_vm7, %v1392_v61, %v1394_v42  ;;  %v1099_v49 = vsel %vm227_vm5, %v1096_v24, %v1098_v38  ;;  %v1397_v52 = vsel %vm529_vm7, %v1394_v42, %v1396_v39 }
 0x23c   :  { %6030 = vmatmul.mubr.msk.f32.gmra.mrb[26].mxu1 %vm249_vm6, %v1097_v45  ;;  %6068 = vmatmul.mubr.msk.f32.gmra.mrb[6].mxu0 %vm249_vm6, %v1395_v48 }
 0x23d   :  { %6032 = vmatprep.mubr.msk.f32.mxu1 %vm249_vm6, %v1099_v49  ;;  %6070 = vmatprep.mubr.msk.f32.mxu0 %vm249_vm6, %v1397_v52 }
 0x240   :  { %6033 = vmatmul.mubr.msk.f32.gmra.mrb[28].mxu1 %vm249_vm6, %v1100_v53  ;;  %6071 = vmatmul.mubr.msk.f32.gmra.mrb[8].mxu0 %vm249_vm6, %v1398_v54  ;;  %v1972_v54 = vld [vmem:[#allocation2 + $0xc8] sm:$0xff] }
 0x241   :  { %6039 = vmatprep.mubr.msk.f32.mxu1 %vm249_vm6, %v7479_v41  ;;  %v1665_v41 = vld [vmem:[#allocation2 + $0xc0] sm:$0x3] }
 0x244   :  { %6040 = vmatmul.mubr.msk.f32.vlgmr.msra.gmra.mrb[20].mxu1 %vm249_vm6, %v7477_v40  ;;  %v1664_v40 = vld [vmem:[#allocation2 + $0xb8] sm:$0xff] }
 0x245   :  { %6042 = vmatprep.mubr.msk.f32.mxu1 %vm249_vm6, %v7489_v56  ;;  %v6615_v56 = vpack.c.bf16 %v1665_v41, %v1664_v40  ;;  %6636 = vmatpush3.bf16.msra.mxu1 %v6633_v6  ;;  %v1973_v40 = vld [vmem:[#allocation2 + $0xd0] sm:$0x3] }
 0x246   :  { %6638 = vmatprep.subr.bf16.mxu1 %v6637_v8 }
 0x247   :  { %6617 = vmatprep.subr.msk.bf16.mxu0 %vm7136_vm4, %v6615_v56 }
 0x248   :  { %6043 = vmatmul.mubr.msk.f32.gmra.mrb[22].mxu1 %vm249_vm6, %v7487_v55  ;;  %6620 = vmatpush3.bf16.msk.msra.mxu0 %vm7136_vm4, %v6615_v56  ;;  %v1662_v55 = vld [vmem:[#allocation2 + $0xa8] sm:$0xff] }
 0x249   :  { %6045 = vmatprep.mubr.msk.f32.mxu1 %vm249_vm6, %v7503_v13  ;;  %v7573_v60 = vpack.c.bf16 %v1663_v57, %v1662_v55  ;;  %6640 = vmatpush3.bf16.msra.mxu1 %v6637_v8 }
 0x24b   :  { %6623 = vmatprep.subr.msk.bf16.mxu0 %vm7136_vm4, %v7573_v60 }
 0x24c   :  { %6046 = vmatmul.mubr.msk.f32.gmra.mrb[24].mxu1 %vm249_vm6, %v7501_v11 }
 0x24d   :  { %6048 = vmatprep.mubr.msk.f32.mxu1 %vm249_vm6, %v1063_v35 }
 0x250   :  { %6049 = vmatmul.mubr.msk.f32.gmra.mrb[26].mxu1 %vm249_vm6, %v1064_v34 }
 0x251   :  { %6051 = vmatprep.mubr.msk.f32.mxu1 %vm249_vm6, %v1065_v20 }
 0x254   :  { %6052 = vmatmul.mubr.msk.f32.gmra.mrb[28].mxu1 %vm249_vm6, %v1066_v17 }
 0x303   :  { %v6060_v46 = vpop.f32.mrb[0].mxu0 }
 0x304   :  { %v1488_v10 = vpop.f32.mrb[1].mxu0 }
 0x307   :  { %v6063_v11 = vpop.f32.mrb[2].mxu0 }
 0x308   :  { %v1498_v13 = vpop.f32.mrb[3].mxu0 }
 0x30b   :  { %v6066_v14 = vpop.f32.mrb[4].mxu0 }
 0x30c   :  { %v1508_v18 = vpop.f32.mrb[5].mxu0 }
 0x30f   :  { %v6069_v19 = vpop.f32.mrb[6].mxu0 }
 0x310   :  { %v1518_v21 = vpop.f32.mrb[7].mxu0 }
 0x313   :  { %v6072_v22 = vpop.f32.mrb[8].mxu0 }
 0x314   :  { %v7578_v23 = vpop.f32.mrb[9].mxu0 }
 0x317   :  { %v6041_v26 = vpop.f32.mrb[20].mxu1 }
 0x318   :  { %v6799_v27 = vadd.f32 %v6060_v46, %v6041_v26  ;;  %v1328_v28 = vpop.f32.mrb[21].mxu1 }
 0x319   :  { %v6800_v32 = vadd.f32 %v1488_v10, %v1328_v28 }
 0x31a   :  { %v1553_v33 = vadd.f32 %v6799_v27, %v7583_v63 }
 0x31b   :  { %v1552_v34 = vadd.f32 %v6800_v32, %v7583_v63  ;;  %v6044_v35 = vpop.f32.mrb[22].mxu1 }
 0x31c   :  { %v1573_v29 = vrot.slane %v1553_v33, 1  ;;  %v1613_v30 = vrot.slane %v1553_v33, 2  ;;  %v6801_v43 = vadd.f32 %v6063_v11, %v6044_v35  ;;  %v1338_v47 = vpop.f32.mrb[23].mxu1  ;;  %v7600_v11 = vpack.c.bf16 %v1973_v40, %v1972_v54 }
 0x31d   :  { %v1572_v50 = vrot.slane %v1552_v34, 1  ;;  %v1612_v61 = vrot.slane %v1552_v34, 2  ;;  %v6802_v0 = vadd.f32 %v1498_v13, %v1338_v47 }
 0x31e   :  { %v1555_v1 = vadd.f32 %v6801_v43, %v7583_v63 }
 0x31f   :  { %v1574_v62 = vsel %vm227_vm5, %v1572_v50, %v1573_v29  ;;  %v1614_v9 = vsel %vm529_vm7, %v1612_v61, %v1613_v30  ;;  %v1554_v15 = vadd.f32 %v6802_v0, %v7583_v63  ;;  %v6047_v16 = vpop.f32.mrb[24].mxu1 }
 0x320   :  { %v1602_v17 = vmax.f32 %v1552_v34, %v1574_v62  ;;  %v1577_v20 = vrot.slane %v1555_v1, 1  ;;  %v1617_v25 = vrot.slane %v1555_v1, 2  ;;  %v6803_v36 = vadd.f32 %v6066_v14, %v6047_v16  ;;  %v1348_v37 = vpop.f32.mrb[25].mxu1 }
 0x321   :  { %v1575_v38 = vrot.slane %v1554_v15, 1  ;;  %v1615_v39 = vrot.slane %v1554_v15, 2  ;;  %v6804_v31 = vadd.f32 %v1508_v18, %v1348_v37 }
 0x322   :  { %v1642_v24 = vmax.f32 %v1602_v17, %v1614_v9  ;;  %v1557_v42 = vadd.f32 %v6803_v36, %v7583_v63 }
 0x323   :  { %v1576_v45 = vsel %vm227_vm5, %v1573_v29, %v1575_v38  ;;  %v1578_v48 = vsel %vm227_vm5, %v1575_v38, %v1577_v20  ;;  %v1616_v49 = vsel %vm529_vm7, %v1613_v30, %v1615_v39  ;;  %v1618_v52 = vsel %vm529_vm7, %v1615_v39, %v1617_v25  ;;  %v6050_v53 = vpop.f32.mrb[26].mxu1 }
 0x324   :  { %v7596_v41 = vmax.f32 %v1642_v24, 0.0  ;;  %v1603_v56 = vmax.f32 %v1553_v33, %v1576_v45  ;;  %v1604_v55 = vmax.f32 %v1554_v15, %v1578_v48  ;;  %v1581_v57 = vrot.slane %v1557_v42, 1  ;;  %v1358_v2 = vpop.f32.mrb[27].mxu1 }
 0x325   :  { %v1621_v3 = vrot.slane %v1557_v42, 2  ;;  %v1556_v4 = vadd.f32 %v6804_v31, %v7583_v63  ;;  %v6805_v6 = vadd.f32 %v6069_v19, %v6050_v53  ;;  %v6806_v7 = vadd.f32 %v1518_v21, %v1358_v2 }
 0x326   :  { %v1643_v8 = vmax.f32 %v1603_v56, %v1616_v49  ;;  %v1644_v46 = vmax.f32 %v1604_v55, %v1618_v52  ;;  %v1676_v10 = vrot.slane %v7596_v41, 1  ;;  %v1974_v21 = vrot.slane %v7596_v41, 2 }
 0x327   :  { %v1579_v13 = vrot.slane %v1556_v4, 1  ;;  %v1619_v14 = vrot.slane %v1556_v4, 2  ;;  %v7603_v18 = vadd.f32 %v6805_v6, %v7583_v63  ;;  %v1558_v26 = vadd.f32 %v6806_v7, %v7583_v63  ;;  %v6053_v27 = vpop.f32.mrb[28].mxu1 }
 0x328   :  { %v7606_v28 = vmax.f32 %v1644_v46, 0.0  ;;  %v6807_v32 = vadd.f32 %v6072_v22, %v6053_v27  ;;  %v1368_v33 = vpop.f32.mrb[29].mxu1  ;;  %v7608_v19 = vmax.f32 %v1643_v8, 0.0 }
 0x329   :  { %v1580_v34 = vsel %vm227_vm5, %v1577_v20, %v1579_v13  ;;  %v1582_v35 = vsel %vm227_vm5, %v1579_v13, %v1581_v57  ;;  %v1620_v29 = vsel %vm529_vm7, %v1617_v25, %v1619_v14  ;;  %v1622_v30 = vsel %vm529_vm7, %v1619_v14, %v1621_v3 }
 0x32a   :  { %v1605_v43 = vmax.f32 %v1555_v1, %v1580_v34  ;;  %v1606_v47 = vmax.f32 %v1556_v4, %v1582_v35  ;;  %v1585_v50 = vrot.slane %v7603_v18, 1  ;;  %v1625_v61 = vrot.slane %v7603_v18, 2 }
 0x32b   :  { %v1583_v22 = vrot.slane %v1558_v26, 1  ;;  %v1623_v0 = vrot.slane %v1558_v26, 2  ;;  %v1561_v62 = vadd.f32 %v6807_v32, %v7583_v63  ;;  %v6808_v9 = vadd.f32 %v7578_v23, %v1368_v33 }
 0x32c   :  { %v1645_v15 = vmax.f32 %v1605_v43, %v1620_v29  ;;  %v1646_v16 = vmax.f32 %v1606_v47, %v1622_v30  ;;  %v1677_v17 = vrot.slane %v7608_v19, 1  ;;  %v1679_v20 = vrot.slane %v7606_v28, 1 }
 0x32d   :  { %v1584_v25 = vsel %vm227_vm5, %v1581_v57, %v1583_v22  ;;  %v1586_v1 = vsel %vm227_vm5, %v1583_v22, %v1585_v50  ;;  %v1624_v36 = vsel %vm529_vm7, %v1621_v3, %v1623_v0  ;;  %v1626_v37 = vsel %vm529_vm7, %v1623_v0, %v1625_v61 }
 0x32e   :  { %v7625_v38 = vmax.f32 %v1646_v16, 0.0  ;;  %v1607_v39 = vmax.f32 %v1557_v42, %v1584_v25  ;;  %v1608_v31 = vmax.f32 %v1558_v26, %v1586_v1  ;;  %v1589_v24 = vrot.slane %v1561_v62, 1 }
 0x32f   :  { %v1629_v23 = vrot.slane %v1561_v62, 2  ;;  %v1560_v45 = vadd.f32 %v6808_v9, %v7583_v63  ;;  %v1678_v48 = vsel %vm227_vm5, %v1676_v10, %v1677_v17  ;;  %v1680_v49 = vsel %vm227_vm5, %v1677_v17, %v1679_v20 }
 0x330   :  { %v1647_v52 = vmax.f32 %v1607_v39, %v1624_v36  ;;  %v1648_v53 = vmax.f32 %v1608_v31, %v1626_v37  ;;  %v1591_v54 = vsel %vm227_vm5, %v1589_v24, %v7310_v59  ;;  %6077 = vmatprep.mubr.msk.f32.mxu0 %vm249_vm6, %v1678_v48  ;;  %v7633_v40 = vmax.f32 %v1645_v15, 0.0 }
 0x331   :  { %v1611_v56 = vmax.f32 %v1561_v62, %v1591_v54  ;;  %v1631_v42 = vsel %vm529_vm7, %v1629_v23, %v7403_v44  ;;  %v1587_v55 = vrot.slane %v1560_v45, 1  ;;  %v1627_v57 = vrot.slane %v1560_v45, 2  ;;  %6078 = vmatmul.mubr.msk.f32.vlgmr.msra.gmra.mrb[10].mxu0 %vm249_vm6, %v1680_v49  ;;  %v2729_v54 = vld [vmem:[#allocation2 + $0x180] sm:$0xff] }
 0x332   :  { %v7638_v63 = vmax.f32 %v1648_v53, 0.0  ;;  %6626 = vmatpush3.bf16.msk.msra.mxu0 %vm7136_vm4, %v7573_v60  ;;  %v1681_v2 = vrot.slane %v7633_v40, 1  ;;  %v1683_v3 = vrot.slane %v7625_v38, 1  ;;  %v1657_v4 = vmax.f32 %v1647_v52, 0.0 }
 0x333   :  { %v1651_v6 = vmax.f32 %v1611_v56, %v1631_v42  ;;  %v1588_v7 = vsel %vm227_vm5, %v1585_v50, %v1587_v55  ;;  %v1590_v8 = vsel %vm227_vm5, %v1587_v55, %v1589_v24  ;;  %v1628_v46 = vsel %vm529_vm7, %v1625_v61, %v1627_v57  ;;  %6629 = vmatprep.subr.msk.bf16.mxu0 %vm7136_vm4, %v7600_v11  ;;  %v7726_v56 = vld [vmem:[%s8342_s3 + $0x18] ss:$0 sm:$0xff] }
 0x334   :  { %v1609_v10 = vmax.f32 %v7603_v18, %v1588_v7  ;;  %v1610_v13 = vmax.f32 %v1560_v45, %v1590_v8  ;;  %v1630_v60 = vsel %vm529_vm7, %v1627_v57, %v1629_v23  ;;  %v1682_v14 = vsel %vm227_vm5, %v1679_v20, %v1681_v2 }
 0x335   :  { %v7654_v26 = vmax.f32 %v1651_v6, 0.0  ;;  %6080 = vmatprep.mubr.msk.f32.mxu0 %vm249_vm6, %v1682_v14  ;;  %v1684_v27 = vsel %vm227_vm5, %v1681_v2, %v1683_v3  ;;  %v1685_v32 = vrot.slane %v1657_v4, 1  ;;  %v1687_v33 = vrot.slane %v7638_v63, 1 }
 0x336   :  { %v1649_v34 = vmax.f32 %v1609_v10, %v1628_v46  ;;  %v1650_v35 = vmax.f32 %v1610_v13, %v1630_v60  ;;  %6081 = vmatmul.mubr.msk.f32.gmra.mrb[12].mxu0 %vm249_vm6, %v1684_v27  ;;  %v1975_v18 = vrot.slane %v7608_v19, 2  ;;  %v1977_v29 = vrot.slane %v7606_v28, 2 }
 0x337   :  { %v1686_v30 = vsel %vm227_vm5, %v1683_v3, %v1685_v32  ;;  %v1688_v43 = vsel %vm227_vm5, %v1685_v32, %v1687_v33  ;;  %v1693_v47 = vrot.slane %v7654_v26, 1  ;;  %v1979_v50 = vrot.slane %v7633_v40, 2 }
 0x338   :  { %v1660_v61 = vmax.f32 %v1650_v35, 0.0  ;;  %6083 = vmatprep.mubr.msk.f32.mxu0 %vm249_vm6, %v1686_v30  ;;  %v1659_v22 = vmax.f32 %v1649_v34, 0.0  ;;  %v1976_v0 = vsel %vm529_vm7, %v1974_v21, %v1975_v18  ;;  %v1978_v62 = vsel %vm529_vm7, %v1975_v18, %v1977_v29  ;;  %v2170_v34 = vld [vmem:[#allocation2 + $0xf0] sm:$0xff] }
 0x339   :  { %v1980_v9 = vsel %vm529_vm7, %v1977_v29, %v1979_v50  ;;  %v1981_v15 = vrot.slane %v7625_v38, 2  ;;  %v1983_v16 = vrot.slane %v1657_v4, 2  ;;  %v1985_v25 = vrot.slane %v7638_v63, 2 }
 0x33a   :  { %6084 = vmatmul.mubr.msk.f32.gmra.mrb[14].mxu0 %vm249_vm6, %v1688_v43  ;;  %v1689_v17 = vrot.slane %v1659_v22, 1  ;;  %v1691_v20 = vrot.slane %v1660_v61, 1  ;;  %v1987_v1 = vrot.slane %v1659_v22, 2  ;;  %v1989_v39 = vrot.slane %v1660_v61, 2 }
 0x33b   :  { %v1982_v36 = vsel %vm529_vm7, %v1979_v50, %v1981_v15  ;;  %v1984_v37 = vsel %vm529_vm7, %v1981_v15, %v1983_v16  ;;  %v1991_v21 = vrot.slane %v7654_v26, 2  ;;  %v1986_v45 = vsel %vm529_vm7, %v1983_v16, %v1985_v25 }
 0x33c   :  { %v1690_v31 = vsel %vm227_vm5, %v1687_v33, %v1689_v17  ;;  %v1692_v24 = vsel %vm227_vm5, %v1689_v17, %v1691_v20  ;;  %v1694_v23 = vsel %vm227_vm5, %v1691_v20, %v1693_v47  ;;  %v1988_v48 = vsel %vm529_vm7, %v1985_v25, %v1987_v1  ;;  %v2169_v33 = vld [vmem:[#allocation2 + $0xe8] sm:$0xff] }
 0x33d   :  { %6086 = vmatprep.mubr.msk.f32.mxu0 %vm249_vm6, %v1690_v31  ;;  %v1990_v49 = vsel %vm529_vm7, %v1987_v1, %v1989_v39  ;;  %v1992_v52 = vsel %vm529_vm7, %v1989_v39, %v1991_v21  ;;  %v1695_v53 = vsel %vm227_vm5, %v1693_v47, %v7310_v59  ;;  %v1993_v12 = vsel %vm529_vm7, %v1991_v21, %v7403_v44 }
 0x33e   :  { %6087 = vmatmul.mubr.msk.f32.gmra.mrb[16].mxu0 %vm249_vm6, %v1692_v24 }
 0x33f   :  { %6089 = vmatprep.mubr.msk.f32.mxu0 %vm249_vm6, %v1694_v23 }
 0x342   :  { %6090 = vmatmul.mubr.msk.f32.gmra.mrb[18].mxu0 %vm249_vm6, %v1695_v53  ;;  %v2478_v53 = vld [vmem:[#allocation2 + $0x128] sm:$0xff] }
 0x343   :  { %6096 = vmatprep.mubr.msk.f32.mxu0 %vm249_vm6, %v7596_v41  ;;  %v2176_v41 = vld [vmem:[#allocation2 + $0x120] sm:$0xff] }
 0x344   :  { %6138 = vmatprep.subr.mxu1 %v2176_v41 }
 0x345   :  { %6139 = vmatpush3.msra.mxu1 %v2176_v41 }
 0x346   :  { %6097 = vmatmul.mubr.msk.f32.vlgmr.msra.gmra.mrb[10].mxu0 %vm249_vm6, %v7608_v19 }
 0x347   :  { %6632 = vmatpush3.bf16.msk.msra.mxu0 %vm7136_vm4, %v7600_v11  ;;  %6099 = vmatprep.mubr.msk.f32.mxu0 %vm249_vm6, %v7606_v28  ;;  %v2167_v11 = vld [vmem:[#allocation2 + $0xd8] sm:$0xff]  ;;  %v2168_v28 = vld [vmem:[#allocation2 + $0xe0] sm:$0xff] }
 0x348   :  { %v6641_v19 = vpack.c.bf16 %v2168_v28, %v2167_v11 }
 0x34a   :  { %6100 = vmatmul.mubr.msk.f32.gmra.mrb[12].mxu0 %vm249_vm6, %v7633_v40  ;;  %6642 = vmatprep.subr.bf16.mxu1 %v6641_v19 }
 0x34b   :  { %6102 = vmatprep.mubr.msk.f32.mxu0 %vm249_vm6, %v7625_v38  ;;  %v2728_v38 = vld [vmem:[#allocation2 + $0x178] sm:$0xff] }
 0x34c   :  { %v6657_v40 = vpack.c.bf16 %v2729_v54, %v2728_v38 }
 0x34e   :  { %6103 = vmatmul.mubr.msk.f32.gmra.mrb[14].mxu0 %vm249_vm6, %v1657_v4  ;;  %6658 = vmatprep.subr.bf16.mxu0 %v6657_v40 }
 0x34f   :  { %6105 = vmatprep.mubr.msk.f32.mxu0 %vm249_vm6, %v7638_v63 }
 0x352   :  { %6106 = vmatmul.mubr.msk.f32.gmra.mrb[16].mxu0 %vm249_vm6, %v1659_v22 }
 0x353   :  { %6108 = vmatprep.mubr.msk.f32.mxu0 %vm249_vm6, %v1660_v61 }
 0x356   :  { %6109 = vmatmul.mubr.msk.f32.gmra.mrb[18].mxu0 %vm249_vm6, %v7654_v26 }
 0x357   :  { %6115 = vmatprep.mubr.msk.f32.mxu0 %vm249_vm6, %v1976_v0  ;;  %v6645_v0 = vpack.c.bf16 %v2170_v34, %v2169_v33 }
 0x35a   :  { %6116 = vmatmul.mubr.msk.f32.vlgmr.msra.gmra.mrb[10].mxu0 %vm249_vm6, %v1978_v62 }
 0x35b   :  { %6118 = vmatprep.mubr.msk.f32.mxu0 %vm249_vm6, %v1980_v9  ;;  %6660 = vmatpush3.bf16.msra.mxu0 %v6657_v40 }
 0x35e   :  { %6119 = vmatmul.mubr.msk.f32.gmra.mrb[12].mxu0 %vm249_vm6, %v1982_v36 }
 0x35f   :  { %6121 = vmatprep.mubr.msk.f32.mxu0 %vm249_vm6, %v1984_v37 }
 0x362   :  { %6122 = vmatmul.mubr.msk.f32.gmra.mrb[14].mxu0 %vm249_vm6, %v1986_v45 }
 0x363   :  { %6124 = vmatprep.mubr.msk.f32.mxu0 %vm249_vm6, %v1988_v48 }
 0x366   :  { %6125 = vmatmul.mubr.msk.f32.gmra.mrb[16].mxu0 %vm249_vm6, %v1990_v49 }
 0x367   :  { %6127 = vmatprep.mubr.msk.f32.mxu0 %vm249_vm6, %v1992_v52  ;;  %v2171_v52 = vld [vmem:[#allocation2 + $0xf8] sm:$0xff] }
 0x36a   :  { %6128 = vmatmul.mubr.msk.f32.gmra.mrb[18].mxu0 %vm249_vm6, %v1993_v12  ;;  %v2479_v12 = vld [vmem:[#allocation2 + $0x130] sm:$0xff] }
 0x42d   :  { %v6117_v42 = vpop.f32.mrb[10].mxu0 }
 0x42e   :  { %v2148_v55 = vadd.f32 %v6117_v42, %v7726_v56  ;;  %v2083_v57 = vpop.f32.mrb[11].mxu0 }
 0x42f   :  { %v2147_v63 = vadd.f32 %v7726_v56, %v2083_v57 }
 0x430   :  { %v7730_v2 = vmax.f32 %v2148_v55, 0.0 }
 0x431   :  { %v7732_v3 = vmax.f32 %v2147_v63, 0.0  ;;  %v6120_v4 = vpop.f32.mrb[12].mxu0  ;;  %v6649_v63 = vpack.c.bf16 %v2479_v12, %v2478_v53 }
 0x432   :  { %v2188_v6 = vrot.slane %v7730_v2, 1  ;;  %v2484_v7 = vrot.slane %v7730_v2, 2  ;;  %v2150_v8 = vadd.f32 %v6120_v4, %v7726_v56  ;;  %v2093_v46 = vpop.f32.mrb[13].mxu0 }
 0x433   :  { %v2187_v10 = vrot.slane %v7732_v3, 1  ;;  %v2483_v13 = vrot.slane %v7732_v3, 2  ;;  %v2149_v60 = vadd.f32 %v7726_v56, %v2093_v46 }
 0x434   :  { %v7740_v14 = vmax.f32 %v2150_v8, 0.0 }
 0x435   :  { %v7742_v26 = vmax.f32 %v2149_v60, 0.0  ;;  %v6123_v27 = vpop.f32.mrb[14].mxu0  ;;  %v2189_v32 = vsel %vm227_vm5, %v2187_v10, %v2188_v6  ;;  %v7746_v35 = vsel %vm529_vm7, %v2483_v13, %v2484_v7 }
 0x436   :  { %v2192_v18 = vrot.slane %v7740_v14, 1  ;;  %v2488_v29 = vrot.slane %v7740_v14, 2  ;;  %v2152_v30 = vadd.f32 %v6123_v27, %v7726_v56  ;;  %v2103_v43 = vpop.f32.mrb[15].mxu0  ;;  %6140 = vmatprep.mubr.msk.f32.mxu1 %vm2207_vm9, %v2189_v32 }
 0x437   :  { %v2190_v47 = vrot.slane %v7742_v26, 1  ;;  %v2486_v50 = vrot.slane %v7742_v26, 2  ;;  %v2151_v61 = vadd.f32 %v7726_v56, %v2103_v43 }
 0x438   :  { %v7755_v22 = vmax.f32 %v2152_v30, 0.0  ;;  %v2481_v30 = vld [vmem:[#allocation2 + $0x140] sm:$0xff] }
 0x439   :  { %v7757_v62 = vmax.f32 %v2151_v61, 0.0  ;;  %v6126_v9 = vpop.f32.mrb[16].mxu0  ;;  %v2191_v15 = vsel %vm227_vm5, %v2188_v6, %v2190_v47  ;;  %v2193_v16 = vsel %vm227_vm5, %v2190_v47, %v2192_v18  ;;  %v7762_v17 = vsel %vm529_vm7, %v2484_v7, %v2486_v50  ;;  %v2482_v47 = vld [vmem:[#allocation2 + $0x148] sm:$0xff]  ;;  %v2724_v61 = vld [vmem:[#allocation2 + $0x158] sm:$0xff] }
 0x43a   :  { %v2196_v20 = vrot.slane %v7755_v22, 1  ;;  %v2492_v25 = vrot.slane %v7755_v22, 2  ;;  %v2154_v1 = vadd.f32 %v6126_v9, %v7726_v56  ;;  %v2113_v36 = vpop.f32.mrb[17].mxu0  ;;  %6141 = vmatmul.mubr.msk.f32.vlgmr.msra.gmra.mrb[30].mxu1 %vm2207_vm9, %v2191_v15  ;;  %v7769_v37 = vsel %vm529_vm7, %v2486_v50, %v2488_v29  ;;  %v2723_v50 = vld [vmem:[#allocation2 + $0x150] sm:$0xff] }
 0x43b   :  { %v2194_v39 = vrot.slane %v7757_v62, 1  ;;  %v2490_v21 = vrot.slane %v7757_v62, 2  ;;  %v2153_v31 = vadd.f32 %v7726_v56, %v2113_v36  ;;  %6644 = vmatpush3.bf16.msra.mxu1 %v6641_v19  ;;  %6143 = vmatprep.mubr.msk.f32.mxu1 %vm2207_vm9, %v2193_v16 }
 0x43c   :  { %v2164_v24 = vmax.f32 %v2154_v1, 0.0  ;;  %6646 = vmatprep.subr.bf16.mxu1 %v6645_v0 }
 0x43d   :  { %v2163_v23 = vmax.f32 %v2153_v31, 0.0  ;;  %v6129_v45 = vpop.f32.mrb[18].mxu0  ;;  %v2195_v48 = vsel %vm227_vm5, %v2192_v18, %v2194_v39  ;;  %v2197_v49 = vsel %vm227_vm5, %v2194_v39, %v2196_v20  ;;  %v2491_v41 = vsel %vm529_vm7, %v2488_v29, %v2490_v21  ;;  %v2480_v29 = vld [vmem:[#allocation2 + $0x138] sm:$0xff] }
 0x43e   :  { %v2200_v11 = vrot.slane %v2164_v24, 1  ;;  %v2496_v28 = vrot.slane %v2164_v24, 2  ;;  %v2156_v38 = vadd.f32 %v6129_v45, %v7726_v56  ;;  %v2123_v19 = vpop.f32.mrb[19].mxu0  ;;  %6144 = vmatmul.mubr.msk.f32.gmra.mrb[32].mxu1 %vm2207_vm9, %v2195_v48  ;;  %v2493_v54 = vsel %vm529_vm7, %v2490_v21, %v2492_v25 }
 0x43f   :  { %v2198_v40 = vrot.slane %v2163_v23, 1  ;;  %v2494_v42 = vrot.slane %v2163_v23, 2  ;;  %v2155_v55 = vadd.f32 %v7726_v56, %v2123_v19  ;;  %6146 = vmatprep.mubr.msk.f32.mxu1 %vm2207_vm9, %v2197_v49  ;;  %6648 = vmatpush3.bf16.msra.mxu1 %v6645_v0  ;;  %v6653_v43 = vpack.c.bf16 %v2481_v30, %v2480_v29  ;;  %v5368_v0 = vld [vmem:[%s8342_s3 + $0x20] ss:$0 sm:$0xff] }
 0x440   :  { %v2166_v57 = vmax.f32 %v2156_v38, 0.0  ;;  %6163 = vmatprep.subr.mxu1 %v2171_v52 }
 0x441   :  { %v2165_v4 = vmax.f32 %v2155_v55, 0.0  ;;  %v2199_v6 = vsel %vm227_vm5, %v2196_v20, %v2198_v40  ;;  %v2201_v7 = vsel %vm227_vm5, %v2198_v40, %v2200_v11  ;;  %v2495_v8 = vsel %vm529_vm7, %v2492_v25, %v2494_v42 }
 0x442   :  { %v2204_v46 = vrot.slane %v2166_v57, 1  ;;  %v2500_v10 = vrot.slane %v2166_v57, 2  ;;  %6147 = vmatmul.mubr.msk.f32.gmra.mrb[34].mxu1 %vm2207_vm9, %v2199_v6  ;;  %v2497_v13 = vsel %vm529_vm7, %v2494_v42, %v2496_v28 }
 0x443   :  { %v2202_v56 = vrot.slane %v2165_v4, 1  ;;  %v2498_v60 = vrot.slane %v2165_v4, 2  ;;  %6149 = vmatprep.mubr.msk.f32.mxu1 %vm2207_vm9, %v2201_v7  ;;  %6164 = vmatpush3.msra.mxu1 %v2171_v52 }
 0x444   :  { %6650 = vmatprep.subr.bf16.mxu1 %v6649_v63  ;;  %v2206_v18 = vsel %vm227_vm5, %v2204_v46, %v7310_v59 }
 0x445   :  { %v2203_v27 = vsel %vm227_vm5, %v2200_v11, %v2202_v56  ;;  %v2205_v32 = vsel %vm227_vm5, %v2202_v56, %v2204_v46  ;;  %v2499_v33 = vsel %vm529_vm7, %v2496_v28, %v2498_v60  ;;  %v2501_v34 = vsel %vm529_vm7, %v2498_v60, %v2500_v10 }
 0x446   :  { %6150 = vmatmul.mubr.msk.f32.gmra.mrb[36].mxu1 %vm2207_vm9, %v2203_v27 }
 0x447   :  { %6152 = vmatprep.mubr.msk.f32.mxu1 %vm2207_vm9, %v2205_v32 }
 0x44a   :  { %6153 = vmatmul.mubr.msk.f32.gmra.mrb[38].mxu1 %vm2207_vm9, %v2206_v18 }
 0x44b   :  { %6165 = vmatprep.mubr.msk.f32.mxu1 %vm2207_vm9, %v7732_v3  ;;  %v2730_v3 = vld [vmem:[#allocation2 + $0x188] sm:$0xff] }
 0x44e   :  { %6166 = vmatmul.mubr.msk.f32.vlgmr.msra.gmra.mrb[30].mxu1 %vm2207_vm9, %v7730_v2  ;;  %v2502_v2 = vsel %vm529_vm7, %v2500_v10, %v7403_v44 }
 0x44f   :  { %6652 = vmatpush3.bf16.msra.mxu1 %v6649_v63  ;;  %6168 = vmatprep.mubr.msk.f32.mxu1 %vm2207_vm9, %v7742_v26  ;;  %v2726_v63 = vld [vmem:[#allocation2 + $0x168] sm:$0xff] }
 0x450   :  { %6654 = vmatprep.subr.bf16.mxu1 %v6653_v43 }
 0x452   :  { %6169 = vmatmul.mubr.msk.f32.gmra.mrb[32].mxu1 %vm2207_vm9, %v7740_v14  ;;  %v2731_v14 = vld [vmem:[#allocation2 + $0x190] sm:$0xff] }
 0x453   :  { %6171 = vmatprep.mubr.msk.f32.mxu1 %vm2207_vm9, %v7757_v62  ;;  %6656 = vmatpush3.bf16.msra.mxu1 %v6653_v43  ;;  %v6661_v26 = vpack.c.bf16 %v2731_v14, %v2730_v3 }
 0x454   :  { %6188 = vmatprep.subr.mxu1 %v2482_v47 }
 0x455   :  { %6662 = vmatprep.subr.bf16.mxu0 %v6661_v26 }
 0x456   :  { %6172 = vmatmul.mubr.msk.f32.gmra.mrb[34].mxu1 %vm2207_vm9, %v7755_v22  ;;  %6664 = vmatpush3.bf16.msra.mxu0 %v6661_v26  ;;  %v6665_v22 = vpack.c.bf16 %v2724_v61, %v2723_v50 }
 0x457   :  { %6174 = vmatprep.mubr.msk.f32.mxu1 %vm2207_vm9, %v2163_v23  ;;  %6189 = vmatpush3.msra.mxu1 %v2482_v47 }
 0x45a   :  { %6175 = vmatmul.mubr.msk.f32.gmra.mrb[36].mxu1 %vm2207_vm9, %v2164_v24 }
 0x45b   :  { %6177 = vmatprep.mubr.msk.f32.mxu1 %vm2207_vm9, %v2165_v4 }
 0x45e   :  { %6178 = vmatmul.mubr.msk.f32.gmra.mrb[38].mxu1 %vm2207_vm9, %v2166_v57  ;;  %v2725_v57 = vld [vmem:[#allocation2 + $0x160] sm:$0xff] }
 0x45f   :  { %6190 = vmatprep.mubr.msk.f32.mxu1 %vm2207_vm9, %v7746_v35  ;;  %v2732_v35 = vld [vmem:[#allocation2 + $0x198] sm:$0xff] }
 0x460   :  { %6213 = vmatprep.subr.mxu0 %v2732_v35 }
 0x461   :  { %6214 = vmatpush3.msra.mxu0 %v2732_v35 }
 0x462   :  { %6191 = vmatmul.mubr.msk.f32.vlgmr.msra.gmra.mrb[30].mxu1 %vm2207_vm9, %v7762_v17  ;;  %6666 = vmatprep.subr.bf16.mxu0 %v6665_v22 }
 0x463   :  { %6193 = vmatprep.mubr.msk.f32.mxu1 %vm2207_vm9, %v7769_v37 }
 0x466   :  { %6194 = vmatmul.mubr.msk.f32.gmra.mrb[32].mxu1 %vm2207_vm9, %v2491_v41 }
 0x467   :  { %6196 = vmatprep.mubr.msk.f32.mxu1 %vm2207_vm9, %v2493_v54 }
 0x46a   :  { %6197 = vmatmul.mubr.msk.f32.gmra.mrb[34].mxu1 %vm2207_vm9, %v2495_v8 }
 0x46b   :  { %6199 = vmatprep.mubr.msk.f32.mxu1 %vm2207_vm9, %v2497_v13 }
 0x46e   :  { %6200 = vmatmul.mubr.msk.f32.gmra.mrb[36].mxu1 %vm2207_vm9, %v2499_v33  ;;  %v6669_v33 = vpack.c.bf16 %v2726_v63, %v2725_v57  ;;  %v3035_v63 = vld [vmem:[#allocation2 + $0x1b0] sm:$0xff] }
 0x46f   :  { %6202 = vmatprep.mubr.msk.f32.mxu1 %vm2207_vm9, %v2501_v34 }
 0x472   :  { %6203 = vmatmul.mubr.msk.f32.gmra.mrb[38].mxu1 %vm2207_vm9, %v2502_v2 }
 0x535   :  { %v6192_v62 = vpop.f32.mrb[30].mxu1 }
 0x536   :  { %v2654_v9 = vadd.f32 %v6192_v62, %v5368_v0  ;;  %v2589_v15 = vpop.f32.mrb[31].mxu1 }
 0x537   :  { %v2653_v16 = vadd.f32 %v5368_v0, %v2589_v15 }
 0x538   :  { %v2674_v17 = vrot.slane %v2654_v9, 1 }
 0x539   :  { %v2673_v20 = vrot.slane %v2653_v16, 1  ;;  %v6195_v25 = vpop.f32.mrb[32].mxu1 }
 0x53a   :  { %v2656_v1 = vadd.f32 %v6195_v25, %v5368_v0  ;;  %v2599_v36 = vpop.f32.mrb[33].mxu1  ;;  %v3034_v25 = vld [vmem:[#allocation2 + $0x1a8] sm:$0xff] }
 0x53b   :  { %v2675_v37 = vsel %vm227_vm5, %v2673_v20, %v2674_v17  ;;  %v2655_v39 = vadd.f32 %v5368_v0, %v2599_v36  ;;  %v3033_v20 = vld [vmem:[#allocation2 + $0x1a0] sm:$0xff] }
 0x53c   :  { %v2703_v21 = vmax.f32 %v2653_v16, %v2675_v37  ;;  %v2678_v31 = vrot.slane %v2656_v1, 1 }
 0x53d   :  { %v2676_v24 = vrot.slane %v2655_v39, 1  ;;  %v6198_v23 = vpop.f32.mrb[34].mxu1 }
 0x53e   :  { %v2658_v45 = vadd.f32 %v6198_v23, %v5368_v0  ;;  %v2609_v48 = vpop.f32.mrb[35].mxu1  ;;  %v7833_v49 = vmax.f32 %v2703_v21, 0.0 }
 0x53f   :  { %v2677_v52 = vsel %vm227_vm5, %v2674_v17, %v2676_v24  ;;  %v2679_v53 = vsel %vm227_vm5, %v2676_v24, %v2678_v31  ;;  %v2657_v12 = vadd.f32 %v5368_v0, %v2609_v48  ;;  %v6673_v48 = vpack.c.bf16 %v3034_v25, %v3033_v20 }
 0x540   :  { %v2704_v41 = vmax.f32 %v2654_v9, %v2677_v52  ;;  %v2705_v11 = vmax.f32 %v2655_v39, %v2679_v53  ;;  %v2682_v28 = vrot.slane %v2658_v45, 1  ;;  %v2743_v8 = vrot.slane %v7833_v49, 1  ;;  %v2727_v39 = vld [vmem:[#allocation2 + $0x170] sm:$0xff] }
 0x541   :  { %v2680_v38 = vrot.slane %v2657_v12, 1  ;;  %v6201_v19 = vpop.f32.mrb[36].mxu1 }
 0x542   :  { %v7837_v54 = vmax.f32 %v2704_v41, 0.0  ;;  %v7839_v40 = vmax.f32 %v2705_v11, 0.0  ;;  %v2660_v42 = vadd.f32 %v6201_v19, %v5368_v0  ;;  %v2619_v55 = vpop.f32.mrb[37].mxu1 }
 0x543   :  { %v2681_v4 = vsel %vm227_vm5, %v2678_v31, %v2680_v38  ;;  %v2683_v6 = vsel %vm227_vm5, %v2680_v38, %v2682_v28  ;;  %v2659_v7 = vadd.f32 %v5368_v0, %v2619_v55 }
 0x544   :  { %v2706_v46 = vmax.f32 %v2656_v1, %v2681_v4  ;;  %v2707_v10 = vmax.f32 %v2657_v12, %v2683_v6  ;;  %v2686_v13 = vrot.slane %v2660_v42, 1  ;;  %v2744_v56 = vrot.slane %v7837_v54, 1  ;;  %v3036_v4 = vld [vmem:[#allocation2 + $0x1b8] sm:$0xff] }
 0x545   :  { %v2684_v60 = vrot.slane %v2659_v7, 1  ;;  %v6204_v27 = vpop.f32.mrb[38].mxu1  ;;  %v2746_v32 = vrot.slane %v7839_v40, 1  ;;  %v6677_v6 = vpack.c.bf16 %v3036_v4, %v3035_v63 }
 0x546   :  { %v7846_v34 = vmax.f32 %v2706_v46, 0.0  ;;  %v7848_v18 = vmax.f32 %v2707_v10, 0.0  ;;  %v2662_v29 = vadd.f32 %v6204_v27, %v5368_v0  ;;  %v2629_v30 = vpop.f32.mrb[39].mxu1  ;;  %v2745_v43 = vsel %vm227_vm5, %v2743_v8, %v2744_v56  ;;  %v3203_v8 = vld [vmem:[#allocation2 + $0x1c8] sm:$0xff]  ;;  %v3204_v46 = vld [vmem:[#allocation2 + $0x1d0] sm:$0xff]  ;;  %v3205_v27 = vld [vmem:[#allocation2 + $0x1d8] sm:$0xff] }
 0x547   :  { %v2685_v47 = vsel %vm227_vm5, %v2682_v28, %v2684_v60  ;;  %v2687_v2 = vsel %vm227_vm5, %v2684_v60, %v2686_v13  ;;  %v2661_v3 = vadd.f32 %v5368_v0, %v2629_v30  ;;  %6215 = vmatprep.mubr.msk.f32.mxu0 %vm2207_vm9, %v2745_v43  ;;  %v7855_v14 = vsel %vm227_vm5, %v2744_v56, %v2746_v32 }
 0x548   :  { %v2708_v26 = vmax.f32 %v2658_v45, %v2685_v47  ;;  %v2709_v35 = vmax.f32 %v2659_v7, %v2687_v2  ;;  %v2690_v50 = vrot.slane %v2662_v29, 1  ;;  %6216 = vmatmul.mubr.msk.f32.vlgmr.msra.gmra.mrb[20].mxu0 %vm2207_vm9, %v7855_v14  ;;  %v2748_v61 = vrot.slane %v7846_v34, 1  ;;  %v3037_v7 = vld [vmem:[#allocation2 + $0x1c0] sm:$0xff] }
 0x549   :  { %v2688_v62 = vrot.slane %v2661_v3, 1  ;;  %6668 = vmatpush3.bf16.msra.mxu0 %v6665_v22  ;;  %v2750_v9 = vrot.slane %v7848_v18, 1  ;;  %v6681_v10 = vpack.c.bf16 %v3204_v46, %v3203_v8  ;;  %v3038_v56 = vrot.slane %v7833_v49, 2 }
 0x54a   :  { %v7861_v15 = vmax.f32 %v2708_v26, 0.0  ;;  %v7863_v0 = vmax.f32 %v2709_v35, 0.0  ;;  %v2692_v16 = vsel %vm227_vm5, %v2690_v50, %v7310_v59  ;;  %v7868_v17 = vsel %vm227_vm5, %v2746_v32, %v2748_v61  ;;  %6670 = vmatprep.subr.bf16.mxu0 %v6669_v33  ;;  %v3206_v32 = vld [vmem:[#allocation2 + $0x1e0] sm:$0xff] }
 0x54b   :  { %v2712_v1 = vmax.f32 %v2662_v29, %v2692_v16  ;;  %v2689_v36 = vsel %vm227_vm5, %v2686_v13, %v2688_v62  ;;  %v2691_v22 = vsel %vm227_vm5, %v2688_v62, %v2690_v50  ;;  %6218 = vmatprep.mubr.msk.f32.mxu0 %vm2207_vm9, %v7868_v17  ;;  %v7875_v37 = vsel %vm227_vm5, %v2748_v61, %v2750_v9  ;;  %v3207_v50 = vld [vmem:[#allocation2 + $0x1e8] sm:$0xff]  ;;  %v3373_v61 = vld [vmem:[#allocation2 + $0x1f0] sm:$0xff]  ;;  %v3374_v62 = vld [vmem:[#allocation2 + $0x1f8] sm:$0xff] }
 0x54c   :  { %v2710_v21 = vmax.f32 %v2660_v42, %v2689_v36  ;;  %v2711_v31 = vmax.f32 %v2661_v3, %v2691_v22  ;;  %6219 = vmatmul.mubr.msk.f32.gmra.mrb[22].mxu0 %vm2207_vm9, %v7875_v37  ;;  %v2752_v24 = vrot.slane %v7861_v15, 1  ;;  %v2754_v23 = vrot.slane %v7863_v0, 1 }
 0x54d   :  { %v7881_v45 = vmax.f32 %v2712_v1, 0.0  ;;  %6672 = vmatpush3.bf16.msra.mxu0 %v6669_v33  ;;  %v3039_v13 = vrot.slane %v7837_v54, 2  ;;  %v3041_v60 = vrot.slane %v7839_v40, 2  ;;  %v3043_v29 = vrot.slane %v7846_v34, 2 }
 0x54e   :  { %v7883_v52 = vmax.f32 %v2710_v21, 0.0  ;;  %v7885_v53 = vmax.f32 %v2711_v31, 0.0  ;;  %v7888_v12 = vsel %vm227_vm5, %v2750_v9, %v2752_v24  ;;  %v7891_v41 = vsel %vm227_vm5, %v2752_v24, %v2754_v23  ;;  %6238 = vmatprep.subr.mxu0 %v2727_v39 }
 0x54f   :  { %6221 = vmatprep.mubr.msk.f32.mxu0 %vm2207_vm9, %v7888_v12  ;;  %v2760_v38 = vrot.slane %v7881_v45, 1  ;;  %v3040_v33 = vsel %vm529_vm7, %v3038_v56, %v3039_v13  ;;  %v6685_v30 = vpack.c.bf16 %v3206_v32, %v3205_v27  ;;  %v3042_v43 = vsel %vm529_vm7, %v3039_v13, %v3041_v60  ;;  %v3377_v13 = vld [vmem:[#allocation2 + $0x210] sm:$0xff]  ;;  %v3543_v56 = vld [vmem:[#allocation2 + $0x218] sm:$0xff] }
 0x550   :  { %6222 = vmatmul.mubr.msk.f32.gmra.mrb[24].mxu0 %vm2207_vm9, %v7891_v41  ;;  %v2756_v11 = vrot.slane %v7883_v52, 1  ;;  %v2758_v28 = vrot.slane %v7885_v53, 1  ;;  %v3045_v47 = vrot.slane %v7848_v18, 2  ;;  %v3044_v2 = vsel %vm529_vm7, %v3041_v60, %v3043_v29  ;;  %v3544_v60 = vld [vmem:[#allocation2 + $0x220] sm:$0xff] }
 0x551   :  { %6239 = vmatpush3.msra.mxu0 %v2727_v39  ;;  %v7917_v57 = vsel %vm227_vm5, %v2760_v38, %v7310_v59  ;;  %v3047_v3 = vrot.slane %v7861_v15, 2  ;;  %v3049_v35 = vrot.slane %v7863_v0, 2  ;;  %v3051_v16 = vrot.slane %v7883_v52, 2 }
 0x552   :  { %v7901_v19 = vsel %vm227_vm5, %v2754_v23, %v2756_v11  ;;  %v7904_v42 = vsel %vm227_vm5, %v2756_v11, %v2758_v28  ;;  %6674 = vmatprep.subr.bf16.mxu0 %v6673_v48  ;;  %v7911_v55 = vsel %vm227_vm5, %v2758_v28, %v2760_v38  ;;  %v3046_v26 = vsel %vm529_vm7, %v3043_v29, %v3045_v47  ;;  %v3375_v11 = vld [vmem:[#allocation2 + $0x200] sm:$0xff]  ;;  %v3376_v28 = vld [vmem:[#allocation2 + $0x208] sm:$0xff] }
 0x553   :  { %6224 = vmatprep.mubr.msk.f32.mxu0 %vm2207_vm9, %v7901_v19  ;;  %v3048_v9 = vsel %vm529_vm7, %v3045_v47, %v3047_v3  ;;  %v6689_v20 = vpack.c.bf16 %v3374_v62, %v3373_v61  ;;  %v3050_v25 = vsel %vm529_vm7, %v3047_v3, %v3049_v35  ;;  %v3053_v1 = vrot.slane %v7885_v53, 2  ;;  %v4349_v3 = vld [vmem:[#allocation2 + $0x2e8] sm:$0xff]  ;;  %v4352_v62 = vld [vmem:[#allocation2 + $0x300] sm:$0xff] }
 0x554   :  { %6225 = vmatmul.mubr.msk.f32.gmra.mrb[26].mxu0 %vm2207_vm9, %v7904_v42  ;;  %v3052_v36 = vsel %vm529_vm7, %v3049_v35, %v3051_v16  ;;  %v3055_v22 = vrot.slane %v7881_v45, 2  ;;  %v3209_v31 = vrot.slane %v7837_v54, 3  ;;  %v3208_v24 = vrot.slane %v7833_v49, 3 }
 0x555   :  { %6227 = vmatprep.mubr.msk.f32.mxu0 %vm2207_vm9, %v7911_v55  ;;  %v3054_v39 = vsel %vm529_vm7, %v3051_v16, %v3053_v1  ;;  %v3213_v63 = vrot.slane %v7846_v34, 3  ;;  %v6693_v4 = vpack.c.bf16 %v3376_v28, %v3375_v11  ;;  %v3217_v8 = vrot.slane %v7861_v15, 3 }
 0x556   :  { %v3056_v21 = vsel %vm529_vm7, %v3053_v1, %v3055_v22  ;;  %v3057_v23 = vsel %vm529_vm7, %v3055_v22, %v7403_v44  ;;  %v3210_v38 = vsel %vm701_vm8, %v3208_v24, %v3209_v31  ;;  %v3221_v32 = vrot.slane %v7883_v52, 3  ;;  %v3545_v22 = vld [vmem:[#allocation2 + $0x228] sm:$0xff]  ;;  %v4354_v24 = vld [vmem:[#allocation2 + $0x310] sm:$0xff] }
 0x557   :  { %v3225_v47 = vrot.slane %v7881_v45, 3  ;;  %v3383_v11 = vrot.slane %v7846_v34, 4 }
 0x558   :  { %6228 = vmatmul.mubr.msk.f32.gmra.mrb[28].mxu0 %vm2207_vm9, %v7917_v57 }
 0x559   :  { %6240 = vmatprep.mubr.msk.f32.mxu0 %vm2207_vm9, %v7833_v49 }
 0x55c   :  { %6241 = vmatmul.mubr.msk.f32.vlgmr.msra.gmra.mrb[20].mxu0 %vm2207_vm9, %v7837_v54 }
 0x55d   :  { %6676 = vmatpush3.bf16.msra.mxu0 %v6673_v48  ;;  %6243 = vmatprep.mubr.msk.f32.mxu0 %vm2207_vm9, %v7839_v40  ;;  %v3211_v48 = vrot.slane %v7839_v40, 3 }
 0x55e   :  { %6678 = vmatprep.subr.bf16.mxu0 %v6677_v6 }
 0x55f   :  { %v3214_v44 = vsel %vm701_vm8, %v3211_v48, %v3213_v63 }
 0x560   :  { %6244 = vmatmul.mubr.msk.f32.gmra.mrb[22].mxu0 %vm2207_vm9, %v7846_v34 }
 0x561   :  { %6246 = vmatprep.mubr.msk.f32.mxu0 %vm2207_vm9, %v7848_v18  ;;  %6680 = vmatpush3.bf16.msra.mxu0 %v6677_v6  ;;  %v3212_v6 = vsel %vm701_vm8, %v3209_v31, %v3211_v48  ;;  %v3546_v31 = vld [vmem:[#allocation2 + $0x230] sm:$0xff] }
 0x562   :  { %6263 = vmatprep.subr.mxu0 %v3037_v7  ;;  %v6701_v28 = vpack.c.bf16 %v3546_v31, %v3545_v22  ;;  %v3719_v22 = vld [vmem:[#allocation2 + $0x260] sm:$0xff] }
 0x564   :  { %6247 = vmatmul.mubr.msk.f32.gmra.mrb[24].mxu0 %vm2207_vm9, %v7861_v15 }
 0x565   :  { %6249 = vmatprep.mubr.msk.f32.mxu0 %vm2207_vm9, %v7863_v0  ;;  %6264 = vmatpush3.msra.mxu0 %v3037_v7  ;;  %v3215_v7 = vrot.slane %v7848_v18, 3 }
 0x566   :  { %6682 = vmatprep.subr.bf16.mxu0 %v6681_v10 }
 0x567   :  { %v3216_v46 = vsel %vm701_vm8, %v3213_v63, %v3215_v7  ;;  %v3218_v27 = vsel %vm701_vm8, %v3215_v7, %v3217_v8 }
 0x568   :  { %6250 = vmatmul.mubr.msk.f32.gmra.mrb[26].mxu0 %vm2207_vm9, %v7883_v52 }
 0x569   :  { %6252 = vmatprep.mubr.msk.f32.mxu0 %vm2207_vm9, %v7885_v53 }
 0x56c   :  { %6253 = vmatmul.mubr.msk.f32.gmra.mrb[28].mxu0 %vm2207_vm9, %v7881_v45 }
 0x56d   :  { %6265 = vmatprep.mubr.msk.f32.mxu0 %vm2207_vm9, %v3040_v33  ;;  %v6697_v33 = vpack.c.bf16 %v3544_v60, %v3543_v56  ;;  %v3391_v56 = vrot.slane %v7883_v52, 4 }
 0x570   :  { %6266 = vmatmul.mubr.msk.f32.vlgmr.msra.gmra.mrb[20].mxu0 %vm2207_vm9, %v3042_v43 }
 0x571   :  { %6684 = vmatpush3.bf16.msra.mxu0 %v6681_v10  ;;  %6268 = vmatprep.mubr.msk.f32.mxu0 %vm2207_vm9, %v3044_v2  ;;  %v3219_v10 = vrot.slane %v7863_v0, 3  ;;  %v4348_v2 = vld [vmem:[#allocation2 + $0x2e0] sm:$0xff] }
 0x572   :  { %6686 = vmatprep.subr.bf16.mxu0 %v6685_v30  ;;  %v6737_v35 = vpack.c.bf16 %v4349_v3, %v4348_v2  ;;  %v3549_v2 = vrot.slane %v7833_v49, 5 }
 0x573   :  { %v3220_v29 = vsel %vm701_vm8, %v3217_v8, %v3219_v10  ;;  %v3222_v43 = vsel %vm701_vm8, %v3219_v10, %v3221_v32  ;;  %v3547_v8 = vld [vmem:[#allocation2 + $0x238] sm:$0xff]  ;;  %v3716_v10 = vld [vmem:[#allocation2 + $0x248] sm:$0xff] }
 0x574   :  { %6269 = vmatmul.mubr.msk.f32.gmra.mrb[22].mxu0 %vm2207_vm9, %v3046_v26  ;;  %v4350_v26 = vld [vmem:[#allocation2 + $0x2f0] sm:$0xff]  ;;  %6738 = vmatprep.subr.bf16.mxu1 %v6737_v35 }
 0x575   :  { %6271 = vmatprep.mubr.msk.f32.mxu0 %vm2207_vm9, %v3048_v9  ;;  %6688 = vmatpush3.bf16.msra.mxu0 %v6685_v30  ;;  %v3223_v30 = vrot.slane %v7885_v53, 3  ;;  %v4353_v9 = vld [vmem:[#allocation2 + $0x308] sm:$0xff] }
 0x576   :  { %6288 = vmatprep.subr.mxu0 %v3207_v50  ;;  %6740 = vmatpush3.bf16.msra.mxu1 %v6737_v35  ;;  %v6745_v1 = vpack.c.bf16 %v4353_v9, %v4352_v62  ;;  %v3717_v35 = vld [vmem:[#allocation2 + $0x250] sm:$0xff]  ;;  %v3554_v62 = vrot.slane %v7846_v34, 5 }
 0x577   :  { %v3224_v16 = vsel %vm701_vm8, %v3221_v32, %v3223_v30  ;;  %v3393_v32 = vrot.slane %v7885_v53, 4 }
 0x578   :  { %6272 = vmatmul.mubr.msk.f32.gmra.mrb[24].mxu0 %vm2207_vm9, %v3050_v25  ;;  %v3379_v25 = vrot.slane %v7837_v54, 4 }
 0x579   :  { %6274 = vmatprep.mubr.msk.f32.mxu0 %vm2207_vm9, %v3052_v36  ;;  %6289 = vmatpush3.msra.mxu0 %v3207_v50  ;;  %v4351_v50 = vld [vmem:[#allocation2 + $0x2f8] sm:$0xff]  ;;  %v3378_v36 = vrot.slane %v7833_v49, 4 }
 0x57a   :  { %6690 = vmatprep.subr.bf16.mxu0 %v6689_v20  ;;  %v6741_v61 = vpack.c.bf16 %v4351_v50, %v4350_v26  ;;  %v3552_v26 = vrot.slane %v7839_v40, 5  ;;  %v3718_v50 = vld [vmem:[#allocation2 + $0x258] sm:$0xff] }
 0x57b   :  { %v3380_v48 = vsel %vm83_vm1, %v3378_v36, %v3379_v25  ;;  %v6709_v9 = vpack.c.bf16 %v3718_v50, %v3717_v35  ;;  %v3560_v36 = vrot.slane %v7863_v0, 5  ;;  %v3733_v35 = vrot.slane %v7883_v52, 6 }
 0x57c   :  { %6275 = vmatmul.mubr.msk.f32.gmra.mrb[26].mxu0 %vm2207_vm9, %v3054_v39  ;;  %6742 = vmatprep.subr.bf16.mxu1 %v6741_v61  ;;  %v3227_v39 = vsel %vm701_vm8, %v3225_v47, %v7431_v51  ;;  %v3385_v51 = vrot.slane %v7848_v18, 4 }
 0x57d   :  { %6277 = vmatprep.mubr.msk.f32.mxu0 %vm2207_vm9, %v3056_v21  ;;  %v3381_v21 = vrot.slane %v7839_v40, 4  ;;  %6744 = vmatpush3.bf16.msra.mxu1 %v6741_v61 }
 0x57e   :  { %6746 = vmatprep.subr.bf16.mxu1 %v6745_v1  ;;  %v3386_v7 = vsel %vm83_vm1, %v3383_v11, %v3385_v51 }
 0x57f   :  { %v3382_v63 = vsel %vm83_vm1, %v3379_v25, %v3381_v21  ;;  %v3558_v25 = vrot.slane %v7861_v15, 5 }
 0x580   :  { %6278 = vmatmul.mubr.msk.f32.gmra.mrb[28].mxu0 %vm2207_vm9, %v3057_v23  ;;  %v4355_v23 = vld [vmem:[#allocation2 + $0x318] sm:$0xff] }
 0x581   :  { %6290 = vmatprep.mubr.msk.f32.mxu0 %vm2207_vm9, %v3210_v38  ;;  %v6749_v38 = vpack.c.bf16 %v4355_v23, %v4354_v24  ;;  %6748 = vmatpush3.bf16.msra.mxu1 %v6745_v1  ;;  %v3562_v24 = vrot.slane %v7883_v52, 5 }
 0x583   :  { %6750 = vmatprep.subr.bf16.mxu1 %v6749_v38 }
 0x584   :  { %6291 = vmatmul.mubr.msk.f32.vlgmr.msra.gmra.mrb[20].mxu0 %vm2207_vm9, %v3212_v6  ;;  %v3387_v6 = vrot.slane %v7861_v15, 4 }
 0x585   :  { %6692 = vmatpush3.bf16.msra.mxu0 %v6689_v20  ;;  %6293 = vmatprep.mubr.msk.f32.mxu0 %vm2207_vm9, %v3214_v44  ;;  %v3226_v20 = vsel %vm701_vm8, %v3223_v30, %v3225_v47  ;;  %v3389_v44 = vrot.slane %v7863_v0, 4  ;;  %v3394_v30 = vsel %vm83_vm1, %v3391_v56, %v3393_v32  ;;  %v3550_v47 = vrot.slane %v7837_v54, 5 }
 0x586   :  { %6694 = vmatprep.subr.bf16.mxu0 %v6693_v4  ;;  %6752 = vmatpush3.bf16.msra.mxu1 %v6749_v38  ;;  %v3566_v38 = vrot.slane %v7881_v45, 5 }
 0x587   :  { %v3551_v61 = vsel %vm3548_vm10, %v3549_v2, %v3550_v47  ;;  %v4058_v2 = vld [vmem:[#allocation2 + $0x290] sm:$0xff] }
 0x588   :  { %6294 = vmatmul.mubr.msk.f32.gmra.mrb[22].mxu0 %vm2207_vm9, %v3216_v46  ;;  %v3715_v46 = vld [vmem:[#allocation2 + $0x240] sm:$0xff] }
 0x589   :  { %6296 = vmatprep.mubr.msk.f32.mxu0 %vm2207_vm9, %v3218_v27  ;;  %6696 = vmatpush3.bf16.msra.mxu0 %v6693_v4  ;;  %v3384_v4 = vsel %vm83_vm1, %v3381_v21, %v3383_v11  ;;  %v6705_v60 = vpack.c.bf16 %v3716_v10, %v3715_v46  ;;  %v3390_v27 = vsel %vm83_vm1, %v3387_v6, %v3389_v44  ;;  %v3887_v21 = vld [vmem:[#allocation2 + $0x270] sm:$0xff]  ;;  %v3564_v11 = vrot.slane %v7885_v53, 5  ;;  %v3888_v46 = vld [vmem:[#allocation2 + $0x278] sm:$0xff]  ;;  %v3889_v10 = vld [vmem:[#allocation2 + $0x280] sm:$0xff] }
 0x58a   :  { %6313 = vmatprep.subr.mxu0 %v3377_v13 }
 0x58c   :  { %6297 = vmatmul.mubr.msk.f32.gmra.mrb[24].mxu0 %vm2207_vm9, %v3220_v29  ;;  %v3395_v29 = vrot.slane %v7881_v45, 4 }
 0x58d   :  { %6299 = vmatprep.mubr.msk.f32.mxu0 %vm2207_vm9, %v3222_v43  ;;  %6314 = vmatpush3.msra.mxu0 %v3377_v13  ;;  %v3388_v13 = vsel %vm83_vm1, %v3385_v51, %v3387_v6  ;;  %v3568_v51 = vrot.slane %v7080_v58, 5  ;;  %v3721_v6 = vrot.slane %v7837_v54, 6 }
 0x58e   :  { %6698 = vmatprep.subr.bf16.mxu0 %v6697_v33  ;;  %v3396_v43 = vsel %vm83_vm1, %v3393_v32, %v3395_v29  ;;  %v3397_v3 = vsel %vm83_vm1, %v3395_v29, %v7455_v5  ;;  %v3555_v5 = vsel %vm3548_vm10, %v3552_v26, %v3554_v62  ;;  %v3727_v32 = vrot.slane %v7848_v18, 6 }
 0x58f   :  { %v3729_v29 = vrot.slane %v7861_v15, 6 }
 0x590   :  { %6300 = vmatmul.mubr.msk.f32.gmra.mrb[26].mxu0 %vm2207_vm9, %v3224_v16  ;;  %v3553_v16 = vsel %vm3548_vm10, %v3550_v47, %v3552_v26  ;;  %v3890_v47 = vld [vmem:[#allocation2 + $0x288] sm:$0xff] }
 0x591   :  { %6302 = vmatprep.mubr.msk.f32.mxu0 %vm2207_vm9, %v3226_v20  ;;  %v3556_v20 = vrot.slane %v7848_v18, 5  ;;  %v3730_v26 = vsel %vm270_vm2, %v3727_v32, %v3729_v29 }
 0x593   :  { %v3557_v1 = vsel %vm3548_vm10, %v3554_v62, %v3556_v20  ;;  %v3559_v31 = vsel %vm3548_vm10, %v3556_v20, %v3558_v25  ;;  %v3735_v62 = vrot.slane %v7885_v53, 6 }
 0x594   :  { %6303 = vmatmul.mubr.msk.f32.gmra.mrb[28].mxu0 %vm2207_vm9, %v3227_v39  ;;  %v3886_v39 = vld [vmem:[#allocation2 + $0x268] sm:$0xff] }
 0x595   :  { %6315 = vmatprep.mubr.msk.f32.mxu0 %vm2207_vm9, %v3380_v48  ;;  %v6713_v23 = vpack.c.bf16 %v3887_v21, %v3886_v39  ;;  %v3561_v48 = vsel %vm3548_vm10, %v3558_v25, %v3560_v36  ;;  %v3736_v20 = vsel %vm270_vm2, %v3733_v35, %v3735_v62  ;;  %v3895_v39 = vrot.slane %v7839_v40, 7  ;;  %v4060_v21 = vld [vmem:[#allocation2 + $0x2a0] sm:$0xff] }
 0x598   :  { %6316 = vmatmul.mubr.msk.f32.vlgmr.msra.gmra.mrb[20].mxu0 %vm2207_vm9, %v3382_v63  ;;  %v3565_v63 = vsel %vm3548_vm10, %v3562_v24, %v3564_v11 }
 0x599   :  { %6700 = vmatpush3.bf16.msra.mxu0 %v6697_v33  ;;  %6318 = vmatprep.mubr.msk.f32.mxu0 %vm2207_vm9, %v3384_v4  ;;  %v3392_v33 = vsel %vm83_vm1, %v3389_v44, %v3391_v56  ;;  %v3567_v4 = vsel %vm3548_vm10, %v3564_v11, %v3566_v38  ;;  %v3569_v44 = vsel %vm3548_vm10, %v3566_v38, %v3568_v51  ;;  %v3725_v56 = vrot.slane %v7846_v34, 6 }
 0x59a   :  { %6702 = vmatprep.subr.bf16.mxu0 %v6701_v28  ;;  %v3901_v38 = vrot.slane %v7861_v15, 7  ;;  %v3903_v51 = vrot.slane %v7863_v0, 7 }
 0x59c   :  { %6319 = vmatmul.mubr.msk.f32.gmra.mrb[22].mxu0 %vm2207_vm9, %v3386_v7  ;;  %v3720_v7 = vrot.slane %v7833_v49, 6 }
 0x59d   :  { %6321 = vmatprep.mubr.msk.f32.mxu0 %vm2207_vm9, %v3388_v13  ;;  %6704 = vmatpush3.bf16.msra.mxu0 %v6701_v28  ;;  %v3563_v28 = vsel %vm3548_vm10, %v3560_v36, %v3562_v24  ;;  %v3892_v36 = vrot.slane %v7833_v49, 7 }
 0x59e   :  { %6338 = vmatprep.subr.mxu0 %v3547_v8  ;;  %v3722_v13 = vsel %vm270_vm2, %v3720_v7, %v3721_v6  ;;  %v4191_v7 = vld [vmem:[#allocation2 + $0x2c0] sm:$0xff] }
 0x5a0   :  { %6322 = vmatmul.mubr.msk.f32.gmra.mrb[24].mxu0 %vm2207_vm9, %v3390_v27 }
 0x5a1   :  { %6324 = vmatprep.mubr.msk.f32.mxu0 %vm2207_vm9, %v3392_v33  ;;  %6339 = vmatpush3.msra.mxu0 %v3547_v8  ;;  %v3723_v8 = vrot.slane %v7839_v40, 6 }
 0x5a2   :  { %6706 = vmatprep.subr.bf16.mxu0 %v6705_v60 }
 0x5a3   :  { %v3724_v27 = vsel %vm270_vm2, %v3721_v6, %v3723_v8  ;;  %v3726_v33 = vsel %vm270_vm2, %v3723_v8, %v3725_v56  ;;  %v4190_v6 = vld [vmem:[#allocation2 + $0x2b8] sm:$0xff]  ;;  %v3905_v8 = vrot.slane %v7883_v52, 7 }
 0x5a4   :  { %6325 = vmatmul.mubr.msk.f32.gmra.mrb[26].mxu0 %vm2207_vm9, %v3394_v30  ;;  %v3728_v30 = vsel %vm270_vm2, %v3725_v56, %v3727_v32  ;;  %v3911_v32 = vrot.slane %v7080_v58, 7 }
 0x5a5   :  { %6327 = vmatprep.mubr.msk.f32.mxu0 %vm2207_vm9, %v3396_v43  ;;  %v3731_v43 = vrot.slane %v7863_v0, 6  ;;  %v3906_v56 = vsel %vm3891_vm11, %v3903_v51, %v3905_v8 }
 0x5a8   :  { %6328 = vmatmul.mubr.msk.f32.gmra.mrb[28].mxu0 %vm2207_vm9, %v3397_v3  ;;  %v4059_v3 = vld [vmem:[#allocation2 + $0x298] sm:$0xff] }
 0x5a9   :  { %6340 = vmatprep.mubr.msk.f32.mxu0 %vm2207_vm9, %v3551_v61  ;;  %v6721_v50 = vpack.c.bf16 %v4059_v3, %v4058_v2  ;;  %v3732_v61 = vsel %vm270_vm2, %v3729_v29, %v3731_v43  ;;  %v4194_v2 = vld [vmem:[#allocation2 + $0x2d8] sm:$0xff] }
 0x5ac   :  { %6341 = vmatmul.mubr.msk.f32.vlgmr.msra.gmra.mrb[20].mxu0 %vm2207_vm9, %v3553_v16  ;;  %v3737_v16 = vrot.slane %v7881_v45, 6 }
 0x5ad   :  { %6708 = vmatpush3.bf16.msra.mxu0 %v6705_v60  ;;  %6343 = vmatprep.mubr.msk.f32.mxu0 %vm2207_vm9, %v3555_v5  ;;  %v6717_v60 = vpack.c.bf16 %v3889_v10, %v3888_v46  ;;  %v3739_v5 = vrot.slane %v7080_v58, 6  ;;  %v6729_v46 = vpack.c.bf16 %v4191_v7, %v4190_v6  ;;  %v3904_v10 = vsel %vm3891_vm11, %v3901_v38, %v3903_v51  ;;  %v4575_v51 = vld [vmem:[#allocation2 + $0x360] sm:$0xff]  ;;  %v4577_v7 = vld [vmem:[#allocation2 + $0x370] sm:$0xff] }
 0x5ae   :  { %6710 = vmatprep.subr.bf16.mxu0 %v6709_v9  ;;  %v3738_v25 = vsel %vm270_vm2, %v3735_v62, %v3737_v16 }
 0x5b0   :  { %6344 = vmatmul.mubr.msk.f32.gmra.mrb[22].mxu0 %vm2207_vm9, %v3557_v1  ;;  %v3893_v1 = vrot.slane %v7837_v54, 7 }
 0x5b1   :  { %6346 = vmatprep.mubr.msk.f32.mxu0 %vm2207_vm9, %v3559_v31  ;;  %6712 = vmatpush3.bf16.msra.mxu0 %v6709_v9  ;;  %v3734_v9 = vsel %vm270_vm2, %v3731_v43, %v3733_v35  ;;  %v4061_v31 = vld [vmem:[#allocation2 + $0x2a8] sm:$0xff]  ;;  %v4193_v43 = vld [vmem:[#allocation2 + $0x2d0] sm:$0xff] }
 0x5b2   :  { %6363 = vmatprep.subr.mxu0 %v3719_v22  ;;  %v3894_v24 = vsel %vm3891_vm11, %v3892_v36, %v3893_v1  ;;  %v3896_v11 = vsel %vm3891_vm11, %v3893_v1, %v3895_v39 }
 0x5b4   :  { %6347 = vmatmul.mubr.msk.f32.gmra.mrb[24].mxu0 %vm2207_vm9, %v3561_v48  ;;  %v6725_v48 = vpack.c.bf16 %v4061_v31, %v4060_v21 }
 0x5b5   :  { %6349 = vmatprep.mubr.msk.f32.mxu0 %vm2207_vm9, %v3563_v28  ;;  %6364 = vmatpush3.msra.mxu0 %v3719_v22  ;;  %v3740_v22 = vsel %vm270_vm2, %v3737_v16, %v3739_v5  ;;  %v3899_v28 = vrot.slane %v7848_v18, 7 }
 0x5b6   :  { %6714 = vmatprep.subr.bf16.mxu0 %v6713_v23 }
 0x5b8   :  { %6350 = vmatmul.mubr.msk.f32.gmra.mrb[26].mxu0 %vm2207_vm9, %v3565_v63 }
 0x5b9   :  { %6352 = vmatprep.mubr.msk.f32.mxu0 %vm2207_vm9, %v3567_v4  ;;  %v4062_v4 = vld [vmem:[#allocation2 + $0x2b0] sm:$0xff] }
 0x5bc   :  { %6353 = vmatmul.mubr.msk.f32.gmra.mrb[28].mxu0 %vm2207_vm9, %v3569_v44  ;;  %v3902_v44 = vsel %vm3891_vm11, %v3899_v28, %v3901_v38  ;;  %v4574_v38 = vld [vmem:[#allocation2 + $0x358] sm:$0xff] }
 0x5bd   :  { %6365 = vmatprep.mubr.msk.f32.mxu0 %vm2207_vm9, %v3722_v13  ;;  %v3907_v13 = vrot.slane %v7885_v53, 7 }
 0x5c0   :  { %6366 = vmatmul.mubr.msk.f32.vlgmr.msra.gmra.mrb[20].mxu0 %vm2207_vm9, %v3724_v27  ;;  %v3908_v27 = vsel %vm3891_vm11, %v3905_v8, %v3907_v13 }
 0x5c1   :  { %6716 = vmatpush3.bf16.msra.mxu0 %v6713_v23  ;;  %6368 = vmatprep.mubr.msk.f32.mxu0 %vm2207_vm9, %v3726_v33  ;;  %v3897_v23 = vrot.slane %v7846_v34, 7 }
 0x5c2   :  { %6718 = vmatprep.subr.bf16.mxu0 %v6717_v60 }
 0x5c3   :  { %v3898_v49 = vsel %vm3891_vm11, %v3895_v39, %v3897_v23  ;;  %v3900_v63 = vsel %vm3891_vm11, %v3897_v23, %v3899_v28 }
 0x5c4   :  { %6369 = vmatmul.mubr.msk.f32.gmra.mrb[22].mxu0 %vm2207_vm9, %v3728_v30  ;;  %v4192_v30 = vld [vmem:[#allocation2 + $0x2c8] sm:$0xff] }
 0x5c5   :  { %6371 = vmatprep.mubr.msk.f32.mxu0 %vm2207_vm9, %v3730_v26  ;;  %6720 = vmatpush3.bf16.msra.mxu0 %v6717_v60  ;;  %v3909_v60 = vrot.slane %v7881_v45, 7 }
 0x5c6   :  { %6388 = vmatprep.subr.mxu0 %v3890_v47 }
 0x5c7   :  { %v3910_v33 = vsel %vm3891_vm11, %v3907_v13, %v3909_v60  ;;  %v3912_v29 = vsel %vm3891_vm11, %v3909_v60, %v3911_v32  ;;  %v4733_v13 = vld [vmem:[%s8340_s1 + $0x20] sm:$0xff]  ;;  %v4730_v60 = vld [vmem:[%s8340_s1 + $0x8] sm:$0xff]  ;;  %v4732_v32 = vld [vmem:[%s8340_s1 + $0x18] sm:$0xff] }
 0x5c8   :  { %6372 = vmatmul.mubr.msk.f32.gmra.mrb[24].mxu0 %vm2207_vm9, %v3732_v61 }
 0x5c9   :  { %6374 = vmatprep.mubr.msk.f32.mxu0 %vm2207_vm9, %v3734_v9  ;;  %6389 = vmatpush3.msra.mxu0 %v3890_v47  ;;  %v6733_v47 = vpack.c.bf16 %v4193_v43, %v4192_v30  ;;  %v4859_v30 = vld [vmem:[%s8340_s1 + $0x40] sm:$0xff]  ;;  %v5469_v43 = vld [vmem:[%s8342_s3 + $0x30] ss:$0 sm:$0xff] }
 0x5ca   :  { %6722 = vmatprep.subr.bf16.mxu0 %v6721_v50 }
 0x5cc   :  { %6375 = vmatmul.mubr.msk.f32.gmra.mrb[26].mxu0 %vm2207_vm9, %v3736_v20 }
 0x5cd   :  { %6377 = vmatprep.mubr.msk.f32.mxu0 %vm2207_vm9, %v3738_v25 }
 0x5d0   :  { %6378 = vmatmul.mubr.msk.f32.gmra.mrb[28].mxu0 %vm2207_vm9, %v3740_v22 }
 0x5d1   :  { %6390 = vmatprep.mubr.msk.f32.mxu0 %vm2207_vm9, %v3894_v24 }
 0x5d4   :  { %6391 = vmatmul.mubr.msk.f32.vlgmr.msra.gmra.mrb[20].mxu0 %vm2207_vm9, %v3896_v11 }
 0x5d5   :  { %6724 = vmatpush3.bf16.msra.mxu0 %v6721_v50  ;;  %6393 = vmatprep.mubr.msk.f32.mxu0 %vm2207_vm9, %v3898_v49  ;;  %v4573_v49 = vld [vmem:[#allocation2 + $0x350] sm:$0xff] }
 0x5d6   :  { %6726 = vmatprep.subr.bf16.mxu0 %v6725_v48 }
 0x5d8   :  { %6394 = vmatmul.mubr.msk.f32.gmra.mrb[22].mxu0 %vm2207_vm9, %v3900_v63  ;;  %v6765_v63 = vpack.c.bf16 %v4574_v38, %v4573_v49 }
 0x5d9   :  { %6396 = vmatprep.mubr.msk.f32.mxu0 %vm2207_vm9, %v3902_v44  ;;  %6728 = vmatpush3.bf16.msra.mxu0 %v6725_v48  ;;  %v4578_v44 = vld [vmem:[#allocation2 + $0x378] sm:$0xff] }
 0x5da   :  { %6413 = vmatprep.subr.mxu0 %v4062_v4  ;;  %v6773_v8 = vpack.c.bf16 %v4578_v44, %v4577_v7 }
 0x5dc   :  { %6397 = vmatmul.mubr.msk.f32.gmra.mrb[24].mxu0 %vm2207_vm9, %v3904_v10  ;;  %v4856_v10 = vld [vmem:[%s8340_s1 + $0x28] sm:$0xff] }
 0x5dd   :  { %6399 = vmatprep.mubr.msk.f32.mxu0 %vm2207_vm9, %v3906_v56  ;;  %6414 = vmatpush3.msra.mxu0 %v4062_v4  ;;  %v4576_v4 = vld [vmem:[#allocation2 + $0x368] sm:$0xff] }
 0x5de   :  { %6730 = vmatprep.subr.bf16.mxu0 %v6729_v46  ;;  %v6769_v6 = vpack.c.bf16 %v4576_v4, %v4575_v51  ;;  %4866 = vrot.lane.b32.xlu1 %v4856_v10, %s7081_s10  ;;  %v4860_v56 = vld [vmem:[%s8340_s1 + $0x48] sm:$0xff] }
 0x5e0   :  { %6400 = vmatmul.mubr.msk.f32.gmra.mrb[26].mxu0 %vm2207_vm9, %v3908_v27  ;;  %v4731_v27 = vld [vmem:[%s8340_s1 + $0x10] sm:$0xff] }
 0x5e1   :  { %6402 = vmatprep.mubr.msk.f32.mxu0 %vm2207_vm9, %v3910_v33  ;;  %v4857_v33 = vld [vmem:[%s8340_s1 + $0x30] sm:$0xff] }
 0x5e2   :  { %4874 = vrot.lane.b32.xlu1 %v4860_v56, %s7081_s10 }
 0x5e4   :  { %6403 = vmatmul.mubr.msk.f32.gmra.mrb[28].mxu0 %vm2207_vm9, %v3912_v29  ;;  %v4858_v29 = vld [vmem:[%s8340_s1 + $0x38] sm:$0xff] }
 0x5e5   :  { %6415 = vmatprep.mubr.msk.f32.mxu0 %vm2207_vm9, %v7837_v54  ;;  %v4356_v54 = vld [vmem:[#allocation2 + $0x320] sm:$0xff] }
 0x5e6   :  { %4743 = vrot.lane.b32.xlu1 %v4731_v27, %s7081_s10 }
 0x5e8   :  { %6416 = vmatmul.mubr.msk.f32.vlgmr.msra.gmra.mrb[20].mxu0 %vm2207_vm9, %v7839_v40  ;;  %v4357_v40 = vld [vmem:[#allocation2 + $0x328] sm:$0xff] }
 0x5e9   :  { %6732 = vmatpush3.bf16.msra.mxu0 %v6729_v46  ;;  %6418 = vmatprep.mubr.msk.f32.mxu0 %vm2207_vm9, %v7846_v34  ;;  %v6753_v34 = vpack.c.bf16 %v4357_v40, %v4356_v54  ;;  %v4729_v46 = vld [vmem:[%s8340_s1] sm:$0xff] }
 0x5ea   :  { %6734 = vmatprep.subr.bf16.mxu0 %v6733_v47  ;;  %4739 = vrot.lane.b32.xlu0 %v4729_v46, %s7081_s10 }
 0x5eb   :  { %6754 = vmatprep.subr.bf16.mxu1 %v6753_v34  ;;  %4868 = vrot.lane.b32.xlu1 %v4857_v33, %s7081_s10 }
 0x5ec   :  { %6419 = vmatmul.mubr.msk.f32.gmra.mrb[22].mxu0 %vm2207_vm9, %v7848_v18  ;;  %6756 = vmatpush3.bf16.msra.mxu1 %v6753_v34  ;;  %v4569_v18 = vld [vmem:[#allocation2 + $0x330] sm:$0xff] }
 0x5ed   :  { %6421 = vmatprep.mubr.msk.f32.mxu0 %vm2207_vm9, %v7861_v15  ;;  %6736 = vmatpush3.bf16.msra.mxu0 %v6733_v47 }
 0x5ee   :  { %6438 = vmatprep.subr.mxu0 %v4194_v2  ;;  %4747 = vrot.lane.b32.xlu0 %v4733_v13, %s7081_s10 }
 0x5ef   :  { %4872 = vrot.lane.b32.xlu1 %v4859_v30, %s7081_s10 }
 0x5f0   :  { %6422 = vmatmul.mubr.msk.f32.gmra.mrb[24].mxu0 %vm2207_vm9, %v7863_v0  ;;  %v5468_v0 = vld [vmem:[%s8342_s3 + $0x28] ss:$0 sm:$0xff] }
 0x5f1   :  { %6424 = vmatprep.mubr.msk.f32.mxu0 %vm2207_vm9, %v7883_v52  ;;  %6439 = vmatpush3.msra.mxu0 %v4194_v2 }
 0x5f2   :  { %4741 = vrot.lane.b32.xlu0 %v4730_v60, %s7081_s10 }
 0x5f4   :  { %6425 = vmatmul.mubr.msk.f32.gmra.mrb[26].mxu0 %vm2207_vm9, %v7885_v53  ;;  %v4571_v53 = vld [vmem:[#allocation2 + $0x340] sm:$0xff] }
 0x5f5   :  { %6427 = vmatprep.mubr.msk.f32.mxu0 %vm2207_vm9, %v7881_v45 }
 0x5f6   :  { %4745 = vrot.lane.b32.xlu0 %v4732_v32, %s7081_s10 }
 0x5f8   :  { %6428 = vmatmul.mubr.f32.gmra.mrb[28].mxu0 %v7080_v58 }
 0x5f9   :  { %6440 = vmatprep.mubr.msk.f32.mxu0 %vm2207_vm9, %v7855_v14  ;;  %v4570_v14 = vld [vmem:[#allocation2 + $0x338] sm:$0xff] }
 0x5fa   :  { %v6757_v15 = vpack.c.bf16 %v4570_v14, %v4569_v18  ;;  %4870 = vrot.lane.b32.xlu0 %v4858_v29, %s7081_s10 }
 0x5fc   :  { %6441 = vmatmul.mubr.msk.f32.vlgmr.msra.gmra.mrb[20].mxu0 %vm2207_vm9, %v7868_v17  ;;  %6758 = vmatprep.subr.bf16.mxu1 %v6757_v15 }
 0x5fd   :  { %6443 = vmatprep.mubr.msk.f32.mxu0 %vm2207_vm9, %v7875_v37 }
 0x600   :  { %6444 = vmatmul.mubr.msk.f32.gmra.mrb[22].mxu0 %vm2207_vm9, %v7888_v12  ;;  %v4572_v12 = vld [vmem:[#allocation2 + $0x348] sm:$0xff] }
 0x601   :  { %6446 = vmatprep.mubr.msk.f32.mxu0 %vm2207_vm9, %v7891_v41  ;;  %v6761_v3 = vpack.c.bf16 %v4572_v12, %v4571_v53 }
 0x604   :  { %6447 = vmatmul.mubr.msk.f32.gmra.mrb[24].mxu0 %vm2207_vm9, %v7901_v19 }
 0x605   :  { %6449 = vmatprep.mubr.msk.f32.mxu0 %vm2207_vm9, %v7904_v42 }
 0x608   :  { %6450 = vmatmul.mubr.msk.f32.gmra.mrb[26].mxu0 %vm2207_vm9, %v7911_v55 }
 0x609   :  { %6452 = vmatprep.mubr.msk.f32.mxu0 %vm2207_vm9, %v7917_v57 }
 0x60c   :  { %6453 = vmatmul.mubr.msk.f32.gmra.mrb[28].mxu0 %vm2207_vm9, %v7310_v59 }
 0x65c   :  { %v4740_v30 = vpop.permute.xlu0 %4739 }
 0x6cf   :  { %v6442_v17 = vpop.f32.mrb[20].mxu0 }
 0x6d0   :  { %v4329_v37 = vadd.f32 %v6442_v17, %v5468_v0  ;;  %v4264_v45 = vpop.f32.mrb[21].mxu0 }
 0x6d1   :  { %v4328_v52 = vadd.f32 %v5468_v0, %v4264_v45 }
 0x6d2   :  { %v4339_v42 = vmax.f32 %v4329_v37, 0.0 }
 0x6d3   :  { %v4338_v41 = vmax.f32 %v4328_v52, 0.0  ;;  %v6445_v19 = vpop.f32.mrb[22].mxu0 }
 0x6d4   :  { %v4331_v55 = vadd.f32 %v6445_v19, %v5468_v0  ;;  %v4274_v57 = vpop.f32.mrb[23].mxu0 }
 0x6d5   :  { %v4330_v26 = vadd.f32 %v5468_v0, %v4274_v57  ;;  %6475 = vmatprep.mubr.msk.f32.mxu1 %vm4363_vm12, %v4338_v41 }
 0x6d6   :  { %6476 = vmatmul.mubr.msk.f32.vlgmr.msra.gmra.mrb[40].mxu1 %vm4363_vm12, %v4339_v42  ;;  %v4341_v61 = vmax.f32 %v4331_v55, 0.0 }
 0x6d7   :  { %v4340_v35 = vmax.f32 %v4330_v26, 0.0  ;;  %v6448_v50 = vpop.f32.mrb[24].mxu0  ;;  %6760 = vmatpush3.bf16.msra.mxu1 %v6757_v15 }
 0x6d8   :  { %v4333_v62 = vadd.f32 %v6448_v50, %v5468_v0  ;;  %v4284_v9 = vpop.f32.mrb[25].mxu0  ;;  %6762 = vmatprep.subr.bf16.mxu1 %v6761_v3 }
 0x6d9   :  { %v4332_v16 = vadd.f32 %v5468_v0, %v4284_v9  ;;  %6478 = vmatprep.mubr.msk.f32.mxu1 %vm4363_vm12, %v4340_v35 }
 0x6da   :  { %6479 = vmatmul.mubr.msk.f32.gmra.mrb[42].mxu1 %vm4363_vm12, %v4341_v61  ;;  %v4343_v25 = vmax.f32 %v4333_v62, 0.0 }
 0x6db   :  { %v4342_v20 = vmax.f32 %v4332_v16, 0.0  ;;  %v6451_v5 = vpop.f32.mrb[26].mxu0  ;;  %6764 = vmatpush3.bf16.msra.mxu1 %v6761_v3 }
 0x6dc   :  { %v4335_v1 = vadd.f32 %v6451_v5, %v5468_v0  ;;  %v4294_v36 = vpop.f32.mrb[27].mxu0  ;;  %6766 = vmatprep.subr.bf16.mxu1 %v6765_v63 }
 0x6dd   :  { %v4334_v22 = vadd.f32 %v5468_v0, %v4294_v36  ;;  %6481 = vmatprep.mubr.msk.f32.mxu1 %vm4363_vm12, %v4342_v20 }
 0x6de   :  { %6482 = vmatmul.mubr.msk.f32.gmra.mrb[44].mxu1 %vm4363_vm12, %v4343_v25  ;;  %v4345_v31 = vmax.f32 %v4335_v1, 0.0 }
 0x6df   :  { %v4344_v39 = vmax.f32 %v4334_v22, 0.0  ;;  %v6454_v21 = vpop.f32.mrb[28].mxu0  ;;  %6768 = vmatpush3.bf16.msra.mxu1 %v6765_v63 }
 0x6e0   :  { %v4337_v24 = vadd.f32 %v6454_v21, %v5468_v0  ;;  %v4304_v23 = vpop.f32.mrb[29].mxu0  ;;  %6770 = vmatprep.subr.bf16.mxu1 %v6769_v6 }
 0x6e1   :  { %v4336_v48 = vadd.f32 %v5468_v0, %v4304_v23  ;;  %6484 = vmatprep.mubr.msk.f32.mxu1 %vm4363_vm12, %v4344_v39 }
 0x6e2   :  { %6485 = vmatmul.mubr.msk.f32.gmra.mrb[46].mxu1 %vm4363_vm12, %v4345_v31  ;;  %v4347_v28 = vmax.f32 %v4337_v24, 0.0 }
 0x6e3   :  { %v4346_v11 = vmax.f32 %v4336_v48, 0.0  ;;  %6772 = vmatpush3.bf16.msra.mxu1 %v6769_v6 }
 0x6e4   :  { %6774 = vmatprep.subr.bf16.mxu1 %v6773_v8 }
 0x6e5   :  { %6487 = vmatprep.mubr.msk.f32.mxu1 %vm4363_vm12, %v4346_v11 }
 0x6e6   :  { %6488 = vmatmul.mubr.msk.f32.gmra.mrb[48].mxu1 %vm4363_vm12, %v4347_v28 }
 0x6e7   :  { %6776 = vmatpush3.bf16.msra.mxu1 %v6773_v8 }
 0x7a9   :  { %v6477_v47 = vpop.f32.mrb[40].mxu1 }
 0x7aa   :  { %v4466_v2 = vadd.f32 %v6477_v47, %v5469_v43  ;;  %v4460_v54 = vpop.f32.mrb[41].mxu1  ;;  %v4867_v47 = vpop.permute.xlu1 %4866 }
 0x7ab   :  { %v4461_v40 = vadd.f32 %v5469_v43, %v4460_v54 }
 0x7ac   :  { %v4520_v34 = vrot.slane %v4466_v2, 1 }
 0x7ad   :  { %v4519_v18 = vrot.slane %v4461_v40, 1  ;;  %v6480_v14 = vpop.f32.mrb[42].mxu1 }
 0x7ae   :  { %v4476_v15 = vadd.f32 %v6480_v14, %v5469_v43  ;;  %v4470_v0 = vpop.f32.mrb[43].mxu1 }
 0x7af   :  { %v4521_v17 = vsel %vm227_vm5, %v4519_v18, %v4520_v34  ;;  %v4471_v37 = vadd.f32 %v5469_v43, %v4470_v0  ;;  %v5480_v18 = vld [vmem:[%s8342_s3 + $0x38] ss:$0 sm:$0xff] }
 0x7b0   :  { %v4549_v45 = vmax.f32 %v4461_v40, %v4521_v17  ;;  %v4524_v52 = vrot.slane %v4476_v15, 1 }
 0x7b1   :  { %v4522_v53 = vrot.slane %v4471_v37, 1  ;;  %v6483_v12 = vpop.f32.mrb[44].mxu1 }
 0x7b2   :  { %v4559_v41 = vmax.f32 %v4549_v45, 0.0  ;;  %v4486_v19 = vadd.f32 %v6483_v12, %v5469_v43  ;;  %v4480_v42 = vpop.f32.mrb[45].mxu1 }
 0x7b3   :  { %v4523_v55 = vsel %vm227_vm5, %v4520_v34, %v4522_v53  ;;  %v4525_v57 = vsel %vm227_vm5, %v4522_v53, %v4524_v52  ;;  %v4481_v3 = vadd.f32 %v5469_v43, %v4480_v42  ;;  %v4875_v34 = vpop.permute.xlu1 %4874 }
 0x7b4   :  { %v4550_v26 = vmax.f32 %v4466_v2, %v4523_v55  ;;  %v4551_v35 = vmax.f32 %v4471_v37, %v4525_v57  ;;  %v4528_v50 = vrot.slane %v4486_v19, 1  ;;  %6510 = vmatprep.mubr.msk.f32.mxu1 %vm4363_vm12, %v4559_v41 }
 0x7b5   :  { %v4526_v61 = vrot.slane %v4481_v3, 1  ;;  %v6486_v62 = vpop.f32.mrb[46].mxu1 }
 0x7b6   :  { %v4560_v9 = vmax.f32 %v4550_v26, 0.0  ;;  %v4561_v16 = vmax.f32 %v4551_v35, 0.0  ;;  %v4496_v20 = vadd.f32 %v6486_v62, %v5469_v43  ;;  %v4490_v5 = vpop.f32.mrb[47].mxu1 }
 0x7b7   :  { %v4527_v25 = vsel %vm227_vm5, %v4524_v52, %v4526_v61  ;;  %v4529_v1 = vsel %vm227_vm5, %v4526_v61, %v4528_v50  ;;  %v4491_v36 = vadd.f32 %v5469_v43, %v4490_v5  ;;  %v4744_v52 = vpop.permute.xlu1 %4743 }
 0x7b8   :  { %v4553_v22 = vmax.f32 %v4481_v3, %v4529_v1  ;;  %v4532_v39 = vrot.slane %v4496_v20, 1  ;;  %6511 = vmatmul.mubr.msk.f32.vlgmr.msra.gmra.mrb[50].mxu1 %vm4363_vm12, %v4560_v9  ;;  %v4552_v21 = vmax.f32 %v4476_v15, %v4527_v25 }
 0x7b9   :  { %v4530_v31 = vrot.slane %v4491_v36, 1  ;;  %v6489_v24 = vpop.f32.mrb[48].mxu1  ;;  %6513 = vmatprep.mubr.msk.f32.mxu1 %vm4363_vm12, %v4561_v16 }
 0x7ba   :  { %v4563_v23 = vmax.f32 %v4553_v22, 0.0  ;;  %v4506_v48 = vadd.f32 %v6489_v24, %v5469_v43  ;;  %v4500_v11 = vpop.f32.mrb[49].mxu1  ;;  %v4562_v28 = vmax.f32 %v4552_v21, 0.0 }
 0x7bb   :  { %v4531_v49 = vsel %vm227_vm5, %v4528_v50, %v4530_v31  ;;  %v4533_v38 = vsel %vm227_vm5, %v4530_v31, %v4532_v39  ;;  %v4501_v63 = vadd.f32 %v5469_v43, %v4500_v11  ;;  %v4748_v43 = vpop.permute.xlu0 %4747  ;;  %v4869_v3 = vpop.permute.xlu1 %4868 }
 0x7bc   :  { %v4555_v51 = vmax.f32 %v4491_v36, %v4533_v38  ;;  %v4536_v4 = vrot.slane %v4506_v48, 1  ;;  %6514 = vmatmul.mubr.msk.f32.gmra.mrb[52].mxu1 %vm4363_vm12, %v4562_v28  ;;  %v4554_v6 = vmax.f32 %v4486_v19, %v4531_v49 }
 0x7bd   :  { %v4534_v7 = vrot.slane %v4501_v63, 1  ;;  %6516 = vmatprep.mubr.msk.f32.mxu1 %vm4363_vm12, %v4563_v23 }
 0x7be   :  { %v4565_v44 = vmax.f32 %v4555_v51, 0.0  ;;  %v4564_v8 = vmax.f32 %v4554_v6, 0.0  ;;  %v4538_v46 = vsel %vm227_vm5, %v4536_v4, %v7310_v59  ;;  %v7082_v59 = vmov 80  }
 0x7bf   :  { %v4535_v10 = vsel %vm227_vm5, %v4532_v39, %v4534_v7  ;;  %v4537_v13 = vsel %vm227_vm5, %v4534_v7, %v4536_v4  ;;  %v4558_v27 = vmax.f32 %v4506_v48, %v4538_v46  ;;  %7003 = vset.pattern.permute.xlu1 %v7082_v59  ;;  %7002 = vset.pattern.permute.xlu0 %v7082_v59  ;;  %v4742_v54 = vpop.permute.xlu0 %4741  ;;  %v4873_v28 = vpop.permute.xlu1 %4872 }
 0x7c0   :  { %v4557_v56 = vmax.f32 %v4501_v63, %v4537_v13  ;;  %6517 = vmatmul.mubr.msk.f32.gmra.mrb[54].mxu1 %vm4363_vm12, %v4564_v8  ;;  %v4556_v60 = vmax.f32 %v4496_v20, %v4535_v10 }
 0x7c1   :  { %6519 = vmatprep.mubr.msk.f32.mxu1 %vm4363_vm12, %v4565_v44  ;;  %v4568_v29 = vmax.f32 %v4558_v27, 0.0 }
 0x7c2   :  { %v4567_v32 = vmax.f32 %v4557_v56, 0.0  ;;  %v4566_v33 = vmax.f32 %v4556_v60, 0.0 }
 0x7c3   :  { %v4746_v45 = vpop.permute.xlu0 %4745 }
 0x7c4   :  { %6520 = vmatmul.mubr.msk.f32.gmra.mrb[56].mxu1 %vm4363_vm12, %v4566_v33 }
 0x7c5   :  { %6522 = vmatprep.mubr.msk.f32.mxu1 %vm4363_vm12, %v4567_v32 }
 0x7c7   :  { %v4871_v22 = vpop.permute.xlu0 %4870 }
 0x7c8   :  { %6523 = vmatmul.mubr.msk.f32.gmra.mrb[58].mxu1 %vm4363_vm12, %v4568_v29 }
 0x7c9   :  { %6545 = vmatprep.mubr.msk.f32.mxu1 %vm7084_vm14, %v7080_v58 }
 0x88b   :  { %v6512_v2 = vpop.f32.mrb[50].mxu1 }
 0x88c   :  { %v4680_v40 = vpop.f32.mrb[51].mxu1  ;;  %v8242_v53 = vadd.f32 %v6512_v2, %v5480_v18 }
 0x88d   :  { %v8236_v15 = vadd.f32 %v5480_v18, %v4680_v40 }
 0x88e   :  { %v4755_v26 = vadd.f32 %v4742_v54, %v8242_v53 }
 0x88f   :  { %v6515_v14 = vpop.f32.mrb[52].mxu1  ;;  %v4754_v41 = vadd.f32 %v4740_v30, %v8236_v15 }
 0x890   :  { %v4690_v0 = vpop.f32.mrb[53].mxu1  ;;  %v8238_v17 = vadd.f32 %v6515_v14, %v5480_v18  ;;  %v4761_v39 = vsel %vm4759_vm13, %v4755_v26, -inf }
 0x891   :  { %v8240_v37 = vadd.f32 %v5480_v18, %v4690_v0  ;;  %v4760_v61 = vsel %vm4759_vm13, %v4754_v41, -inf }
 0x892   :  { %v4757_v42 = vadd.f32 %v4746_v45, %v8238_v17 }
 0x893   :  { %v6518_v12 = vpop.f32.mrb[54].mxu1  ;;  %v4756_v55 = vadd.f32 %v4744_v52, %v8240_v37 }
 0x894   :  { %v4700_v19 = vpop.f32.mrb[55].mxu1  ;;  %v8252_v62 = vadd.f32 %v6518_v12, %v5480_v18  ;;  %v4763_v16 = vsel %vm4759_vm13, %v4757_v42, -inf }
 0x895   :  { %v8247_v57 = vadd.f32 %v5480_v18, %v4700_v19  ;;  %v4762_v20 = vsel %vm4759_vm13, %v4756_v55, -inf }
 0x896   :  { %v4767_v31 = vmax.f32 %v4762_v20, %v4763_v16  ;;  %v4881_v24 = vadd.f32 %v4867_v47, %v8252_v62 }
 0x897   :  { %v4758_v35 = vadd.f32 %v4748_v43, %v8247_v57  ;;  %v6521_v50 = vpop.f32.mrb[56].mxu1 }
 0x898   :  { %v4710_v9 = vpop.f32.mrb[57].mxu1  ;;  %v8257_v25 = vadd.f32 %v6521_v50, %v5480_v18  ;;  %v4886_v7 = vsel %vm4759_vm13, %v4881_v24, -inf }
 0x899   :  { %v4764_v5 = vsel %vm4759_vm13, %v4758_v35, -inf  ;;  %v8259_v36 = vadd.f32 %v5480_v18, %v4710_v9 }
 0x89a   :  { %v4765_v1 = vmax.f32 %v4760_v61, %v4764_v5  ;;  %v4883_v49 = vadd.f32 %v4871_v22, %v8257_v25 }
 0x89b   :  { %v6524_v21 = vpop.f32.mrb[58].mxu1  ;;  %v4882_v51 = vadd.f32 %v4869_v3, %v8259_v36 }
 0x89c   :  { %v4766_v23 = vmax.f32 %v4765_v1, %v4761_v39  ;;  %v8263_v48 = vadd.f32 %v6524_v21, %v5480_v18  ;;  %v4720_v11 = vpop.f32.mrb[59].mxu1  ;;  %v4888_v46 = vsel %vm4759_vm13, %v4883_v49, -inf }
 0x89d   :  { %v8266_v38 = vadd.f32 %v5480_v18, %v4720_v11  ;;  %v4887_v60 = vsel %vm4759_vm13, %v4882_v51, -inf }
 0x89e   :  { %v4768_v63 = vmax.f32 %v4766_v23, %v4767_v31  ;;  %v4885_v4 = vadd.f32 %v4875_v34, %v8263_v48 }
 0x89f   :  { %v4884_v6 = vadd.f32 %v4873_v28, %v8266_v38 }
 0x8a0   :  { %v4769_v44 = vrot.slane %v4768_v63, 4  ;;  %v4890_v8 = vsel %vm4759_vm13, %v4885_v4, -inf }
 0x8a1   :  { %v4891_v10 = vmax.f32 %v4886_v7, %v4890_v8  ;;  %v4889_v13 = vsel %vm4759_vm13, %v4884_v6, -inf }
 0x8a2   :  { %v4770_v56 = vmax.f32 %v4768_v63, %v4769_v44  ;;  %v4893_v27 = vmax.f32 %v4888_v46, %v4889_v13 }
 0x8a3   :  { %v4892_v32 = vmax.f32 %v4891_v10, %v4887_v60 }
 0x8a4   :  { %v4771_v33 = vrot.slane %v4770_v56, 2 }
 0x8a5   :  { %v4894_v29 = vmax.f32 %v4892_v32, %v4893_v27 }
 0x8a6   :  { %v4772_v59 = vmax.f32 %v4770_v56, %v4771_v33 }
 0x8a7   :  { %v4895_v30 = vrot.slane %v4894_v29, 4 }
 0x8a8   :  { %v4773_v43 = vrot.slane %v4772_v59, 1 }
 0x8a9   :  { %v4896_v47 = vmax.f32 %v4894_v29, %v4895_v30 }
 0x8aa   :  { %v4774_v2 = vmax.f32 %v4772_v59, %v4773_v43 }
 0x8ab   :  { %v4897_v54 = vrot.slane %v4896_v47, 2 }
 0x8ac   :  { %v4775_v40 = vsub.f32 %v4754_v41, %v4774_v2  ;;  %v4777_v34 = vsub.f32 %v4756_v55, %v4774_v2  ;;  %v4776_v14 = vsub.f32 %v4755_v26, %v4774_v2  ;;  %v4778_v0 = vsub.f32 %v4757_v42, %v4774_v2 }
 0x8ad   :  { %v4898_v18 = vmax.f32 %v4896_v47, %v4897_v54  ;;  %v4779_v19 = vsub.f32 %v4758_v35, %v4774_v2 }
 0x8ae   :  { %v4780_v45 = vmul.f32 1.442695, %v4775_v40  ;;  %v4784_v52 = vmul.f32 1.442695, %v4777_v34  ;;  %v4782_v3 = vmul.f32 1.442695, %v4776_v14 }
 0x8af   :  { %v4899_v12 = vrot.slane %v4898_v18, 1  ;;  %v4786_v61 = vmul.f32 1.442695, %v4778_v0  ;;  %v4788_v20 = vmul.f32 1.442695, %v4779_v19 }
 0x8b0   :  { %7004 = vpow2.f32 %v4780_v45 }
 0x8b1   :  { %v4900_v50 = vmax.f32 %v4898_v18, %v4899_v12  ;;  %7006 = vpow2.f32 %v4784_v52 }
 0x8b2   :  { %7008 = vpow2.f32 %v4782_v3 }
 0x8b3   :  { %v4901_v9 = vsub.f32 %v4881_v24, %v4900_v50  ;;  %v4903_v16 = vsub.f32 %v4883_v49, %v4900_v50  ;;  %v4902_v5 = vsub.f32 %v4882_v51, %v4900_v50  ;;  %v4904_v1 = vsub.f32 %v4884_v6, %v4900_v50 }
 0x8b4   :  { %7010 = vpow2.f32 %v4786_v61  ;;  %v4905_v26 = vsub.f32 %v4885_v4, %v4900_v50 }
 0x8b5   :  { %v4906_v41 = vmul.f32 1.442695, %v4901_v9  ;;  %v4910_v55 = vmul.f32 1.442695, %v4903_v16  ;;  %v4908_v42 = vmul.f32 1.442695, %v4902_v5 }
 0x8b6   :  { %v4912_v22 = vmul.f32 1.442695, %v4904_v1  ;;  %v4914_v39 = vmul.f32 1.442695, %v4905_v26 }
 0x8b7   :  { %7012 = vpow2.f32 %v4906_v41 }
 0x8b8   :  { %7014 = vpow2.f32 %v4788_v20 }
 0x8b9   :  { %7016 = vpow2.f32 %v4910_v55 }
 0x8ba   :  { %v7005_v35 = vpop.eup %7004  ;;  %7018 = vpow2.f32 %v4908_v42 }
 0x8bb   :  { %v7007_v21 = vpop.eup %7006  ;;  %7020 = vpow2.f32 %v4912_v22  ;;  %v4790_v31 = vsel %vm4759_vm13, %v7005_v35, 0.0 }
 0x8bc   :  { %v7009_v24 = vpop.eup %7008  ;;  %7022 = vpow2.f32 %v4914_v39  ;;  %v4793_v63 = vsel %vm4759_vm13, %v7007_v21, 0.0  ;;  %v4984_v39 = vld [vmem:[#allocation2 + $0x388] sm:$0xff] }
 0x8bd   :  { %v4791_v23 = vsel %vm4759_vm13, %v7009_v24, 0.0 }
 0x8be   :  { %v7011_v11 = vpop.eup %7010  ;;  %v4792_v28 = vadd.f32 %v4791_v23, %v4790_v31  ;;  %v7083_v31 = vmov 0.0|0.0   ;;  %v4986_v23 = vld [vmem:[#allocation2 + $0x398] sm:$0xff] }
 0x8bf   :  { %v4795_v6 = vsel %vm4759_vm13, %v7011_v11, 0.0  ;;  %6777 = vmatprep.subr.bf16.mxu1 %v7083_v31 }
 0x8c0   :  { %v4794_v4 = vadd.f32 %v4793_v63, %v4792_v28  ;;  %v4987_v28 = vld [vmem:[#allocation2 + $0x3a0] sm:$0xff] }
 0x8c1   :  { %v7013_v49 = vpop.eup %7012 }
 0x8c2   :  { %v7015_v51 = vpop.eup %7014  ;;  %v4796_v44 = vadd.f32 %v4795_v6, %v4794_v4  ;;  %v4916_v8 = vsel %vm4759_vm13, %v7013_v49, 0.0  ;;  %v4990_v4 = vld [vmem:[#allocation2 + $0x3b8] sm:$0xff] }
 0x8c3   :  { %v7017_v7 = vpop.eup %7016  ;;  %v4797_v10 = vsel %vm4759_vm13, %v7015_v51, 0.0 }
 0x8c4   :  { %v7019_v46 = vpop.eup %7018  ;;  %v4798_v13 = vadd.f32 %v4797_v10, %v4796_v44  ;;  %v4919_v33 = vsel %vm4759_vm13, %v7017_v7, 0.0  ;;  %v4992_v44 = vld [vmem:[#allocation2 + $0x3c8] sm:$0xff] }
 0x8c5   :  { %v4917_v56 = vsel %vm4759_vm13, %v7019_v46, 0.0  ;;  %v7021_v60 = vpop.eup %7020 }
 0x8c6   :  { %v4918_v27 = vadd.f32 %v4917_v56, %v4916_v8  ;;  %v4799_v32 = vrot.slane %v4798_v13, 4  ;;  %v7023_v29 = vpop.eup %7022  ;;  %v4921_v30 = vsel %vm4759_vm13, %v7021_v60, 0.0 }
 0x8c7   :  { %v4923_v54 = vsel %vm4759_vm13, %v7023_v29, 0.0 }
 0x8c8   :  { %v4920_v59 = vadd.f32 %v4919_v33, %v4918_v27  ;;  %v4800_v43 = vadd.f32 %v4799_v32, %v4798_v13 }
 0x8ca   :  { %v4922_v47 = vadd.f32 %v4921_v30, %v4920_v59  ;;  %v4801_v2 = vrot.slane %v4800_v43, 2 }
 0x8cc   :  { %v4924_v40 = vadd.f32 %v4923_v54, %v4922_v47  ;;  %v4802_v34 = vadd.f32 %v4801_v2, %v4800_v43 }
 0x8ce   :  { %v4925_v18 = vrot.slane %v4924_v40, 4  ;;  %v4803_v14 = vrot.slane %v4802_v34, 1 }
 0x8d0   :  { %v4926_v0 = vadd.f32 %v4925_v18, %v4924_v40  ;;  %v4804_v45 = vadd.f32 %v4803_v14, %v4802_v34 }
 0x8d2   :  { %v4927_v52 = vrot.slane %v4926_v0, 2  ;;  %7024 = vrcp.f32 %v4804_v45 }
 0x8d4   :  { %v4928_v12 = vadd.f32 %v4927_v52, %v4926_v0 }
 0x8d6   :  { %v4929_v19 = vrot.slane %v4928_v12, 1 }
 0x8d8   :  { %v4930_v3 = vadd.f32 %v4929_v19, %v4928_v12 }
 0x8da   :  { %7026 = vrcp.f32 %v4930_v3 }
 0x8dc   :  { %v7025_v50 = vpop.eup %7024 }
 0x8dd   :  { %v4807_v61 = vmul.f32 %v7025_v50, %v7009_v24  ;;  %v4806_v9 = vmul.f32 %v7025_v50, %v7005_v35  ;;  %v4808_v16 = vmul.f32 %v7025_v50, %v7007_v21  ;;  %v4809_v55 = vmul.f32 %v7025_v50, %v7011_v11  ;;  %v4983_v35 = vld [vmem:[#allocation2 + $0x380] sm:$0xff]  ;;  %v4985_v24 = vld [vmem:[#allocation2 + $0x390] sm:$0xff] }
 0x8de   :  { %v4810_v42 = vmul.f32 %v7025_v50, %v7015_v51  ;;  %v6778_v21 = vpack.c.bf16 %v4984_v39, %v4983_v35  ;;  %v6781_v11 = vpack.c.bf16 %v4986_v23, %v4985_v24  ;;  %v4989_v51 = vld [vmem:[#allocation2 + $0x3b0] sm:$0xff] }
 0x8df   :  { %4818 = vperm.xlu1 %7003, %v4807_v61   ;;  %4813 = vperm.xlu0 %7002, %v4806_v9   ;;  %v6787_v6 = vpack.c.bf16 %v4990_v4, %v4989_v51  ;;  %v5072_v39 = vld [vmem:[#allocation2 + $0x3d0] sm:$0xff]  ;;  %v5491_v4 = vld [vmem:[%s8342_s3 + $0x40] ss:$0 sm:$0xff] }
 0x8e0   :  { %6779 = vmatpush3.bf16.msra.mxu1 %v6778_v21  ;;  %v5073_v21 = vld [vmem:[#allocation2 + $0x3d8] sm:$0xff] }
 0x8e1   :  { %6780 = vmatprep.subr.bf16.mxu1 %v7083_v31 }
 0x8e3   :  { %4823 = vperm.xlu1 %7003, %v4808_v16  }
 0x8e4   :  { %v7027_v20 = vpop.eup %7026  ;;  %6782 = vmatpush3.bf16.msra.mxu1 %v6781_v11 }
 0x8e5   :  { %v4933_v5 = vmul.f32 %v7027_v20, %v7019_v46  ;;  %v4932_v1 = vmul.f32 %v7027_v20, %v7013_v49  ;;  %v4934_v41 = vmul.f32 %v7027_v20, %v7017_v7  ;;  %v4935_v26 = vmul.f32 %v7027_v20, %v7021_v60  ;;  %v4988_v49 = vld [vmem:[#allocation2 + $0x3a8] sm:$0xff]  ;;  %6783 = vmatprep.subr.bf16.mxu1 %v7083_v31  ;;  %v4991_v7 = vld [vmem:[#allocation2 + $0x3c0] sm:$0xff] }
 0x8e6   :  { %v4936_v22 = vmul.f32 %v7027_v20, %v7023_v29  ;;  %v6784_v63 = vpack.c.bf16 %v4988_v49, %v4987_v28  ;;  %v6790_v8 = vpack.c.bf16 %v4992_v44, %v4991_v7  ;;  %v6793_v28 = vpack.c.bf16 %v5073_v21, %v5072_v39  ;;  %v5074_v49 = vld [vmem:[#allocation2 + $0x3e0] sm:$0xff] }
 0x8e7   :  { %4944 = vperm.xlu0 %7002, %v4933_v5   ;;  %4939 = vperm.xlu1 %7003, %v4932_v1  }
 0x8e8   :  { %6785 = vmatpush3.bf16.msra.mxu1 %v6784_v63  ;;  %v5075_v63 = vld [vmem:[#allocation2 + $0x3e8] sm:$0x3f] }
 0x8e9   :  { %6786 = vmatprep.subr.bf16.mxu1 %v7083_v31  ;;  %v6796_v51 = vpack.c.bf16 %v5075_v63, %v5074_v49 }
 0x8eb   :  { %4949 = vperm.xlu0 %7002, %v4934_v41   ;;  %4828 = vperm.xlu1 %7003, %v4809_v55  }
 0x8ec   :  { %6788 = vmatpush3.bf16.msra.mxu1 %v6787_v6 }
 0x8ed   :  { %6789 = vmatprep.subr.bf16.mxu1 %v7083_v31 }
 0x8ef   :  { %4954 = vperm.xlu0 %7002, %v4935_v26   ;;  %4833 = vperm.xlu1 %7003, %v4810_v42  }
 0x8f0   :  { %6791 = vmatpush3.bf16.msra.mxu1 %v6790_v8 }
 0x8f1   :  { %6792 = vmatprep.subr.bf16.mxu1 %v7083_v31 }
 0x8f3   :  { %4959 = vperm.xlu0 %7002, %v4936_v22  }
 0x95e   :  { %v4819_v46 = vpop.permute.xlu1 %4818  ;;  %v4814_v10 = vpop.permute.xlu0 %4813 }
 0x95f   :  { %v4837_v56 = vmul.f32 %v4819_v46, %v8242_v53  ;;  %v4836_v60 = vmul.f32 %v4814_v10, %v8236_v15 }
 0x961   :  { %v4842_v30 = vsel %vm4363_vm12, %v4837_v56, 0.0  ;;  %v4841_v43 = vsel %vm4363_vm12, %v4836_v60, 0.0  ;;  %v5493_v56 = vld [vmem:[%s8342_s3 + $0x48] ss:$0 sm:$0xff] }
 0x962   :  { %v4824_v13 = vpop.permute.xlu1 %4823  ;;  %v4843_v34 = vadd.f32 %v4842_v30, %v4841_v43 }
 0x963   :  { %v4838_v29 = vmul.f32 %v4824_v13, %v8240_v37 }
 0x965   :  { %v4844_v40 = vsel %vm4363_vm12, %v4838_v29, 0.0 }
 0x966   :  { %v4945_v27 = vpop.permute.xlu0 %4944  ;;  %v4940_v33 = vpop.permute.xlu1 %4939  ;;  %v4845_v14 = vadd.f32 %v4844_v40, %v4843_v34 }
 0x967   :  { %v4963_v32 = vmul.f32 %v4945_v27, %v8259_v36  ;;  %v4962_v59 = vmul.f32 %v4940_v33, %v8252_v62 }
 0x969   :  { %v4968_v2 = vsel %vm4363_vm12, %v4963_v32, 0.0  ;;  %v4967_v54 = vsel %vm4363_vm12, %v4962_v59, 0.0 }
 0x96a   :  { %v4950_v47 = vpop.permute.xlu0 %4949  ;;  %v4829_v15 = vpop.permute.xlu1 %4828  ;;  %v4969_v37 = vadd.f32 %v4968_v2, %v4967_v54 }
 0x96b   :  { %v4964_v53 = vmul.f32 %v4950_v47, %v8257_v25  ;;  %v4839_v36 = vmul.f32 %v4829_v15, %v8238_v17 }
 0x96d   :  { %v4846_v62 = vsel %vm4363_vm12, %v4839_v36, 0.0  ;;  %v4970_v0 = vsel %vm4363_vm12, %v4964_v53, 0.0 }
 0x96e   :  { %v4955_v18 = vpop.permute.xlu0 %4954  ;;  %v4834_v52 = vpop.permute.xlu1 %4833  ;;  %v4847_v19 = vadd.f32 %v4846_v62, %v4845_v14  ;;  %v4971_v3 = vadd.f32 %v4970_v0, %v4969_v37 }
 0x96f   :  { %v4965_v45 = vmul.f32 %v4955_v18, %v8266_v38  ;;  %v4840_v12 = vmul.f32 %v4834_v52, %v8247_v57 }
 0x971   :  { %v4972_v25 = vsel %vm4363_vm12, %v4965_v45, 0.0  ;;  %v4848_v50 = vsel %vm4363_vm12, %v4840_v12, 0.0 }
 0x972   :  { %v4960_v17 = vpop.permute.xlu0 %4959  ;;  %v4849_v61 = vadd.f32 %v4848_v50, %v4847_v19  ;;  %v4973_v16 = vadd.f32 %v4972_v25, %v4971_v3 }
 0x973   :  { %v4966_v9 = vmul.f32 %v4960_v17, %v8263_v48 }
 0x974   :  { %v4850_v20 = vrot.slane %v4849_v61, 4 }
 0x975   :  { %v4974_v5 = vsel %vm4363_vm12, %v4966_v9, 0.0 }
 0x976   :  { %v4975_v1 = vadd.f32 %v4974_v5, %v4973_v16  ;;  %v4851_v41 = vadd.f32 %v4850_v20, %v4849_v61 }
 0x978   :  { %v4976_v38 = vrot.slane %v4975_v1, 4  ;;  %v4852_v55 = vrot.slane %v4851_v41, 2 }
 0x97a   :  { %v4977_v26 = vadd.f32 %v4976_v38, %v4975_v1  ;;  %v4853_v57 = vadd.f32 %v4852_v55, %v4851_v41 }
 0x97c   :  { %v4978_v42 = vrot.slane %v4977_v26, 2  ;;  %v4854_v22 = vrot.slane %v4853_v57, 1 }
 0x97e   :  { %v4979_v35 = vadd.f32 %v4978_v42, %v4977_v26  ;;  %v4855_v23 = vadd.f32 %v4854_v22, %v4853_v57 }
 0x980   :  { %v4980_v24 = vrot.slane %v4979_v35, 1 }
 0x982   :  { %v4981_v11 = vadd.f32 %v4980_v24, %v4979_v35 }
 0x984   :  { %v4982_v48 = vsel %vm3891_vm11, %v4855_v23, %v4981_v11 }
 0x985   :  { %6546 = vmatmul.mubr.msk.f32.vlgmr.msra.gmra.mrb[60].mxu1 %vm4363_vm12, %v4982_v48 }
 0x986   :  { %6794 = vmatpush3.bf16.msra.mxu1 %v6793_v28  ;;  %6556 = vmatprep.mubr.msk.f32.mxu1 %vm7084_vm14, %v7080_v58  ;;  %v7085_v58 = vmov 1966171168  }
 0x987   :  { %6795 = vmatprep.subr.bf16.mxu1 %v7083_v31  ;;  %v5160_v46 = vunpack.c.l.s4 %v7085_v58  ;;  %v5162_v31 = vlaneseq }
 0x989   :  { %v5161_v10 = vunpack.c.0.s8 %v5160_v46  ;;  %v5163_v13 = vshrl.u32 %v5162_v31, 7 }
 0x98a   :  { %6798 = vmatpush3.bf16.msk.msra.mxu1 %vm6797_vm15, %v6796_v51 }
 0x98b   :  { %v5164_v60 = vsub.s32 %v5161_v10, %v5163_v13 }
 0xa58   :  { %v5067_v6 = vpop.f32.mrb[60].mxu1 }
 0xa59   :  { %v5068_v7 = vadd.f32 %v5491_v4, %v5067_v6  ;;  %v6547_v44 = vpop.f32.mrb[61].mxu1 }
 0xa5b   :  { %v5071_v8 = vmax.f32 %v5068_v7, 0.0 }
 0xa5d   :  { %6557 = vmatmul.mubr.msk.f32.vlgmr.msra.gmra.mrb[62].mxu1 %vm5081_vm0, %v5071_v8 }
 0xb30   :  { %v5154_v27 = vpop.f32.mrb[62].mxu1 }
 0xb31   :  { %v5155_v32 = vadd.f32 %v5493_v56, %v5154_v27  ;;  %v6558_v33 = vpop.f32.mrb[63].mxu1 }
 0xb33   :  { %v5165_v29 = vrot.slane %v5155_v32, %v5164_v60 }
 0xb35   :  { %v5166_v59 = vcombine.high %v5165_v29, %v5165_v29  ;;  %5496 = vst.sshfl [vmem:[#allocation5] sm:$0x1 pattern:$0x73625140] %v5165_v29 }
 0xb37   :  { %5497 = vst.sshfl [vmem:[#allocation5 + $0x1] sm:$0x1 pattern:$0x73625140] %v5166_v59 }
 0xb38   :  { %7061 = shalt.err (!%p7058_p12)
}
 0xb39   :  { %s7062_s10 = scalar_lea.hbm %s8343_s4, 32 }
 0xb3a   :  { %p7063_p13 = scmp.ne.s32.totalorder %s8343_s4, %s7062_s10  ;;  %p7066_p0 = scmp.lt.u32.totalorder %s7062_s10, %s8343_s4 }
 0xb3c   :  { %p7068_p1 = pnand %p7066_p0, %p7063_p13 }
 0xb3e   :  { %7071 = shalt.err (!%p7068_p1)
}
 0xb3f   :  { %s7087_s15 = smov 16   ;;  %s7088_s16 = smov 1  }
 0xb40   :  { %5196 = dma.vmem_to_hbm [thread:$0]  %s5191_s7, 32, %s8343_s4, [#allocation4], %s7087_s15, %s7087_s15, %s7088_s16  }
 0xb41   :  { %7074 = dma.done.wait [#allocation4], 32  }
 0xb42   :  { %7075 = vsyncadd [#allocation4], 4294967264 }
 0xb43   :  { %5200 = vsyncpa [#allocation3], 1 }
 0xb44   :  { %5201 = vsyncpa [#allocation4], 1 }

</bundles_post_ra>
